<compile_context>
chip_gen: v7x
topology: tpu7x:2x2x1
jax: 0.10.0
libtpu: 0.0.40
codegen_flags: <defaults>
</compile_context>

<pallas_src>
import jax
import jax.numpy as jnp
from jax.experimental import pallas as pl
from jax.experimental.pallas import tpu as pltpu


# ----------------------------- Fused Pallas kernel ------------------------------

def _make_fused_kernel(num_layers, T, B, H, D0, C_pad):
    H4 = 4 * H
    H8 = 8 * H

    def kernel(*refs):
        idx = 0
        x_ref = refs[idx]; idx += 1                       # (T, B, D0) bf16, time-major
        layers = []
        for _ in range(num_layers):
            layers.append(refs[idx:idx + 4])              # (w_ih, w_hh_f, w_hh_b, bias)
            idx += 4
        lin_w_ref = refs[idx]; idx += 1                   # (2H, C_pad) f32
        lin_b_ref = refs[idx]; idx += 1                   # (1, C_pad)  f32
        out_ref = refs[idx]; idx += 1                     # (B, C_pad)  f32
        xp_ref, act_f_ref, act_b_ref = refs[idx:idx + 3]  # VMEM scratch

        def time_loop(w_hh_f_ref, w_hh_b_ref, store_seq):
            # Small (H, 4H) bf16 recurrent weights -> hoist (2 vregs each).
            w_hh_f = w_hh_f_ref[...]
            w_hh_b = w_hh_b_ref[...]

            def cell(x_proj, h, c, w_hh):
                # gates already contain x_t @ W_ih + bias (from xp_ref); add h @ W_hh.
                gates = x_proj + jnp.dot(h.astype(jnp.bfloat16), w_hh,
                                         preferred_element_type=jnp.float32)
                sig = jax.nn.sigmoid(gates[:, 0:3 * H])   # [i | f | o] (gate-reordered)
                g_g = jnp.tanh(gates[:, 3 * H:4 * H])     # g
                i_g = sig[:, 0:H]
                f_g = sig[:, H:2 * H]
                o_g = sig[:, 2 * H:3 * H]
                c_new = f_g * c + i_g * g_g               # cell state stays f32
                h_new = o_g * jnp.tanh(c_new)
                return h_new, c_new

            zeros = jnp.zeros((B, H), jnp.float32)
            h_f, c_f, h_b, c_b = zeros, zeros, zeros, zeros
            for t in range(T):                            # fully unrolled, static indices
                h_f, c_f = cell(xp_ref[t, :, 0:H4], h_f, c_f, w_hh_f)          # fwd: t
                h_b, c_b = cell(xp_ref[T - 1 - t, :, H4:H8], h_b, c_b, w_hh_b)  # bwd: T-1-t
                if store_seq:                             # only layers that feed another layer
                    act_f_ref[t] = h_f.astype(jnp.bfloat16)
                    act_b_ref[T - 1 - t] = h_b.astype(jnp.bfloat16)
            return h_f, h_b

        # ---------------- layer 0: input projection (both directions at once) ----------------
        w_ih0_ref, w_hh_f0_ref, w_hh_b0_ref, bias0_ref = layers[0]
        w_ih0 = w_ih0_ref[...]                                        # (D0, 8H) bf16
        bias0 = jnp.broadcast_to(bias0_ref[...], (B, H8))             # hoisted broadcast
        for t in range(T):                                            # independent matmuls
            xp_ref[t] = jnp.dot(x_ref[t], w_ih0,
                                preferred_element_type=jnp.float32) + bias0
        h_f, h_b = time_loop(w_hh_f0_ref, w_hh_b0_ref, store_seq=(num_layers > 1))

        # ---------------- layers 1..L-1 ----------------
        for layer in range(1, num_layers):
            w_ih_ref, w_hh_f_ref, w_hh_b_ref, bias_ref = layers[layer]
            w_in_f = w_ih_ref[0:H, :]                                 # (H, 8H) bf16 (fwd feats)
            w_in_b = w_ih_ref[H:2 * H, :]                             # (H, 8H) bf16 (bwd feats)
            bias_l = jnp.broadcast_to(bias_ref[...], (B, H8))
            for t in range(T):
                xp_ref[t] = (jnp.dot(act_f_ref[t], w_in_f,
                                     preferred_element_type=jnp.float32)
                             + jnp.dot(act_b_ref[t], w_in_b,
                                       preferred_element_type=jnp.float32)
                             + bias_l)
            h_f, h_b = time_loop(w_hh_f_ref, w_hh_b_ref,
                                 store_seq=(layer < num_layers - 1))

        # ---------------- classifier head: Linear(2H -> C) + softmax(dim=1) ----------------
        lin_w = lin_w_ref[...]                                        # (2H, C_pad) f32
        logits = (jnp.dot(h_f, lin_w[0:H, :], preferred_element_type=jnp.float32)
                  + jnp.dot(h_b, lin_w[H:2 * H, :], preferred_element_type=jnp.float32)
                  + lin_b_ref[...])                                   # pads are -1e30
        m = jnp.max(logits, axis=1, keepdims=True)
        e = jnp.exp(logits - m)                                       # padded cols -> 0
        out_ref[...] = e / jnp.sum(e, axis=1, keepdims=True)

    return kernel


# ------------------------------ Wrapper ------------------------------------

def bidirectional_lstm_classifier(params, x):
    """x: (B, T, 50), batch_first like the PyTorch module. Returns (B, num_classes)."""
    lstm_layers = params["lstm"]
    num_layers = len(lstm_layers)                   # static (pytree structure), jit-safe
    B, T, D = x.shape
    H = lstm_layers[0]["w_hh_f"].shape[0]
    C = params["lin_b"].shape[-1]                   # array shape -> static under jit
    c_pad = -(-C // 128) * 128                      # lane-dense head output (>= 128)

    x_tbd = jnp.transpose(x, (1, 0, 2)).astype(jnp.bfloat16)          # time-major (T, B, D)

    # Pad head to c_pad lanes: zero weight columns, -1e30 bias columns -> softmax pad = 0.
    lin_w_pad = jnp.pad(params["lin_w_t"], ((0, 0), (0, c_pad - C)))
    lin_b_pad = jnp.pad(params["lin_b"], ((0, 0), (0, c_pad - C)),
                        constant_values=-1e30)

    inputs = [x_tbd]
    for lp in lstm_layers:
        inputs += [lp["w_ih"], lp["w_hh_f"], lp["w_hh_b"], lp["bias"]]
    inputs += [lin_w_pad, lin_b_pad]

    vmem = pl.BlockSpec(memory_space=pltpu.MemorySpace.VMEM)
    out_pad = pl.pallas_call(
        _make_fused_kernel(num_layers, T, B, H, D, c_pad),
        out_shape=jax.ShapeDtypeStruct((B, c_pad), jnp.float32),
        in_specs=[vmem] * len(inputs),
        out_specs=vmem,
        scratch_shapes=[
            pltpu.VMEM((T, B, 8 * H), jnp.float32),   # x_proj (fwd|bwd gates, bias folded)
            pltpu.VMEM((T, B, H), jnp.bfloat16),      # fwd activation sequence
            pltpu.VMEM((T, B, H), jnp.bfloat16),      # bwd activation sequence
        ],
    )(*inputs)
    return out_pad[:, :C]


# ------------------------------ Param init ----------------------------------

def init_params(key, num_classes, hidden_size, num_layers, input_size=50):
    H = hidden_size
    bound_h = 1.0 / float(H) ** 0.5
    # Gate-row permutation: PyTorch [i, f, g, o]  ->  kernel [i, f, o, g].
    perm = jnp.concatenate([jnp.arange(0, 2 * H), jnp.arange(3 * H, 4 * H),
                            jnp.arange(2 * H, 3 * H)])

    def uni(k, shape, bound):
        return jax.random.uniform(k, shape, jnp.float32, -bound, bound)

    params = {"lstm": []}                           # NOTE: no traced num_layers leaf
    for layer in range(num_layers):
        d_in = input_size if layer == 0 else 2 * H
        lp = {}
        dir_w_ih, dir_bias = [], []
        for dname in ("f", "b"):
            key, k1, k2, k3, k4 = jax.random.split(key, 5)
            w_ih = uni(k1, (4 * H, d_in), bound_h)[perm]              # PyTorch weight_ih_l{l}
            w_hh = uni(k2, (4 * H, H), bound_h)[perm]                 # PyTorch weight_hh_l{l}
            b = (uni(k3, (4 * H,), bound_h) + uni(k4, (4 * H,), bound_h))[perm]
            dir_w_ih.append(w_ih.T)                                   # (d_in, 4H)
            dir_bias.append(b)
            lp["w_hh_" + dname] = w_hh.T.astype(jnp.bfloat16)         # (H, 4H) bf16
        # Stack fwd|bwd along the output dim -> one 8H-wide input projection per layer.
        lp["w_ih"] = jnp.concatenate(dir_w_ih, axis=1).astype(jnp.bfloat16)   # (d_in, 8H)
        lp["bias"] = jnp.concatenate(dir_bias).reshape(1, 8 * H)              # f32
        params["lstm"].append(lp)

    key, k1, k2 = jax.random.split(key, 3)
    fan_in = 2 * H
    bound_l = 1.0 / float(fan_in) ** 0.5
    lin_w = uni(k1, (num_classes, fan_in), bound_l)                   # PyTorch Linear weight
    lin_b = uni(k2, (num_classes,), bound_l)
    params["lin_w_t"] = lin_w.T                                       # (2H, C) f32
    params["lin_b"] = lin_b.reshape(1, num_classes)                   # (1, C)  f32
    return params


# --------------------------------- Main --------------------------------------

if __name__ == "__main__":
    num_classes = 4
    hidden_size = 32
    num_layers = 2
    batch = 2
    seq = 8

    key = jax.random.PRNGKey(0)
    key, pkey, xkey = jax.random.split(key, 3)
    params = init_params(pkey, num_classes, hidden_size, num_layers)
    x = jax.random.normal(xkey, (batch, seq, 50), jnp.float32)        # (B, T, 50), batch_first

    probs = jax.jit(bidirectional_lstm_classifier)(params, x)
    probs = jax.block_until_ready(probs)

    assert probs.shape == (batch, num_classes)
    assert bool(jnp.all(jnp.isfinite(probs)))
    # rows sum to 1 (softmax over dim=1)
    assert bool(jnp.allclose(jnp.sum(probs, axis=1), 1.0, atol=1e-5))
    print("KERNEL_OK")
</pallas_src>

<mosaic_0001>
module attributes {stable_mosaic.version = 11 : i64} {
  func.func @kernel(%arg0: memref<8x2x50xbf16, #tpu.memory_space<vmem>>, %arg1: memref<50x256xbf16, #tpu.memory_space<vmem>>, %arg2: memref<32x128xbf16, #tpu.memory_space<vmem>>, %arg3: memref<32x128xbf16, #tpu.memory_space<vmem>>, %arg4: memref<1x256xf32, #tpu.memory_space<vmem>>, %arg5: memref<64x256xbf16, #tpu.memory_space<vmem>>, %arg6: memref<32x128xbf16, #tpu.memory_space<vmem>>, %arg7: memref<32x128xbf16, #tpu.memory_space<vmem>>, %arg8: memref<1x256xf32, #tpu.memory_space<vmem>>, %arg9: memref<64x128xf32, #tpu.memory_space<vmem>>, %arg10: memref<1x128xf32, #tpu.memory_space<vmem>>, %arg11: memref<2x128xf32, #tpu.memory_space<vmem>>, %arg12: memref<8x2x256xf32, #tpu.memory_space<vmem>>, %arg13: memref<8x2x32xbf16, #tpu.memory_space<vmem>>, %arg14: memref<8x2x32xbf16, #tpu.memory_space<vmem>>) attributes {dimension_semantics = [], scalar_prefetch = 0 : i64, scratch_operands = 3 : i64, tpu.core_type = #tpu.core_type<tc>} {
    %c0 = arith.constant 0 : index
    %c0_0 = arith.constant 0 : index
    %0 = vector.load %arg1[%c0, %c0_0] : memref<50x256xbf16, #tpu.memory_space<vmem>>, vector<50x256xbf16>
    %c0_1 = arith.constant 0 : index
    %c0_2 = arith.constant 0 : index
    %1 = vector.load %arg4[%c0_1, %c0_2] : memref<1x256xf32, #tpu.memory_space<vmem>>, vector<1x256xf32>
    %2 = vector.shape_cast %1 : vector<1x256xf32> to vector<1x256xf32>
    %3 = vector.broadcast %2 : vector<1x256xf32> to vector<2x256xf32>
    %c0_3 = arith.constant 0 : index
    %c0_4 = arith.constant 0 : index
    %c0_5 = arith.constant 0 : index
    %4 = vector.load %arg0[%c0_3, %c0_4, %c0_5] : memref<8x2x50xbf16, #tpu.memory_space<vmem>>, vector<1x2x50xbf16>
    %5 = vector.shape_cast %4 : vector<1x2x50xbf16> to vector<2x50xbf16>
    %cst = arith.constant dense<0.000000e+00> : vector<2x256xf32>
    %6 = tpu.matmul %5, %0, %cst {dimension_numbers = #tpu.dot_dimension_numbers<[1], [0], [0], [1], [0, 0, 1, 1], [], []>} : vector<2x50xbf16>, vector<50x256xbf16>, vector<2x256xf32> -> vector<2x256xf32>
    %7 = arith.addf %6, %3 : vector<2x256xf32>
    %c0_6 = arith.constant 0 : index
    %c0_7 = arith.constant 0 : index
    %c0_8 = arith.constant 0 : index
    %8 = vector.load %arg12[%c0_6, %c0_7, %c0_8] : memref<8x2x256xf32, #tpu.memory_space<vmem>>, vector<1x2x256xf32>
    %9 = vector.shape_cast %8 : vector<1x2x256xf32> to vector<2x256xf32>
    %10 = vector.shape_cast %7 : vector<2x256xf32> to vector<1x2x256xf32>
    tpu.vector_store %arg12[%c0_6, %c0_7, %c0_8], %10 {strides = array<i32>} : memref<8x2x256xf32, #tpu.memory_space<vmem>>, vector<1x2x256xf32>,
    %c1 = arith.constant 1 : index
    %c0_9 = arith.constant 0 : index
    %c0_10 = arith.constant 0 : index
    %11 = vector.load %arg0[%c1, %c0_9, %c0_10] : memref<8x2x50xbf16, #tpu.memory_space<vmem>>, vector<1x2x50xbf16>
    %12 = vector.shape_cast %11 : vector<1x2x50xbf16> to vector<2x50xbf16>
    %cst_11 = arith.constant dense<0.000000e+00> : vector<2x256xf32>
    %13 = tpu.matmul %12, %0, %cst_11 {dimension_numbers = #tpu.dot_dimension_numbers<[1], [0], [0], [1], [0, 0, 1, 1], [], []>} : vector<2x50xbf16>, vector<50x256xbf16>, vector<2x256xf32> -> vector<2x256xf32>
    %14 = arith.addf %13, %3 : vector<2x256xf32>
    %c1_12 = arith.constant 1 : index
    %c0_13 = arith.constant 0 : index
    %c0_14 = arith.constant 0 : index
    %15 = vector.load %arg12[%c1_12, %c0_13, %c0_14] : memref<8x2x256xf32, #tpu.memory_space<vmem>>, vector<1x2x256xf32>
    %16 = vector.shape_cast %15 : vector<1x2x256xf32> to vector<2x256xf32>
    %17 = vector.shape_cast %14 : vector<2x256xf32> to vector<1x2x256xf32>
    tpu.vector_store %arg12[%c1_12, %c0_13, %c0_14], %17 {strides = array<i32>} : memref<8x2x256xf32, #tpu.memory_space<vmem>>, vector<1x2x256xf32>,
    %c2 = arith.constant 2 : index
    %c0_15 = arith.constant 0 : index
    %c0_16 = arith.constant 0 : index
    %18 = vector.load %arg0[%c2, %c0_15, %c0_16] : memref<8x2x50xbf16, #tpu.memory_space<vmem>>, vector<1x2x50xbf16>
    %19 = vector.shape_cast %18 : vector<1x2x50xbf16> to vector<2x50xbf16>
    %cst_17 = arith.constant dense<0.000000e+00> : vector<2x256xf32>
    %20 = tpu.matmul %19, %0, %cst_17 {dimension_numbers = #tpu.dot_dimension_numbers<[1], [0], [0], [1], [0, 0, 1, 1], [], []>} : vector<2x50xbf16>, vector<50x256xbf16>, vector<2x256xf32> -> vector<2x256xf32>
    %21 = arith.addf %20, %3 : vector<2x256xf32>
    %c2_18 = arith.constant 2 : index
    %c0_19 = arith.constant 0 : index
    %c0_20 = arith.constant 0 : index
    %22 = vector.load %arg12[%c2_18, %c0_19, %c0_20] : memref<8x2x256xf32, #tpu.memory_space<vmem>>, vector<1x2x256xf32>
    %23 = vector.shape_cast %22 : vector<1x2x256xf32> to vector<2x256xf32>
    %24 = vector.shape_cast %21 : vector<2x256xf32> to vector<1x2x256xf32>
    tpu.vector_store %arg12[%c2_18, %c0_19, %c0_20], %24 {strides = array<i32>} : memref<8x2x256xf32, #tpu.memory_space<vmem>>, vector<1x2x256xf32>,
    %c3 = arith.constant 3 : index
    %c0_21 = arith.constant 0 : index
    %c0_22 = arith.constant 0 : index
    %25 = vector.load %arg0[%c3, %c0_21, %c0_22] : memref<8x2x50xbf16, #tpu.memory_space<vmem>>, vector<1x2x50xbf16>
    %26 = vector.shape_cast %25 : vector<1x2x50xbf16> to vector<2x50xbf16>
    %cst_23 = arith.constant dense<0.000000e+00> : vector<2x256xf32>
    %27 = tpu.matmul %26, %0, %cst_23 {dimension_numbers = #tpu.dot_dimension_numbers<[1], [0], [0], [1], [0, 0, 1, 1], [], []>} : vector<2x50xbf16>, vector<50x256xbf16>, vector<2x256xf32> -> vector<2x256xf32>
    %28 = arith.addf %27, %3 : vector<2x256xf32>
    %c3_24 = arith.constant 3 : index
    %c0_25 = arith.constant 0 : index
    %c0_26 = arith.constant 0 : index
    %29 = vector.load %arg12[%c3_24, %c0_25, %c0_26] : memref<8x2x256xf32, #tpu.memory_space<vmem>>, vector<1x2x256xf32>
    %30 = vector.shape_cast %29 : vector<1x2x256xf32> to vector<2x256xf32>
    %31 = vector.shape_cast %28 : vector<2x256xf32> to vector<1x2x256xf32>
    tpu.vector_store %arg12[%c3_24, %c0_25, %c0_26], %31 {strides = array<i32>} : memref<8x2x256xf32, #tpu.memory_space<vmem>>, vector<1x2x256xf32>,
    %c4 = arith.constant 4 : index
    %c0_27 = arith.constant 0 : index
    %c0_28 = arith.constant 0 : index
    %32 = vector.load %arg0[%c4, %c0_27, %c0_28] : memref<8x2x50xbf16, #tpu.memory_space<vmem>>, vector<1x2x50xbf16>
    %33 = vector.shape_cast %32 : vector<1x2x50xbf16> to vector<2x50xbf16>
    %cst_29 = arith.constant dense<0.000000e+00> : vector<2x256xf32>
    %34 = tpu.matmul %33, %0, %cst_29 {dimension_numbers = #tpu.dot_dimension_numbers<[1], [0], [0], [1], [0, 0, 1, 1], [], []>} : vector<2x50xbf16>, vector<50x256xbf16>, vector<2x256xf32> -> vector<2x256xf32>
    %35 = arith.addf %34, %3 : vector<2x256xf32>
    %c4_30 = arith.constant 4 : index
    %c0_31 = arith.constant 0 : index
    %c0_32 = arith.constant 0 : index
    %36 = vector.load %arg12[%c4_30, %c0_31, %c0_32] : memref<8x2x256xf32, #tpu.memory_space<vmem>>, vector<1x2x256xf32>
    %37 = vector.shape_cast %36 : vector<1x2x256xf32> to vector<2x256xf32>
    %38 = vector.shape_cast %35 : vector<2x256xf32> to vector<1x2x256xf32>
    tpu.vector_store %arg12[%c4_30, %c0_31, %c0_32], %38 {strides = array<i32>} : memref<8x2x256xf32, #tpu.memory_space<vmem>>, vector<1x2x256xf32>,
    %c5 = arith.constant 5 : index
    %c0_33 = arith.constant 0 : index
    %c0_34 = arith.constant 0 : index
    %39 = vector.load %arg0[%c5, %c0_33, %c0_34] : memref<8x2x50xbf16, #tpu.memory_space<vmem>>, vector<1x2x50xbf16>
    %40 = vector.shape_cast %39 : vector<1x2x50xbf16> to vector<2x50xbf16>
    %cst_35 = arith.constant dense<0.000000e+00> : vector<2x256xf32>
    %41 = tpu.matmul %40, %0, %cst_35 {dimension_numbers = #tpu.dot_dimension_numbers<[1], [0], [0], [1], [0, 0, 1, 1], [], []>} : vector<2x50xbf16>, vector<50x256xbf16>, vector<2x256xf32> -> vector<2x256xf32>
    %42 = arith.addf %41, %3 : vector<2x256xf32>
    %c5_36 = arith.constant 5 : index
    %c0_37 = arith.constant 0 : index
    %c0_38 = arith.constant 0 : index
    %43 = vector.load %arg12[%c5_36, %c0_37, %c0_38] : memref<8x2x256xf32, #tpu.memory_space<vmem>>, vector<1x2x256xf32>
    %44 = vector.shape_cast %43 : vector<1x2x256xf32> to vector<2x256xf32>
    %45 = vector.shape_cast %42 : vector<2x256xf32> to vector<1x2x256xf32>
    tpu.vector_store %arg12[%c5_36, %c0_37, %c0_38], %45 {strides = array<i32>} : memref<8x2x256xf32, #tpu.memory_space<vmem>>, vector<1x2x256xf32>,
    %c6 = arith.constant 6 : index
    %c0_39 = arith.constant 0 : index
    %c0_40 = arith.constant 0 : index
    %46 = vector.load %arg0[%c6, %c0_39, %c0_40] : memref<8x2x50xbf16, #tpu.memory_space<vmem>>, vector<1x2x50xbf16>
    %47 = vector.shape_cast %46 : vector<1x2x50xbf16> to vector<2x50xbf16>
    %cst_41 = arith.constant dense<0.000000e+00> : vector<2x256xf32>
    %48 = tpu.matmul %47, %0, %cst_41 {dimension_numbers = #tpu.dot_dimension_numbers<[1], [0], [0], [1], [0, 0, 1, 1], [], []>} : vector<2x50xbf16>, vector<50x256xbf16>, vector<2x256xf32> -> vector<2x256xf32>
    %49 = arith.addf %48, %3 : vector<2x256xf32>
    %c6_42 = arith.constant 6 : index
    %c0_43 = arith.constant 0 : index
    %c0_44 = arith.constant 0 : index
    %50 = vector.load %arg12[%c6_42, %c0_43, %c0_44] : memref<8x2x256xf32, #tpu.memory_space<vmem>>, vector<1x2x256xf32>
    %51 = vector.shape_cast %50 : vector<1x2x256xf32> to vector<2x256xf32>
    %52 = vector.shape_cast %49 : vector<2x256xf32> to vector<1x2x256xf32>
    tpu.vector_store %arg12[%c6_42, %c0_43, %c0_44], %52 {strides = array<i32>} : memref<8x2x256xf32, #tpu.memory_space<vmem>>, vector<1x2x256xf32>,
    %c7 = arith.constant 7 : index
    %c0_45 = arith.constant 0 : index
    %c0_46 = arith.constant 0 : index
    %53 = vector.load %arg0[%c7, %c0_45, %c0_46] : memref<8x2x50xbf16, #tpu.memory_space<vmem>>, vector<1x2x50xbf16>
    %54 = vector.shape_cast %53 : vector<1x2x50xbf16> to vector<2x50xbf16>
    %cst_47 = arith.constant dense<0.000000e+00> : vector<2x256xf32>
    %55 = tpu.matmul %54, %0, %cst_47 {dimension_numbers = #tpu.dot_dimension_numbers<[1], [0], [0], [1], [0, 0, 1, 1], [], []>} : vector<2x50xbf16>, vector<50x256xbf16>, vector<2x256xf32> -> vector<2x256xf32>
    %56 = arith.addf %55, %3 : vector<2x256xf32>
    %c7_48 = arith.constant 7 : index
    %c0_49 = arith.constant 0 : index
    %c0_50 = arith.constant 0 : index
    %57 = vector.load %arg12[%c7_48, %c0_49, %c0_50] : memref<8x2x256xf32, #tpu.memory_space<vmem>>, vector<1x2x256xf32>
    %58 = vector.shape_cast %57 : vector<1x2x256xf32> to vector<2x256xf32>
    %59 = vector.shape_cast %56 : vector<2x256xf32> to vector<1x2x256xf32>
    tpu.vector_store %arg12[%c7_48, %c0_49, %c0_50], %59 {strides = array<i32>} : memref<8x2x256xf32, #tpu.memory_space<vmem>>, vector<1x2x256xf32>,
    %c0_51 = arith.constant 0 : index
    %c0_52 = arith.constant 0 : index
    %60 = vector.load %arg2[%c0_51, %c0_52] : memref<32x128xbf16, #tpu.memory_space<vmem>>, vector<32x128xbf16>
    %c0_53 = arith.constant 0 : index
    %c0_54 = arith.constant 0 : index
    %61 = vector.load %arg3[%c0_53, %c0_54] : memref<32x128xbf16, #tpu.memory_space<vmem>>, vector<32x128xbf16>
    %cst_55 = arith.constant 0.000000e+00 : f32
    %62 = vector.broadcast %cst_55 : f32 to vector<2x32xf32>
    %c0_56 = arith.constant 0 : index
    %c0_57 = arith.constant 0 : index
    %c0_58 = arith.constant 0 : index
    %63 = vector.load %arg12[%c0_56, %c0_57, %c0_58] : memref<8x2x256xf32, #tpu.memory_space<vmem>>, vector<1x2x128xf32>
    %64 = vector.shape_cast %63 : vector<1x2x128xf32> to vector<2x128xf32>
    %65 = arith.truncf %62 : vector<2x32xf32> to vector<2x32xbf16>
    %cst_59 = arith.constant dense<0.000000e+00> : vector<2x128xf32>
    %66 = tpu.matmul %65, %60, %cst_59 {dimension_numbers = #tpu.dot_dimension_numbers<[1], [0], [0], [1], [0, 0, 1, 1], [], []>} : vector<2x32xbf16>, vector<32x128xbf16>, vector<2x128xf32> -> vector<2x128xf32>
    %67 = arith.addf %64, %66 : vector<2x128xf32>
    %68 = vector.extract_strided_slice %67 {offsets = [0, 0], sizes = [2, 96], strides = [1, 1]} : vector<2x128xf32> to vector<2x96xf32>
    %69 = arith.negf %68 : vector<2x96xf32>
    %70 = math.exp %69 : vector<2x96xf32>
    %cst_60 = arith.constant 1.000000e+00 : f32
    %71 = vector.broadcast %cst_60 : f32 to vector<2x96xf32>
    %72 = arith.addf %71, %70 : vector<2x96xf32>
    %73 = arith.divf %71, %72 : vector<2x96xf32>
    %74 = vector.extract_strided_slice %67 {offsets = [0, 96], sizes = [2, 32], strides = [1, 1]} : vector<2x128xf32> to vector<2x32xf32>
    %75 = math.tanh %74 : vector<2x32xf32>
    %76 = vector.extract_strided_slice %73 {offsets = [0, 0], sizes = [2, 32], strides = [1, 1]} : vector<2x96xf32> to vector<2x32xf32>
    %77 = vector.extract_strided_slice %73 {offsets = [0, 32], sizes = [2, 32], strides = [1, 1]} : vector<2x96xf32> to vector<2x32xf32>
    %78 = vector.extract_strided_slice %73 {offsets = [0, 64], sizes = [2, 32], strides = [1, 1]} : vector<2x96xf32> to vector<2x32xf32>
    %79 = arith.mulf %77, %62 : vector<2x32xf32>
    %80 = arith.mulf %76, %75 : vector<2x32xf32>
    %81 = arith.addf %79, %80 : vector<2x32xf32>
    %82 = math.tanh %81 : vector<2x32xf32>
    %83 = arith.mulf %78, %82 : vector<2x32xf32>
    %c7_61 = arith.constant 7 : index
    %c0_62 = arith.constant 0 : index
    %c128 = arith.constant 128 : index
    %84 = vector.load %arg12[%c7_61, %c0_62, %c128] : memref<8x2x256xf32, #tpu.memory_space<vmem>>, vector<1x2x128xf32>
    %85 = vector.shape_cast %84 : vector<1x2x128xf32> to vector<2x128xf32>
    %86 = arith.truncf %62 : vector<2x32xf32> to vector<2x32xbf16>
    %cst_63 = arith.constant dense<0.000000e+00> : vector<2x128xf32>
    %87 = tpu.matmul %86, %61, %cst_63 {dimension_numbers = #tpu.dot_dimension_numbers<[1], [0], [0], [1], [0, 0, 1, 1], [], []>} : vector<2x32xbf16>, vector<32x128xbf16>, vector<2x128xf32> -> vector<2x128xf32>
    %88 = arith.addf %85, %87 : vector<2x128xf32>
    %89 = vector.extract_strided_slice %88 {offsets = [0, 0], sizes = [2, 96], strides = [1, 1]} : vector<2x128xf32> to vector<2x96xf32>
    %90 = arith.negf %89 : vector<2x96xf32>
    %91 = math.exp %90 : vector<2x96xf32>
    %cst_64 = arith.constant 1.000000e+00 : f32
    %92 = vector.broadcast %cst_64 : f32 to vector<2x96xf32>
    %93 = arith.addf %92, %91 : vector<2x96xf32>
    %94 = arith.divf %92, %93 : vector<2x96xf32>
    %95 = vector.extract_strided_slice %88 {offsets = [0, 96], sizes = [2, 32], strides = [1, 1]} : vector<2x128xf32> to vector<2x32xf32>
    %96 = math.tanh %95 : vector<2x32xf32>
    %97 = vector.extract_strided_slice %94 {offsets = [0, 0], sizes = [2, 32], strides = [1, 1]} : vector<2x96xf32> to vector<2x32xf32>
    %98 = vector.extract_strided_slice %94 {offsets = [0, 32], sizes = [2, 32], strides = [1, 1]} : vector<2x96xf32> to vector<2x32xf32>
    %99 = vector.extract_strided_slice %94 {offsets = [0, 64], sizes = [2, 32], strides = [1, 1]} : vector<2x96xf32> to vector<2x32xf32>
    %100 = arith.mulf %98, %62 : vector<2x32xf32>
    %101 = arith.mulf %97, %96 : vector<2x32xf32>
    %102 = arith.addf %100, %101 : vector<2x32xf32>
    %103 = math.tanh %102 : vector<2x32xf32>
    %104 = arith.mulf %99, %103 : vector<2x32xf32>
    %105 = arith.truncf %83 : vector<2x32xf32> to vector<2x32xbf16>
    %c0_65 = arith.constant 0 : index
    %c0_66 = arith.constant 0 : index
    %c0_67 = arith.constant 0 : index
    %106 = vector.load %arg13[%c0_65, %c0_66, %c0_67] : memref<8x2x32xbf16, #tpu.memory_space<vmem>>, vector<1x2x32xbf16>
    %107 = vector.shape_cast %106 : vector<1x2x32xbf16> to vector<2x32xbf16>
    %108 = vector.shape_cast %105 : vector<2x32xbf16> to vector<1x2x32xbf16>
    tpu.vector_store %arg13[%c0_65, %c0_66, %c0_67], %108 {strides = array<i32>} : memref<8x2x32xbf16, #tpu.memory_space<vmem>>, vector<1x2x32xbf16>,
    %109 = arith.truncf %104 : vector<2x32xf32> to vector<2x32xbf16>
    %c7_68 = arith.constant 7 : index
    %c0_69 = arith.constant 0 : index
    %c0_70 = arith.constant 0 : index
    %110 = vector.load %arg14[%c7_68, %c0_69, %c0_70] : memref<8x2x32xbf16, #tpu.memory_space<vmem>>, vector<1x2x32xbf16>
    %111 = vector.shape_cast %110 : vector<1x2x32xbf16> to vector<2x32xbf16>
    %112 = vector.shape_cast %109 : vector<2x32xbf16> to vector<1x2x32xbf16>
    tpu.vector_store %arg14[%c7_68, %c0_69, %c0_70], %112 {strides = array<i32>} : memref<8x2x32xbf16, #tpu.memory_space<vmem>>, vector<1x2x32xbf16>,
    %c1_71 = arith.constant 1 : index
    %c0_72 = arith.constant 0 : index
    %c0_73 = arith.constant 0 : index
    %113 = vector.load %arg12[%c1_71, %c0_72, %c0_73] : memref<8x2x256xf32, #tpu.memory_space<vmem>>, vector<1x2x128xf32>
    %114 = vector.shape_cast %113 : vector<1x2x128xf32> to vector<2x128xf32>
    %115 = arith.truncf %83 : vector<2x32xf32> to vector<2x32xbf16>
    %cst_74 = arith.constant dense<0.000000e+00> : vector<2x128xf32>
    %116 = tpu.matmul %115, %60, %cst_74 {dimension_numbers = #tpu.dot_dimension_numbers<[1], [0], [0], [1], [0, 0, 1, 1], [], []>} : vector<2x32xbf16>, vector<32x128xbf16>, vector<2x128xf32> -> vector<2x128xf32>
    %117 = arith.addf %114, %116 : vector<2x128xf32>
    %118 = vector.extract_strided_slice %117 {offsets = [0, 0], sizes = [2, 96], strides = [1, 1]} : vector<2x128xf32> to vector<2x96xf32>
    %119 = arith.negf %118 : vector<2x96xf32>
    %120 = math.exp %119 : vector<2x96xf32>
    %cst_75 = arith.constant 1.000000e+00 : f32
    %121 = vector.broadcast %cst_75 : f32 to vector<2x96xf32>
    %122 = arith.addf %121, %120 : vector<2x96xf32>
    %123 = arith.divf %121, %122 : vector<2x96xf32>
    %124 = vector.extract_strided_slice %117 {offsets = [0, 96], sizes = [2, 32], strides = [1, 1]} : vector<2x128xf32> to vector<2x32xf32>
    %125 = math.tanh %124 : vector<2x32xf32>
    %126 = vector.extract_strided_slice %123 {offsets = [0, 0], sizes = [2, 32], strides = [1, 1]} : vector<2x96xf32> to vector<2x32xf32>
    %127 = vector.extract_strided_slice %123 {offsets = [0, 32], sizes = [2, 32], strides = [1, 1]} : vector<2x96xf32> to vector<2x32xf32>
    %128 = vector.extract_strided_slice %123 {offsets = [0, 64], sizes = [2, 32], strides = [1, 1]} : vector<2x96xf32> to vector<2x32xf32>
    %129 = arith.mulf %127, %81 : vector<2x32xf32>
    %130 = arith.mulf %126, %125 : vector<2x32xf32>
    %131 = arith.addf %129, %130 : vector<2x32xf32>
    %132 = math.tanh %131 : vector<2x32xf32>
    %133 = arith.mulf %128, %132 : vector<2x32xf32>
    %c6_76 = arith.constant 6 : index
    %c0_77 = arith.constant 0 : index
    %c128_78 = arith.constant 128 : index
    %134 = vector.load %arg12[%c6_76, %c0_77, %c128_78] : memref<8x2x256xf32, #tpu.memory_space<vmem>>, vector<1x2x128xf32>
    %135 = vector.shape_cast %134 : vector<1x2x128xf32> to vector<2x128xf32>
    %136 = arith.truncf %104 : vector<2x32xf32> to vector<2x32xbf16>
    %cst_79 = arith.constant dense<0.000000e+00> : vector<2x128xf32>
    %137 = tpu.matmul %136, %61, %cst_79 {dimension_numbers = #tpu.dot_dimension_numbers<[1], [0], [0], [1], [0, 0, 1, 1], [], []>} : vector<2x32xbf16>, vector<32x128xbf16>, vector<2x128xf32> -> vector<2x128xf32>
    %138 = arith.addf %135, %137 : vector<2x128xf32>
    %139 = vector.extract_strided_slice %138 {offsets = [0, 0], sizes = [2, 96], strides = [1, 1]} : vector<2x128xf32> to vector<2x96xf32>
    %140 = arith.negf %139 : vector<2x96xf32>
    %141 = math.exp %140 : vector<2x96xf32>
    %cst_80 = arith.constant 1.000000e+00 : f32
    %142 = vector.broadcast %cst_80 : f32 to vector<2x96xf32>
    %143 = arith.addf %142, %141 : vector<2x96xf32>
    %144 = arith.divf %142, %143 : vector<2x96xf32>
    %145 = vector.extract_strided_slice %138 {offsets = [0, 96], sizes = [2, 32], strides = [1, 1]} : vector<2x128xf32> to vector<2x32xf32>
    %146 = math.tanh %145 : vector<2x32xf32>
    %147 = vector.extract_strided_slice %144 {offsets = [0, 0], sizes = [2, 32], strides = [1, 1]} : vector<2x96xf32> to vector<2x32xf32>
    %148 = vector.extract_strided_slice %144 {offsets = [0, 32], sizes = [2, 32], strides = [1, 1]} : vector<2x96xf32> to vector<2x32xf32>
    %149 = vector.extract_strided_slice %144 {offsets = [0, 64], sizes = [2, 32], strides = [1, 1]} : vector<2x96xf32> to vector<2x32xf32>
    %150 = arith.mulf %148, %102 : vector<2x32xf32>
    %151 = arith.mulf %147, %146 : vector<2x32xf32>
    %152 = arith.addf %150, %151 : vector<2x32xf32>
    %153 = math.tanh %152 : vector<2x32xf32>
    %154 = arith.mulf %149, %153 : vector<2x32xf32>
    %155 = arith.truncf %133 : vector<2x32xf32> to vector<2x32xbf16>
    %c1_81 = arith.constant 1 : index
    %c0_82 = arith.constant 0 : index
    %c0_83 = arith.constant 0 : index
    %156 = vector.load %arg13[%c1_81, %c0_82, %c0_83] : memref<8x2x32xbf16, #tpu.memory_space<vmem>>, vector<1x2x32xbf16>
    %157 = vector.shape_cast %156 : vector<1x2x32xbf16> to vector<2x32xbf16>
    %158 = vector.shape_cast %155 : vector<2x32xbf16> to vector<1x2x32xbf16>
    tpu.vector_store %arg13[%c1_81, %c0_82, %c0_83], %158 {strides = array<i32>} : memref<8x2x32xbf16, #tpu.memory_space<vmem>>, vector<1x2x32xbf16>,
    %159 = arith.truncf %154 : vector<2x32xf32> to vector<2x32xbf16>
    %c6_84 = arith.constant 6 : index
    %c0_85 = arith.constant 0 : index
    %c0_86 = arith.constant 0 : index
    %160 = vector.load %arg14[%c6_84, %c0_85, %c0_86] : memref<8x2x32xbf16, #tpu.memory_space<vmem>>, vector<1x2x32xbf16>
    %161 = vector.shape_cast %160 : vector<1x2x32xbf16> to vector<2x32xbf16>
    %162 = vector.shape_cast %159 : vector<2x32xbf16> to vector<1x2x32xbf16>
    tpu.vector_store %arg14[%c6_84, %c0_85, %c0_86], %162 {strides = array<i32>} : memref<8x2x32xbf16, #tpu.memory_space<vmem>>, vector<1x2x32xbf16>,
    %c2_87 = arith.constant 2 : index
    %c0_88 = arith.constant 0 : index
    %c0_89 = arith.constant 0 : index
    %163 = vector.load %arg12[%c2_87, %c0_88, %c0_89] : memref<8x2x256xf32, #tpu.memory_space<vmem>>, vector<1x2x128xf32>
    %164 = vector.shape_cast %163 : vector<1x2x128xf32> to vector<2x128xf32>
    %165 = arith.truncf %133 : vector<2x32xf32> to vector<2x32xbf16>
    %cst_90 = arith.constant dense<0.000000e+00> : vector<2x128xf32>
    %166 = tpu.matmul %165, %60, %cst_90 {dimension_numbers = #tpu.dot_dimension_numbers<[1], [0], [0], [1], [0, 0, 1, 1], [], []>} : vector<2x32xbf16>, vector<32x128xbf16>, vector<2x128xf32> -> vector<2x128xf32>
    %167 = arith.addf %164, %166 : vector<2x128xf32>
    %168 = vector.extract_strided_slice %167 {offsets = [0, 0], sizes = [2, 96], strides = [1, 1]} : vector<2x128xf32> to vector<2x96xf32>
    %169 = arith.negf %168 : vector<2x96xf32>
    %170 = math.exp %169 : vector<2x96xf32>
    %cst_91 = arith.constant 1.000000e+00 : f32
    %171 = vector.broadcast %cst_91 : f32 to vector<2x96xf32>
    %172 = arith.addf %171, %170 : vector<2x96xf32>
    %173 = arith.divf %171, %172 : vector<2x96xf32>
    %174 = vector.extract_strided_slice %167 {offsets = [0, 96], sizes = [2, 32], strides = [1, 1]} : vector<2x128xf32> to vector<2x32xf32>
    %175 = math.tanh %174 : vector<2x32xf32>
    %176 = vector.extract_strided_slice %173 {offsets = [0, 0], sizes = [2, 32], strides = [1, 1]} : vector<2x96xf32> to vector<2x32xf32>
    %177 = vector.extract_strided_slice %173 {offsets = [0, 32], sizes = [2, 32], strides = [1, 1]} : vector<2x96xf32> to vector<2x32xf32>
    %178 = vector.extract_strided_slice %173 {offsets = [0, 64], sizes = [2, 32], strides = [1, 1]} : vector<2x96xf32> to vector<2x32xf32>
    %179 = arith.mulf %177, %131 : vector<2x32xf32>
    %180 = arith.mulf %176, %175 : vector<2x32xf32>
    %181 = arith.addf %179, %180 : vector<2x32xf32>
    %182 = math.tanh %181 : vector<2x32xf32>
    %183 = arith.mulf %178, %182 : vector<2x32xf32>
    %c5_92 = arith.constant 5 : index
    %c0_93 = arith.constant 0 : index
    %c128_94 = arith.constant 128 : index
    %184 = vector.load %arg12[%c5_92, %c0_93, %c128_94] : memref<8x2x256xf32, #tpu.memory_space<vmem>>, vector<1x2x128xf32>
    %185 = vector.shape_cast %184 : vector<1x2x128xf32> to vector<2x128xf32>
    %186 = arith.truncf %154 : vector<2x32xf32> to vector<2x32xbf16>
    %cst_95 = arith.constant dense<0.000000e+00> : vector<2x128xf32>
    %187 = tpu.matmul %186, %61, %cst_95 {dimension_numbers = #tpu.dot_dimension_numbers<[1], [0], [0], [1], [0, 0, 1, 1], [], []>} : vector<2x32xbf16>, vector<32x128xbf16>, vector<2x128xf32> -> vector<2x128xf32>
    %188 = arith.addf %185, %187 : vector<2x128xf32>
    %189 = vector.extract_strided_slice %188 {offsets = [0, 0], sizes = [2, 96], strides = [1, 1]} : vector<2x128xf32> to vector<2x96xf32>
    %190 = arith.negf %189 : vector<2x96xf32>
    %191 = math.exp %190 : vector<2x96xf32>
    %cst_96 = arith.constant 1.000000e+00 : f32
    %192 = vector.broadcast %cst_96 : f32 to vector<2x96xf32>
    %193 = arith.addf %192, %191 : vector<2x96xf32>
    %194 = arith.divf %192, %193 : vector<2x96xf32>
    %195 = vector.extract_strided_slice %188 {offsets = [0, 96], sizes = [2, 32], strides = [1, 1]} : vector<2x128xf32> to vector<2x32xf32>
    %196 = math.tanh %195 : vector<2x32xf32>
    %197 = vector.extract_strided_slice %194 {offsets = [0, 0], sizes = [2, 32], strides = [1, 1]} : vector<2x96xf32> to vector<2x32xf32>
    %198 = vector.extract_strided_slice %194 {offsets = [0, 32], sizes = [2, 32], strides = [1, 1]} : vector<2x96xf32> to vector<2x32xf32>
    %199 = vector.extract_strided_slice %194 {offsets = [0, 64], sizes = [2, 32], strides = [1, 1]} : vector<2x96xf32> to vector<2x32xf32>
    %200 = arith.mulf %198, %152 : vector<2x32xf32>
    %201 = arith.mulf %197, %196 : vector<2x32xf32>
    %202 = arith.addf %200, %201 : vector<2x32xf32>
    %203 = math.tanh %202 : vector<2x32xf32>
    %204 = arith.mulf %199, %203 : vector<2x32xf32>
    %205 = arith.truncf %183 : vector<2x32xf32> to vector<2x32xbf16>
    %c2_97 = arith.constant 2 : index
    %c0_98 = arith.constant 0 : index
    %c0_99 = arith.constant 0 : index
    %206 = vector.load %arg13[%c2_97, %c0_98, %c0_99] : memref<8x2x32xbf16, #tpu.memory_space<vmem>>, vector<1x2x32xbf16>
    %207 = vector.shape_cast %206 : vector<1x2x32xbf16> to vector<2x32xbf16>
    %208 = vector.shape_cast %205 : vector<2x32xbf16> to vector<1x2x32xbf16>
    tpu.vector_store %arg13[%c2_97, %c0_98, %c0_99], %208 {strides = array<i32>} : memref<8x2x32xbf16, #tpu.memory_space<vmem>>, vector<1x2x32xbf16>,
    %209 = arith.truncf %204 : vector<2x32xf32> to vector<2x32xbf16>
    %c5_100 = arith.constant 5 : index
    %c0_101 = arith.constant 0 : index
    %c0_102 = arith.constant 0 : index
    %210 = vector.load %arg14[%c5_100, %c0_101, %c0_102] : memref<8x2x32xbf16, #tpu.memory_space<vmem>>, vector<1x2x32xbf16>
    %211 = vector.shape_cast %210 : vector<1x2x32xbf16> to vector<2x32xbf16>
    %212 = vector.shape_cast %209 : vector<2x32xbf16> to vector<1x2x32xbf16>
    tpu.vector_store %arg14[%c5_100, %c0_101, %c0_102], %212 {strides = array<i32>} : memref<8x2x32xbf16, #tpu.memory_space<vmem>>, vector<1x2x32xbf16>,
    %c3_103 = arith.constant 3 : index
    %c0_104 = arith.constant 0 : index
    %c0_105 = arith.constant 0 : index
    %213 = vector.load %arg12[%c3_103, %c0_104, %c0_105] : memref<8x2x256xf32, #tpu.memory_space<vmem>>, vector<1x2x128xf32>
    %214 = vector.shape_cast %213 : vector<1x2x128xf32> to vector<2x128xf32>
    %215 = arith.truncf %183 : vector<2x32xf32> to vector<2x32xbf16>
    %cst_106 = arith.constant dense<0.000000e+00> : vector<2x128xf32>
    %216 = tpu.matmul %215, %60, %cst_106 {dimension_numbers = #tpu.dot_dimension_numbers<[1], [0], [0], [1], [0, 0, 1, 1], [], []>} : vector<2x32xbf16>, vector<32x128xbf16>, vector<2x128xf32> -> vector<2x128xf32>
    %217 = arith.addf %214, %216 : vector<2x128xf32>
    %218 = vector.extract_strided_slice %217 {offsets = [0, 0], sizes = [2, 96], strides = [1, 1]} : vector<2x128xf32> to vector<2x96xf32>
    %219 = arith.negf %218 : vector<2x96xf32>
    %220 = math.exp %219 : vector<2x96xf32>
    %cst_107 = arith.constant 1.000000e+00 : f32
    %221 = vector.broadcast %cst_107 : f32 to vector<2x96xf32>
    %222 = arith.addf %221, %220 : vector<2x96xf32>
    %223 = arith.divf %221, %222 : vector<2x96xf32>
    %224 = vector.extract_strided_slice %217 {offsets = [0, 96], sizes = [2, 32], strides = [1, 1]} : vector<2x128xf32> to vector<2x32xf32>
    %225 = math.tanh %224 : vector<2x32xf32>
    %226 = vector.extract_strided_slice %223 {offsets = [0, 0], sizes = [2, 32], strides = [1, 1]} : vector<2x96xf32> to vector<2x32xf32>
    %227 = vector.extract_strided_slice %223 {offsets = [0, 32], sizes = [2, 32], strides = [1, 1]} : vector<2x96xf32> to vector<2x32xf32>
    %228 = vector.extract_strided_slice %223 {offsets = [0, 64], sizes = [2, 32], strides = [1, 1]} : vector<2x96xf32> to vector<2x32xf32>
    %229 = arith.mulf %227, %181 : vector<2x32xf32>
    %230 = arith.mulf %226, %225 : vector<2x32xf32>
    %231 = arith.addf %229, %230 : vector<2x32xf32>
    %232 = math.tanh %231 : vector<2x32xf32>
    %233 = arith.mulf %228, %232 : vector<2x32xf32>
    %c4_108 = arith.constant 4 : index
    %c0_109 = arith.constant 0 : index
    %c128_110 = arith.constant 128 : index
    %234 = vector.load %arg12[%c4_108, %c0_109, %c128_110] : memref<8x2x256xf32, #tpu.memory_space<vmem>>, vector<1x2x128xf32>
    %235 = vector.shape_cast %234 : vector<1x2x128xf32> to vector<2x128xf32>
    %236 = arith.truncf %204 : vector<2x32xf32> to vector<2x32xbf16>
    %cst_111 = arith.constant dense<0.000000e+00> : vector<2x128xf32>
    %237 = tpu.matmul %236, %61, %cst_111 {dimension_numbers = #tpu.dot_dimension_numbers<[1], [0], [0], [1], [0, 0, 1, 1], [], []>} : vector<2x32xbf16>, vector<32x128xbf16>, vector<2x128xf32> -> vector<2x128xf32>
    %238 = arith.addf %235, %237 : vector<2x128xf32>
    %239 = vector.extract_strided_slice %238 {offsets = [0, 0], sizes = [2, 96], strides = [1, 1]} : vector<2x128xf32> to vector<2x96xf32>
    %240 = arith.negf %239 : vector<2x96xf32>
    %241 = math.exp %240 : vector<2x96xf32>
    %cst_112 = arith.constant 1.000000e+00 : f32
    %242 = vector.broadcast %cst_112 : f32 to vector<2x96xf32>
    %243 = arith.addf %242, %241 : vector<2x96xf32>
    %244 = arith.divf %242, %243 : vector<2x96xf32>
    %245 = vector.extract_strided_slice %238 {offsets = [0, 96], sizes = [2, 32], strides = [1, 1]} : vector<2x128xf32> to vector<2x32xf32>
    %246 = math.tanh %245 : vector<2x32xf32>
    %247 = vector.extract_strided_slice %244 {offsets = [0, 0], sizes = [2, 32], strides = [1, 1]} : vector<2x96xf32> to vector<2x32xf32>
    %248 = vector.extract_strided_slice %244 {offsets = [0, 32], sizes = [2, 32], strides = [1, 1]} : vector<2x96xf32> to vector<2x32xf32>
    %249 = vector.extract_strided_slice %244 {offsets = [0, 64], sizes = [2, 32], strides = [1, 1]} : vector<2x96xf32> to vector<2x32xf32>
    %250 = arith.mulf %248, %202 : vector<2x32xf32>
    %251 = arith.mulf %247, %246 : vector<2x32xf32>
    %252 = arith.addf %250, %251 : vector<2x32xf32>
    %253 = math.tanh %252 : vector<2x32xf32>
    %254 = arith.mulf %249, %253 : vector<2x32xf32>
    %255 = arith.truncf %233 : vector<2x32xf32> to vector<2x32xbf16>
    %c3_113 = arith.constant 3 : index
    %c0_114 = arith.constant 0 : index
    %c0_115 = arith.constant 0 : index
    %256 = vector.load %arg13[%c3_113, %c0_114, %c0_115] : memref<8x2x32xbf16, #tpu.memory_space<vmem>>, vector<1x2x32xbf16>
    %257 = vector.shape_cast %256 : vector<1x2x32xbf16> to vector<2x32xbf16>
    %258 = vector.shape_cast %255 : vector<2x32xbf16> to vector<1x2x32xbf16>
    tpu.vector_store %arg13[%c3_113, %c0_114, %c0_115], %258 {strides = array<i32>} : memref<8x2x32xbf16, #tpu.memory_space<vmem>>, vector<1x2x32xbf16>,
    %259 = arith.truncf %254 : vector<2x32xf32> to vector<2x32xbf16>
    %c4_116 = arith.constant 4 : index
    %c0_117 = arith.constant 0 : index
    %c0_118 = arith.constant 0 : index
    %260 = vector.load %arg14[%c4_116, %c0_117, %c0_118] : memref<8x2x32xbf16, #tpu.memory_space<vmem>>, vector<1x2x32xbf16>
    %261 = vector.shape_cast %260 : vector<1x2x32xbf16> to vector<2x32xbf16>
    %262 = vector.shape_cast %259 : vector<2x32xbf16> to vector<1x2x32xbf16>
    tpu.vector_store %arg14[%c4_116, %c0_117, %c0_118], %262 {strides = array<i32>} : memref<8x2x32xbf16, #tpu.memory_space<vmem>>, vector<1x2x32xbf16>,
    %c4_119 = arith.constant 4 : index
    %c0_120 = arith.constant 0 : index
    %c0_121 = arith.constant 0 : index
    %263 = vector.load %arg12[%c4_119, %c0_120, %c0_121] : memref<8x2x256xf32, #tpu.memory_space<vmem>>, vector<1x2x128xf32>
    %264 = vector.shape_cast %263 : vector<1x2x128xf32> to vector<2x128xf32>
    %265 = arith.truncf %233 : vector<2x32xf32> to vector<2x32xbf16>
    %cst_122 = arith.constant dense<0.000000e+00> : vector<2x128xf32>
    %266 = tpu.matmul %265, %60, %cst_122 {dimension_numbers = #tpu.dot_dimension_numbers<[1], [0], [0], [1], [0, 0, 1, 1], [], []>} : vector<2x32xbf16>, vector<32x128xbf16>, vector<2x128xf32> -> vector<2x128xf32>
    %267 = arith.addf %264, %266 : vector<2x128xf32>
    %268 = vector.extract_strided_slice %267 {offsets = [0, 0], sizes = [2, 96], strides = [1, 1]} : vector<2x128xf32> to vector<2x96xf32>
    %269 = arith.negf %268 : vector<2x96xf32>
    %270 = math.exp %269 : vector<2x96xf32>
    %cst_123 = arith.constant 1.000000e+00 : f32
    %271 = vector.broadcast %cst_123 : f32 to vector<2x96xf32>
    %272 = arith.addf %271, %270 : vector<2x96xf32>
    %273 = arith.divf %271, %272 : vector<2x96xf32>
    %274 = vector.extract_strided_slice %267 {offsets = [0, 96], sizes = [2, 32], strides = [1, 1]} : vector<2x128xf32> to vector<2x32xf32>
    %275 = math.tanh %274 : vector<2x32xf32>
    %276 = vector.extract_strided_slice %273 {offsets = [0, 0], sizes = [2, 32], strides = [1, 1]} : vector<2x96xf32> to vector<2x32xf32>
    %277 = vector.extract_strided_slice %273 {offsets = [0, 32], sizes = [2, 32], strides = [1, 1]} : vector<2x96xf32> to vector<2x32xf32>
    %278 = vector.extract_strided_slice %273 {offsets = [0, 64], sizes = [2, 32], strides = [1, 1]} : vector<2x96xf32> to vector<2x32xf32>
    %279 = arith.mulf %277, %231 : vector<2x32xf32>
    %280 = arith.mulf %276, %275 : vector<2x32xf32>
    %281 = arith.addf %279, %280 : vector<2x32xf32>
    %282 = math.tanh %281 : vector<2x32xf32>
    %283 = arith.mulf %278, %282 : vector<2x32xf32>
    %c3_124 = arith.constant 3 : index
    %c0_125 = arith.constant 0 : index
    %c128_126 = arith.constant 128 : index
    %284 = vector.load %arg12[%c3_124, %c0_125, %c128_126] : memref<8x2x256xf32, #tpu.memory_space<vmem>>, vector<1x2x128xf32>
    %285 = vector.shape_cast %284 : vector<1x2x128xf32> to vector<2x128xf32>
    %286 = arith.truncf %254 : vector<2x32xf32> to vector<2x32xbf16>
    %cst_127 = arith.constant dense<0.000000e+00> : vector<2x128xf32>
    %287 = tpu.matmul %286, %61, %cst_127 {dimension_numbers = #tpu.dot_dimension_numbers<[1], [0], [0], [1], [0, 0, 1, 1], [], []>} : vector<2x32xbf16>, vector<32x128xbf16>, vector<2x128xf32> -> vector<2x128xf32>
    %288 = arith.addf %285, %287 : vector<2x128xf32>
    %289 = vector.extract_strided_slice %288 {offsets = [0, 0], sizes = [2, 96], strides = [1, 1]} : vector<2x128xf32> to vector<2x96xf32>
    %290 = arith.negf %289 : vector<2x96xf32>
    %291 = math.exp %290 : vector<2x96xf32>
    %cst_128 = arith.constant 1.000000e+00 : f32
    %292 = vector.broadcast %cst_128 : f32 to vector<2x96xf32>
    %293 = arith.addf %292, %291 : vector<2x96xf32>
    %294 = arith.divf %292, %293 : vector<2x96xf32>
    %295 = vector.extract_strided_slice %288 {offsets = [0, 96], sizes = [2, 32], strides = [1, 1]} : vector<2x128xf32> to vector<2x32xf32>
    %296 = math.tanh %295 : vector<2x32xf32>
    %297 = vector.extract_strided_slice %294 {offsets = [0, 0], sizes = [2, 32], strides = [1, 1]} : vector<2x96xf32> to vector<2x32xf32>
    %298 = vector.extract_strided_slice %294 {offsets = [0, 32], sizes = [2, 32], strides = [1, 1]} : vector<2x96xf32> to vector<2x32xf32>
    %299 = vector.extract_strided_slice %294 {offsets = [0, 64], sizes = [2, 32], strides = [1, 1]} : vector<2x96xf32> to vector<2x32xf32>
    %300 = arith.mulf %298, %252 : vector<2x32xf32>
    %301 = arith.mulf %297, %296 : vector<2x32xf32>
    %302 = arith.addf %300, %301 : vector<2x32xf32>
    %303 = math.tanh %302 : vector<2x32xf32>
    %304 = arith.mulf %299, %303 : vector<2x32xf32>
    %305 = arith.truncf %283 : vector<2x32xf32> to vector<2x32xbf16>
    %c4_129 = arith.constant 4 : index
    %c0_130 = arith.constant 0 : index
    %c0_131 = arith.constant 0 : index
    %306 = vector.load %arg13[%c4_129, %c0_130, %c0_131] : memref<8x2x32xbf16, #tpu.memory_space<vmem>>, vector<1x2x32xbf16>
    %307 = vector.shape_cast %306 : vector<1x2x32xbf16> to vector<2x32xbf16>
    %308 = vector.shape_cast %305 : vector<2x32xbf16> to vector<1x2x32xbf16>
    tpu.vector_store %arg13[%c4_129, %c0_130, %c0_131], %308 {strides = array<i32>} : memref<8x2x32xbf16, #tpu.memory_space<vmem>>, vector<1x2x32xbf16>,
    %309 = arith.truncf %304 : vector<2x32xf32> to vector<2x32xbf16>
    %c3_132 = arith.constant 3 : index
    %c0_133 = arith.constant 0 : index
    %c0_134 = arith.constant 0 : index
    %310 = vector.load %arg14[%c3_132, %c0_133, %c0_134] : memref<8x2x32xbf16, #tpu.memory_space<vmem>>, vector<1x2x32xbf16>
    %311 = vector.shape_cast %310 : vector<1x2x32xbf16> to vector<2x32xbf16>
    %312 = vector.shape_cast %309 : vector<2x32xbf16> to vector<1x2x32xbf16>
    tpu.vector_store %arg14[%c3_132, %c0_133, %c0_134], %312 {strides = array<i32>} : memref<8x2x32xbf16, #tpu.memory_space<vmem>>, vector<1x2x32xbf16>,
    %c5_135 = arith.constant 5 : index
    %c0_136 = arith.constant 0 : index
    %c0_137 = arith.constant 0 : index
    %313 = vector.load %arg12[%c5_135, %c0_136, %c0_137] : memref<8x2x256xf32, #tpu.memory_space<vmem>>, vector<1x2x128xf32>
    %314 = vector.shape_cast %313 : vector<1x2x128xf32> to vector<2x128xf32>
    %315 = arith.truncf %283 : vector<2x32xf32> to vector<2x32xbf16>
    %cst_138 = arith.constant dense<0.000000e+00> : vector<2x128xf32>
    %316 = tpu.matmul %315, %60, %cst_138 {dimension_numbers = #tpu.dot_dimension_numbers<[1], [0], [0], [1], [0, 0, 1, 1], [], []>} : vector<2x32xbf16>, vector<32x128xbf16>, vector<2x128xf32> -> vector<2x128xf32>
    %317 = arith.addf %314, %316 : vector<2x128xf32>
    %318 = vector.extract_strided_slice %317 {offsets = [0, 0], sizes = [2, 96], strides = [1, 1]} : vector<2x128xf32> to vector<2x96xf32>
    %319 = arith.negf %318 : vector<2x96xf32>
    %320 = math.exp %319 : vector<2x96xf32>
    %cst_139 = arith.constant 1.000000e+00 : f32
    %321 = vector.broadcast %cst_139 : f32 to vector<2x96xf32>
    %322 = arith.addf %321, %320 : vector<2x96xf32>
    %323 = arith.divf %321, %322 : vector<2x96xf32>
    %324 = vector.extract_strided_slice %317 {offsets = [0, 96], sizes = [2, 32], strides = [1, 1]} : vector<2x128xf32> to vector<2x32xf32>
    %325 = math.tanh %324 : vector<2x32xf32>
    %326 = vector.extract_strided_slice %323 {offsets = [0, 0], sizes = [2, 32], strides = [1, 1]} : vector<2x96xf32> to vector<2x32xf32>
    %327 = vector.extract_strided_slice %323 {offsets = [0, 32], sizes = [2, 32], strides = [1, 1]} : vector<2x96xf32> to vector<2x32xf32>
    %328 = vector.extract_strided_slice %323 {offsets = [0, 64], sizes = [2, 32], strides = [1, 1]} : vector<2x96xf32> to vector<2x32xf32>
    %329 = arith.mulf %327, %281 : vector<2x32xf32>
    %330 = arith.mulf %326, %325 : vector<2x32xf32>
    %331 = arith.addf %329, %330 : vector<2x32xf32>
    %332 = math.tanh %331 : vector<2x32xf32>
    %333 = arith.mulf %328, %332 : vector<2x32xf32>
    %c2_140 = arith.constant 2 : index
    %c0_141 = arith.constant 0 : index
    %c128_142 = arith.constant 128 : index
    %334 = vector.load %arg12[%c2_140, %c0_141, %c128_142] : memref<8x2x256xf32, #tpu.memory_space<vmem>>, vector<1x2x128xf32>
    %335 = vector.shape_cast %334 : vector<1x2x128xf32> to vector<2x128xf32>
    %336 = arith.truncf %304 : vector<2x32xf32> to vector<2x32xbf16>
    %cst_143 = arith.constant dense<0.000000e+00> : vector<2x128xf32>
    %337 = tpu.matmul %336, %61, %cst_143 {dimension_numbers = #tpu.dot_dimension_numbers<[1], [0], [0], [1], [0, 0, 1, 1], [], []>} : vector<2x32xbf16>, vector<32x128xbf16>, vector<2x128xf32> -> vector<2x128xf32>
    %338 = arith.addf %335, %337 : vector<2x128xf32>
    %339 = vector.extract_strided_slice %338 {offsets = [0, 0], sizes = [2, 96], strides = [1, 1]} : vector<2x128xf32> to vector<2x96xf32>
    %340 = arith.negf %339 : vector<2x96xf32>
    %341 = math.exp %340 : vector<2x96xf32>
    %cst_144 = arith.constant 1.000000e+00 : f32
    %342 = vector.broadcast %cst_144 : f32 to vector<2x96xf32>
    %343 = arith.addf %342, %341 : vector<2x96xf32>
    %344 = arith.divf %342, %343 : vector<2x96xf32>
    %345 = vector.extract_strided_slice %338 {offsets = [0, 96], sizes = [2, 32], strides = [1, 1]} : vector<2x128xf32> to vector<2x32xf32>
    %346 = math.tanh %345 : vector<2x32xf32>
    %347 = vector.extract_strided_slice %344 {offsets = [0, 0], sizes = [2, 32], strides = [1, 1]} : vector<2x96xf32> to vector<2x32xf32>
    %348 = vector.extract_strided_slice %344 {offsets = [0, 32], sizes = [2, 32], strides = [1, 1]} : vector<2x96xf32> to vector<2x32xf32>
    %349 = vector.extract_strided_slice %344 {offsets = [0, 64], sizes = [2, 32], strides = [1, 1]} : vector<2x96xf32> to vector<2x32xf32>
    %350 = arith.mulf %348, %302 : vector<2x32xf32>
    %351 = arith.mulf %347, %346 : vector<2x32xf32>
    %352 = arith.addf %350, %351 : vector<2x32xf32>
    %353 = math.tanh %352 : vector<2x32xf32>
    %354 = arith.mulf %349, %353 : vector<2x32xf32>
    %355 = arith.truncf %333 : vector<2x32xf32> to vector<2x32xbf16>
    %c5_145 = arith.constant 5 : index
    %c0_146 = arith.constant 0 : index
    %c0_147 = arith.constant 0 : index
    %356 = vector.load %arg13[%c5_145, %c0_146, %c0_147] : memref<8x2x32xbf16, #tpu.memory_space<vmem>>, vector<1x2x32xbf16>
    %357 = vector.shape_cast %356 : vector<1x2x32xbf16> to vector<2x32xbf16>
    %358 = vector.shape_cast %355 : vector<2x32xbf16> to vector<1x2x32xbf16>
    tpu.vector_store %arg13[%c5_145, %c0_146, %c0_147], %358 {strides = array<i32>} : memref<8x2x32xbf16, #tpu.memory_space<vmem>>, vector<1x2x32xbf16>,
    %359 = arith.truncf %354 : vector<2x32xf32> to vector<2x32xbf16>
    %c2_148 = arith.constant 2 : index
    %c0_149 = arith.constant 0 : index
    %c0_150 = arith.constant 0 : index
    %360 = vector.load %arg14[%c2_148, %c0_149, %c0_150] : memref<8x2x32xbf16, #tpu.memory_space<vmem>>, vector<1x2x32xbf16>
    %361 = vector.shape_cast %360 : vector<1x2x32xbf16> to vector<2x32xbf16>
    %362 = vector.shape_cast %359 : vector<2x32xbf16> to vector<1x2x32xbf16>
    tpu.vector_store %arg14[%c2_148, %c0_149, %c0_150], %362 {strides = array<i32>} : memref<8x2x32xbf16, #tpu.memory_space<vmem>>, vector<1x2x32xbf16>,
    %c6_151 = arith.constant 6 : index
    %c0_152 = arith.constant 0 : index
    %c0_153 = arith.constant 0 : index
    %363 = vector.load %arg12[%c6_151, %c0_152, %c0_153] : memref<8x2x256xf32, #tpu.memory_space<vmem>>, vector<1x2x128xf32>
    %364 = vector.shape_cast %363 : vector<1x2x128xf32> to vector<2x128xf32>
    %365 = arith.truncf %333 : vector<2x32xf32> to vector<2x32xbf16>
    %cst_154 = arith.constant dense<0.000000e+00> : vector<2x128xf32>
    %366 = tpu.matmul %365, %60, %cst_154 {dimension_numbers = #tpu.dot_dimension_numbers<[1], [0], [0], [1], [0, 0, 1, 1], [], []>} : vector<2x32xbf16>, vector<32x128xbf16>, vector<2x128xf32> -> vector<2x128xf32>
    %367 = arith.addf %364, %366 : vector<2x128xf32>
    %368 = vector.extract_strided_slice %367 {offsets = [0, 0], sizes = [2, 96], strides = [1, 1]} : vector<2x128xf32> to vector<2x96xf32>
    %369 = arith.negf %368 : vector<2x96xf32>
    %370 = math.exp %369 : vector<2x96xf32>
    %cst_155 = arith.constant 1.000000e+00 : f32
    %371 = vector.broadcast %cst_155 : f32 to vector<2x96xf32>
    %372 = arith.addf %371, %370 : vector<2x96xf32>
    %373 = arith.divf %371, %372 : vector<2x96xf32>
    %374 = vector.extract_strided_slice %367 {offsets = [0, 96], sizes = [2, 32], strides = [1, 1]} : vector<2x128xf32> to vector<2x32xf32>
    %375 = math.tanh %374 : vector<2x32xf32>
    %376 = vector.extract_strided_slice %373 {offsets = [0, 0], sizes = [2, 32], strides = [1, 1]} : vector<2x96xf32> to vector<2x32xf32>
    %377 = vector.extract_strided_slice %373 {offsets = [0, 32], sizes = [2, 32], strides = [1, 1]} : vector<2x96xf32> to vector<2x32xf32>
    %378 = vector.extract_strided_slice %373 {offsets = [0, 64], sizes = [2, 32], strides = [1, 1]} : vector<2x96xf32> to vector<2x32xf32>
    %379 = arith.mulf %377, %331 : vector<2x32xf32>
    %380 = arith.mulf %376, %375 : vector<2x32xf32>
    %381 = arith.addf %379, %380 : vector<2x32xf32>
    %382 = math.tanh %381 : vector<2x32xf32>
    %383 = arith.mulf %378, %382 : vector<2x32xf32>
    %c1_156 = arith.constant 1 : index
    %c0_157 = arith.constant 0 : index
    %c128_158 = arith.constant 128 : index
    %384 = vector.load %arg12[%c1_156, %c0_157, %c128_158] : memref<8x2x256xf32, #tpu.memory_space<vmem>>, vector<1x2x128xf32>
    %385 = vector.shape_cast %384 : vector<1x2x128xf32> to vector<2x128xf32>
    %386 = arith.truncf %354 : vector<2x32xf32> to vector<2x32xbf16>
    %cst_159 = arith.constant dense<0.000000e+00> : vector<2x128xf32>
    %387 = tpu.matmul %386, %61, %cst_159 {dimension_numbers = #tpu.dot_dimension_numbers<[1], [0], [0], [1], [0, 0, 1, 1], [], []>} : vector<2x32xbf16>, vector<32x128xbf16>, vector<2x128xf32> -> vector<2x128xf32>
    %388 = arith.addf %385, %387 : vector<2x128xf32>
    %389 = vector.extract_strided_slice %388 {offsets = [0, 0], sizes = [2, 96], strides = [1, 1]} : vector<2x128xf32> to vector<2x96xf32>
    %390 = arith.negf %389 : vector<2x96xf32>
    %391 = math.exp %390 : vector<2x96xf32>
    %cst_160 = arith.constant 1.000000e+00 : f32
    %392 = vector.broadcast %cst_160 : f32 to vector<2x96xf32>
    %393 = arith.addf %392, %391 : vector<2x96xf32>
    %394 = arith.divf %392, %393 : vector<2x96xf32>
    %395 = vector.extract_strided_slice %388 {offsets = [0, 96], sizes = [2, 32], strides = [1, 1]} : vector<2x128xf32> to vector<2x32xf32>
    %396 = math.tanh %395 : vector<2x32xf32>
    %397 = vector.extract_strided_slice %394 {offsets = [0, 0], sizes = [2, 32], strides = [1, 1]} : vector<2x96xf32> to vector<2x32xf32>
    %398 = vector.extract_strided_slice %394 {offsets = [0, 32], sizes = [2, 32], strides = [1, 1]} : vector<2x96xf32> to vector<2x32xf32>
    %399 = vector.extract_strided_slice %394 {offsets = [0, 64], sizes = [2, 32], strides = [1, 1]} : vector<2x96xf32> to vector<2x32xf32>
    %400 = arith.mulf %398, %352 : vector<2x32xf32>
    %401 = arith.mulf %397, %396 : vector<2x32xf32>
    %402 = arith.addf %400, %401 : vector<2x32xf32>
    %403 = math.tanh %402 : vector<2x32xf32>
    %404 = arith.mulf %399, %403 : vector<2x32xf32>
    %405 = arith.truncf %383 : vector<2x32xf32> to vector<2x32xbf16>
    %c6_161 = arith.constant 6 : index
    %c0_162 = arith.constant 0 : index
    %c0_163 = arith.constant 0 : index
    %406 = vector.load %arg13[%c6_161, %c0_162, %c0_163] : memref<8x2x32xbf16, #tpu.memory_space<vmem>>, vector<1x2x32xbf16>
    %407 = vector.shape_cast %406 : vector<1x2x32xbf16> to vector<2x32xbf16>
    %408 = vector.shape_cast %405 : vector<2x32xbf16> to vector<1x2x32xbf16>
    tpu.vector_store %arg13[%c6_161, %c0_162, %c0_163], %408 {strides = array<i32>} : memref<8x2x32xbf16, #tpu.memory_space<vmem>>, vector<1x2x32xbf16>,
    %409 = arith.truncf %404 : vector<2x32xf32> to vector<2x32xbf16>
    %c1_164 = arith.constant 1 : index
    %c0_165 = arith.constant 0 : index
    %c0_166 = arith.constant 0 : index
    %410 = vector.load %arg14[%c1_164, %c0_165, %c0_166] : memref<8x2x32xbf16, #tpu.memory_space<vmem>>, vector<1x2x32xbf16>
    %411 = vector.shape_cast %410 : vector<1x2x32xbf16> to vector<2x32xbf16>
    %412 = vector.shape_cast %409 : vector<2x32xbf16> to vector<1x2x32xbf16>
    tpu.vector_store %arg14[%c1_164, %c0_165, %c0_166], %412 {strides = array<i32>} : memref<8x2x32xbf16, #tpu.memory_space<vmem>>, vector<1x2x32xbf16>,
    %c7_167 = arith.constant 7 : index
    %c0_168 = arith.constant 0 : index
    %c0_169 = arith.constant 0 : index
    %413 = vector.load %arg12[%c7_167, %c0_168, %c0_169] : memref<8x2x256xf32, #tpu.memory_space<vmem>>, vector<1x2x128xf32>
    %414 = vector.shape_cast %413 : vector<1x2x128xf32> to vector<2x128xf32>
    %415 = arith.truncf %383 : vector<2x32xf32> to vector<2x32xbf16>
    %cst_170 = arith.constant dense<0.000000e+00> : vector<2x128xf32>
    %416 = tpu.matmul %415, %60, %cst_170 {dimension_numbers = #tpu.dot_dimension_numbers<[1], [0], [0], [1], [0, 0, 1, 1], [], []>} : vector<2x32xbf16>, vector<32x128xbf16>, vector<2x128xf32> -> vector<2x128xf32>
    %417 = arith.addf %414, %416 : vector<2x128xf32>
    %418 = vector.extract_strided_slice %417 {offsets = [0, 0], sizes = [2, 96], strides = [1, 1]} : vector<2x128xf32> to vector<2x96xf32>
    %419 = arith.negf %418 : vector<2x96xf32>
    %420 = math.exp %419 : vector<2x96xf32>
    %cst_171 = arith.constant 1.000000e+00 : f32
    %421 = vector.broadcast %cst_171 : f32 to vector<2x96xf32>
    %422 = arith.addf %421, %420 : vector<2x96xf32>
    %423 = arith.divf %421, %422 : vector<2x96xf32>
    %424 = vector.extract_strided_slice %417 {offsets = [0, 96], sizes = [2, 32], strides = [1, 1]} : vector<2x128xf32> to vector<2x32xf32>
    %425 = math.tanh %424 : vector<2x32xf32>
    %426 = vector.extract_strided_slice %423 {offsets = [0, 0], sizes = [2, 32], strides = [1, 1]} : vector<2x96xf32> to vector<2x32xf32>
    %427 = vector.extract_strided_slice %423 {offsets = [0, 32], sizes = [2, 32], strides = [1, 1]} : vector<2x96xf32> to vector<2x32xf32>
    %428 = vector.extract_strided_slice %423 {offsets = [0, 64], sizes = [2, 32], strides = [1, 1]} : vector<2x96xf32> to vector<2x32xf32>
    %429 = arith.mulf %427, %381 : vector<2x32xf32>
    %430 = arith.mulf %426, %425 : vector<2x32xf32>
    %431 = arith.addf %429, %430 : vector<2x32xf32>
    %432 = math.tanh %431 : vector<2x32xf32>
    %433 = arith.mulf %428, %432 : vector<2x32xf32>
    %c0_172 = arith.constant 0 : index
    %c0_173 = arith.constant 0 : index
    %c128_174 = arith.constant 128 : index
    %434 = vector.load %arg12[%c0_172, %c0_173, %c128_174] : memref<8x2x256xf32, #tpu.memory_space<vmem>>, vector<1x2x128xf32>
    %435 = vector.shape_cast %434 : vector<1x2x128xf32> to vector<2x128xf32>
    %436 = arith.truncf %404 : vector<2x32xf32> to vector<2x32xbf16>
    %cst_175 = arith.constant dense<0.000000e+00> : vector<2x128xf32>
    %437 = tpu.matmul %436, %61, %cst_175 {dimension_numbers = #tpu.dot_dimension_numbers<[1], [0], [0], [1], [0, 0, 1, 1], [], []>} : vector<2x32xbf16>, vector<32x128xbf16>, vector<2x128xf32> -> vector<2x128xf32>
    %438 = arith.addf %435, %437 : vector<2x128xf32>
    %439 = vector.extract_strided_slice %438 {offsets = [0, 0], sizes = [2, 96], strides = [1, 1]} : vector<2x128xf32> to vector<2x96xf32>
    %440 = arith.negf %439 : vector<2x96xf32>
    %441 = math.exp %440 : vector<2x96xf32>
    %cst_176 = arith.constant 1.000000e+00 : f32
    %442 = vector.broadcast %cst_176 : f32 to vector<2x96xf32>
    %443 = arith.addf %442, %441 : vector<2x96xf32>
    %444 = arith.divf %442, %443 : vector<2x96xf32>
    %445 = vector.extract_strided_slice %438 {offsets = [0, 96], sizes = [2, 32], strides = [1, 1]} : vector<2x128xf32> to vector<2x32xf32>
    %446 = math.tanh %445 : vector<2x32xf32>
    %447 = vector.extract_strided_slice %444 {offsets = [0, 0], sizes = [2, 32], strides = [1, 1]} : vector<2x96xf32> to vector<2x32xf32>
    %448 = vector.extract_strided_slice %444 {offsets = [0, 32], sizes = [2, 32], strides = [1, 1]} : vector<2x96xf32> to vector<2x32xf32>
    %449 = vector.extract_strided_slice %444 {offsets = [0, 64], sizes = [2, 32], strides = [1, 1]} : vector<2x96xf32> to vector<2x32xf32>
    %450 = arith.mulf %448, %402 : vector<2x32xf32>
    %451 = arith.mulf %447, %446 : vector<2x32xf32>
    %452 = arith.addf %450, %451 : vector<2x32xf32>
    %453 = math.tanh %452 : vector<2x32xf32>
    %454 = arith.mulf %449, %453 : vector<2x32xf32>
    %455 = arith.truncf %433 : vector<2x32xf32> to vector<2x32xbf16>
    %c7_177 = arith.constant 7 : index
    %c0_178 = arith.constant 0 : index
    %c0_179 = arith.constant 0 : index
    %456 = vector.load %arg13[%c7_177, %c0_178, %c0_179] : memref<8x2x32xbf16, #tpu.memory_space<vmem>>, vector<1x2x32xbf16>
    %457 = vector.shape_cast %456 : vector<1x2x32xbf16> to vector<2x32xbf16>
    %458 = vector.shape_cast %455 : vector<2x32xbf16> to vector<1x2x32xbf16>
    tpu.vector_store %arg13[%c7_177, %c0_178, %c0_179], %458 {strides = array<i32>} : memref<8x2x32xbf16, #tpu.memory_space<vmem>>, vector<1x2x32xbf16>,
    %459 = arith.truncf %454 : vector<2x32xf32> to vector<2x32xbf16>
    %c0_180 = arith.constant 0 : index
    %c0_181 = arith.constant 0 : index
    %c0_182 = arith.constant 0 : index
    %460 = vector.load %arg14[%c0_180, %c0_181, %c0_182] : memref<8x2x32xbf16, #tpu.memory_space<vmem>>, vector<1x2x32xbf16>
    %461 = vector.shape_cast %460 : vector<1x2x32xbf16> to vector<2x32xbf16>
    %462 = vector.shape_cast %459 : vector<2x32xbf16> to vector<1x2x32xbf16>
    tpu.vector_store %arg14[%c0_180, %c0_181, %c0_182], %462 {strides = array<i32>} : memref<8x2x32xbf16, #tpu.memory_space<vmem>>, vector<1x2x32xbf16>,
    %c0_183 = arith.constant 0 : index
    %c0_184 = arith.constant 0 : index
    %463 = vector.load %arg5[%c0_183, %c0_184] : memref<64x256xbf16, #tpu.memory_space<vmem>>, vector<32x256xbf16>
    %c32 = arith.constant 32 : index
    %c0_185 = arith.constant 0 : index
    %464 = vector.load %arg5[%c32, %c0_185] : memref<64x256xbf16, #tpu.memory_space<vmem>>, vector<32x256xbf16>
    %c0_186 = arith.constant 0 : index
    %c0_187 = arith.constant 0 : index
    %465 = vector.load %arg8[%c0_186, %c0_187] : memref<1x256xf32, #tpu.memory_space<vmem>>, vector<1x256xf32>
    %466 = vector.shape_cast %465 : vector<1x256xf32> to vector<1x256xf32>
    %467 = vector.broadcast %466 : vector<1x256xf32> to vector<2x256xf32>
    %c0_188 = arith.constant 0 : index
    %c0_189 = arith.constant 0 : index
    %c0_190 = arith.constant 0 : index
    %468 = vector.load %arg13[%c0_188, %c0_189, %c0_190] : memref<8x2x32xbf16, #tpu.memory_space<vmem>>, vector<1x2x32xbf16>
    %469 = vector.shape_cast %468 : vector<1x2x32xbf16> to vector<2x32xbf16>
    %cst_191 = arith.constant dense<0.000000e+00> : vector<2x256xf32>
    %470 = tpu.matmul %469, %463, %cst_191 {dimension_numbers = #tpu.dot_dimension_numbers<[1], [0], [0], [1], [0, 0, 1, 1], [], []>} : vector<2x32xbf16>, vector<32x256xbf16>, vector<2x256xf32> -> vector<2x256xf32>
    %c0_192 = arith.constant 0 : index
    %c0_193 = arith.constant 0 : index
    %c0_194 = arith.constant 0 : index
    %471 = vector.load %arg14[%c0_192, %c0_193, %c0_194] : memref<8x2x32xbf16, #tpu.memory_space<vmem>>, vector<1x2x32xbf16>
    %472 = vector.shape_cast %471 : vector<1x2x32xbf16> to vector<2x32xbf16>
    %cst_195 = arith.constant dense<0.000000e+00> : vector<2x256xf32>
    %473 = tpu.matmul %472, %464, %cst_195 {dimension_numbers = #tpu.dot_dimension_numbers<[1], [0], [0], [1], [0, 0, 1, 1], [], []>} : vector<2x32xbf16>, vector<32x256xbf16>, vector<2x256xf32> -> vector<2x256xf32>
    %474 = arith.addf %470, %473 : vector<2x256xf32>
    %475 = arith.addf %474, %467 : vector<2x256xf32>
    %c0_196 = arith.constant 0 : index
    %c0_197 = arith.constant 0 : index
    %c0_198 = arith.constant 0 : index
    %476 = vector.load %arg12[%c0_196, %c0_197, %c0_198] : memref<8x2x256xf32, #tpu.memory_space<vmem>>, vector<1x2x256xf32>
    %477 = vector.shape_cast %476 : vector<1x2x256xf32> to vector<2x256xf32>
    %478 = vector.shape_cast %475 : vector<2x256xf32> to vector<1x2x256xf32>
    tpu.vector_store %arg12[%c0_196, %c0_197, %c0_198], %478 {strides = array<i32>} : memref<8x2x256xf32, #tpu.memory_space<vmem>>, vector<1x2x256xf32>,
    %c1_199 = arith.constant 1 : index
    %c0_200 = arith.constant 0 : index
    %c0_201 = arith.constant 0 : index
    %479 = vector.load %arg13[%c1_199, %c0_200, %c0_201] : memref<8x2x32xbf16, #tpu.memory_space<vmem>>, vector<1x2x32xbf16>
    %480 = vector.shape_cast %479 : vector<1x2x32xbf16> to vector<2x32xbf16>
    %cst_202 = arith.constant dense<0.000000e+00> : vector<2x256xf32>
    %481 = tpu.matmul %480, %463, %cst_202 {dimension_numbers = #tpu.dot_dimension_numbers<[1], [0], [0], [1], [0, 0, 1, 1], [], []>} : vector<2x32xbf16>, vector<32x256xbf16>, vector<2x256xf32> -> vector<2x256xf32>
    %c1_203 = arith.constant 1 : index
    %c0_204 = arith.constant 0 : index
    %c0_205 = arith.constant 0 : index
    %482 = vector.load %arg14[%c1_203, %c0_204, %c0_205] : memref<8x2x32xbf16, #tpu.memory_space<vmem>>, vector<1x2x32xbf16>
    %483 = vector.shape_cast %482 : vector<1x2x32xbf16> to vector<2x32xbf16>
    %cst_206 = arith.constant dense<0.000000e+00> : vector<2x256xf32>
    %484 = tpu.matmul %483, %464, %cst_206 {dimension_numbers = #tpu.dot_dimension_numbers<[1], [0], [0], [1], [0, 0, 1, 1], [], []>} : vector<2x32xbf16>, vector<32x256xbf16>, vector<2x256xf32> -> vector<2x256xf32>
    %485 = arith.addf %481, %484 : vector<2x256xf32>
    %486 = arith.addf %485, %467 : vector<2x256xf32>
    %c1_207 = arith.constant 1 : index
    %c0_208 = arith.constant 0 : index
    %c0_209 = arith.constant 0 : index
    %487 = vector.load %arg12[%c1_207, %c0_208, %c0_209] : memref<8x2x256xf32, #tpu.memory_space<vmem>>, vector<1x2x256xf32>
    %488 = vector.shape_cast %487 : vector<1x2x256xf32> to vector<2x256xf32>
    %489 = vector.shape_cast %486 : vector<2x256xf32> to vector<1x2x256xf32>
    tpu.vector_store %arg12[%c1_207, %c0_208, %c0_209], %489 {strides = array<i32>} : memref<8x2x256xf32, #tpu.memory_space<vmem>>, vector<1x2x256xf32>,
    %c2_210 = arith.constant 2 : index
    %c0_211 = arith.constant 0 : index
    %c0_212 = arith.constant 0 : index
    %490 = vector.load %arg13[%c2_210, %c0_211, %c0_212] : memref<8x2x32xbf16, #tpu.memory_space<vmem>>, vector<1x2x32xbf16>
    %491 = vector.shape_cast %490 : vector<1x2x32xbf16> to vector<2x32xbf16>
    %cst_213 = arith.constant dense<0.000000e+00> : vector<2x256xf32>
    %492 = tpu.matmul %491, %463, %cst_213 {dimension_numbers = #tpu.dot_dimension_numbers<[1], [0], [0], [1], [0, 0, 1, 1], [], []>} : vector<2x32xbf16>, vector<32x256xbf16>, vector<2x256xf32> -> vector<2x256xf32>
    %c2_214 = arith.constant 2 : index
    %c0_215 = arith.constant 0 : index
    %c0_216 = arith.constant 0 : index
    %493 = vector.load %arg14[%c2_214, %c0_215, %c0_216] : memref<8x2x32xbf16, #tpu.memory_space<vmem>>, vector<1x2x32xbf16>
    %494 = vector.shape_cast %493 : vector<1x2x32xbf16> to vector<2x32xbf16>
    %cst_217 = arith.constant dense<0.000000e+00> : vector<2x256xf32>
    %495 = tpu.matmul %494, %464, %cst_217 {dimension_numbers = #tpu.dot_dimension_numbers<[1], [0], [0], [1], [0, 0, 1, 1], [], []>} : vector<2x32xbf16>, vector<32x256xbf16>, vector<2x256xf32> -> vector<2x256xf32>
    %496 = arith.addf %492, %495 : vector<2x256xf32>
    %497 = arith.addf %496, %467 : vector<2x256xf32>
    %c2_218 = arith.constant 2 : index
    %c0_219 = arith.constant 0 : index
    %c0_220 = arith.constant 0 : index
    %498 = vector.load %arg12[%c2_218, %c0_219, %c0_220] : memref<8x2x256xf32, #tpu.memory_space<vmem>>, vector<1x2x256xf32>
    %499 = vector.shape_cast %498 : vector<1x2x256xf32> to vector<2x256xf32>
    %500 = vector.shape_cast %497 : vector<2x256xf32> to vector<1x2x256xf32>
    tpu.vector_store %arg12[%c2_218, %c0_219, %c0_220], %500 {strides = array<i32>} : memref<8x2x256xf32, #tpu.memory_space<vmem>>, vector<1x2x256xf32>,
    %c3_221 = arith.constant 3 : index
    %c0_222 = arith.constant 0 : index
    %c0_223 = arith.constant 0 : index
    %501 = vector.load %arg13[%c3_221, %c0_222, %c0_223] : memref<8x2x32xbf16, #tpu.memory_space<vmem>>, vector<1x2x32xbf16>
    %502 = vector.shape_cast %501 : vector<1x2x32xbf16> to vector<2x32xbf16>
    %cst_224 = arith.constant dense<0.000000e+00> : vector<2x256xf32>
    %503 = tpu.matmul %502, %463, %cst_224 {dimension_numbers = #tpu.dot_dimension_numbers<[1], [0], [0], [1], [0, 0, 1, 1], [], []>} : vector<2x32xbf16>, vector<32x256xbf16>, vector<2x256xf32> -> vector<2x256xf32>
    %c3_225 = arith.constant 3 : index
    %c0_226 = arith.constant 0 : index
    %c0_227 = arith.constant 0 : index
    %504 = vector.load %arg14[%c3_225, %c0_226, %c0_227] : memref<8x2x32xbf16, #tpu.memory_space<vmem>>, vector<1x2x32xbf16>
    %505 = vector.shape_cast %504 : vector<1x2x32xbf16> to vector<2x32xbf16>
    %cst_228 = arith.constant dense<0.000000e+00> : vector<2x256xf32>
    %506 = tpu.matmul %505, %464, %cst_228 {dimension_numbers = #tpu.dot_dimension_numbers<[1], [0], [0], [1], [0, 0, 1, 1], [], []>} : vector<2x32xbf16>, vector<32x256xbf16>, vector<2x256xf32> -> vector<2x256xf32>
    %507 = arith.addf %503, %506 : vector<2x256xf32>
    %508 = arith.addf %507, %467 : vector<2x256xf32>
    %c3_229 = arith.constant 3 : index
    %c0_230 = arith.constant 0 : index
    %c0_231 = arith.constant 0 : index
    %509 = vector.load %arg12[%c3_229, %c0_230, %c0_231] : memref<8x2x256xf32, #tpu.memory_space<vmem>>, vector<1x2x256xf32>
    %510 = vector.shape_cast %509 : vector<1x2x256xf32> to vector<2x256xf32>
    %511 = vector.shape_cast %508 : vector<2x256xf32> to vector<1x2x256xf32>
    tpu.vector_store %arg12[%c3_229, %c0_230, %c0_231], %511 {strides = array<i32>} : memref<8x2x256xf32, #tpu.memory_space<vmem>>, vector<1x2x256xf32>,
    %c4_232 = arith.constant 4 : index
    %c0_233 = arith.constant 0 : index
    %c0_234 = arith.constant 0 : index
    %512 = vector.load %arg13[%c4_232, %c0_233, %c0_234] : memref<8x2x32xbf16, #tpu.memory_space<vmem>>, vector<1x2x32xbf16>
    %513 = vector.shape_cast %512 : vector<1x2x32xbf16> to vector<2x32xbf16>
    %cst_235 = arith.constant dense<0.000000e+00> : vector<2x256xf32>
    %514 = tpu.matmul %513, %463, %cst_235 {dimension_numbers = #tpu.dot_dimension_numbers<[1], [0], [0], [1], [0, 0, 1, 1], [], []>} : vector<2x32xbf16>, vector<32x256xbf16>, vector<2x256xf32> -> vector<2x256xf32>
    %c4_236 = arith.constant 4 : index
    %c0_237 = arith.constant 0 : index
    %c0_238 = arith.constant 0 : index
    %515 = vector.load %arg14[%c4_236, %c0_237, %c0_238] : memref<8x2x32xbf16, #tpu.memory_space<vmem>>, vector<1x2x32xbf16>
    %516 = vector.shape_cast %515 : vector<1x2x32xbf16> to vector<2x32xbf16>
    %cst_239 = arith.constant dense<0.000000e+00> : vector<2x256xf32>
    %517 = tpu.matmul %516, %464, %cst_239 {dimension_numbers = #tpu.dot_dimension_numbers<[1], [0], [0], [1], [0, 0, 1, 1], [], []>} : vector<2x32xbf16>, vector<32x256xbf16>, vector<2x256xf32> -> vector<2x256xf32>
    %518 = arith.addf %514, %517 : vector<2x256xf32>
    %519 = arith.addf %518, %467 : vector<2x256xf32>
    %c4_240 = arith.constant 4 : index
    %c0_241 = arith.constant 0 : index
    %c0_242 = arith.constant 0 : index
    %520 = vector.load %arg12[%c4_240, %c0_241, %c0_242] : memref<8x2x256xf32, #tpu.memory_space<vmem>>, vector<1x2x256xf32>
    %521 = vector.shape_cast %520 : vector<1x2x256xf32> to vector<2x256xf32>
    %522 = vector.shape_cast %519 : vector<2x256xf32> to vector<1x2x256xf32>
    tpu.vector_store %arg12[%c4_240, %c0_241, %c0_242], %522 {strides = array<i32>} : memref<8x2x256xf32, #tpu.memory_space<vmem>>, vector<1x2x256xf32>,
    %c5_243 = arith.constant 5 : index
    %c0_244 = arith.constant 0 : index
    %c0_245 = arith.constant 0 : index
    %523 = vector.load %arg13[%c5_243, %c0_244, %c0_245] : memref<8x2x32xbf16, #tpu.memory_space<vmem>>, vector<1x2x32xbf16>
    %524 = vector.shape_cast %523 : vector<1x2x32xbf16> to vector<2x32xbf16>
    %cst_246 = arith.constant dense<0.000000e+00> : vector<2x256xf32>
    %525 = tpu.matmul %524, %463, %cst_246 {dimension_numbers = #tpu.dot_dimension_numbers<[1], [0], [0], [1], [0, 0, 1, 1], [], []>} : vector<2x32xbf16>, vector<32x256xbf16>, vector<2x256xf32> -> vector<2x256xf32>
    %c5_247 = arith.constant 5 : index
    %c0_248 = arith.constant 0 : index
    %c0_249 = arith.constant 0 : index
    %526 = vector.load %arg14[%c5_247, %c0_248, %c0_249] : memref<8x2x32xbf16, #tpu.memory_space<vmem>>, vector<1x2x32xbf16>
    %527 = vector.shape_cast %526 : vector<1x2x32xbf16> to vector<2x32xbf16>
    %cst_250 = arith.constant dense<0.000000e+00> : vector<2x256xf32>
    %528 = tpu.matmul %527, %464, %cst_250 {dimension_numbers = #tpu.dot_dimension_numbers<[1], [0], [0], [1], [0, 0, 1, 1], [], []>} : vector<2x32xbf16>, vector<32x256xbf16>, vector<2x256xf32> -> vector<2x256xf32>
    %529 = arith.addf %525, %528 : vector<2x256xf32>
    %530 = arith.addf %529, %467 : vector<2x256xf32>
    %c5_251 = arith.constant 5 : index
    %c0_252 = arith.constant 0 : index
    %c0_253 = arith.constant 0 : index
    %531 = vector.load %arg12[%c5_251, %c0_252, %c0_253] : memref<8x2x256xf32, #tpu.memory_space<vmem>>, vector<1x2x256xf32>
    %532 = vector.shape_cast %531 : vector<1x2x256xf32> to vector<2x256xf32>
    %533 = vector.shape_cast %530 : vector<2x256xf32> to vector<1x2x256xf32>
    tpu.vector_store %arg12[%c5_251, %c0_252, %c0_253], %533 {strides = array<i32>} : memref<8x2x256xf32, #tpu.memory_space<vmem>>, vector<1x2x256xf32>,
    %c6_254 = arith.constant 6 : index
    %c0_255 = arith.constant 0 : index
    %c0_256 = arith.constant 0 : index
    %534 = vector.load %arg13[%c6_254, %c0_255, %c0_256] : memref<8x2x32xbf16, #tpu.memory_space<vmem>>, vector<1x2x32xbf16>
    %535 = vector.shape_cast %534 : vector<1x2x32xbf16> to vector<2x32xbf16>
    %cst_257 = arith.constant dense<0.000000e+00> : vector<2x256xf32>
    %536 = tpu.matmul %535, %463, %cst_257 {dimension_numbers = #tpu.dot_dimension_numbers<[1], [0], [0], [1], [0, 0, 1, 1], [], []>} : vector<2x32xbf16>, vector<32x256xbf16>, vector<2x256xf32> -> vector<2x256xf32>
    %c6_258 = arith.constant 6 : index
    %c0_259 = arith.constant 0 : index
    %c0_260 = arith.constant 0 : index
    %537 = vector.load %arg14[%c6_258, %c0_259, %c0_260] : memref<8x2x32xbf16, #tpu.memory_space<vmem>>, vector<1x2x32xbf16>
    %538 = vector.shape_cast %537 : vector<1x2x32xbf16> to vector<2x32xbf16>
    %cst_261 = arith.constant dense<0.000000e+00> : vector<2x256xf32>
    %539 = tpu.matmul %538, %464, %cst_261 {dimension_numbers = #tpu.dot_dimension_numbers<[1], [0], [0], [1], [0, 0, 1, 1], [], []>} : vector<2x32xbf16>, vector<32x256xbf16>, vector<2x256xf32> -> vector<2x256xf32>
    %540 = arith.addf %536, %539 : vector<2x256xf32>
    %541 = arith.addf %540, %467 : vector<2x256xf32>
    %c6_262 = arith.constant 6 : index
    %c0_263 = arith.constant 0 : index
    %c0_264 = arith.constant 0 : index
    %542 = vector.load %arg12[%c6_262, %c0_263, %c0_264] : memref<8x2x256xf32, #tpu.memory_space<vmem>>, vector<1x2x256xf32>
    %543 = vector.shape_cast %542 : vector<1x2x256xf32> to vector<2x256xf32>
    %544 = vector.shape_cast %541 : vector<2x256xf32> to vector<1x2x256xf32>
    tpu.vector_store %arg12[%c6_262, %c0_263, %c0_264], %544 {strides = array<i32>} : memref<8x2x256xf32, #tpu.memory_space<vmem>>, vector<1x2x256xf32>,
    %c7_265 = arith.constant 7 : index
    %c0_266 = arith.constant 0 : index
    %c0_267 = arith.constant 0 : index
    %545 = vector.load %arg13[%c7_265, %c0_266, %c0_267] : memref<8x2x32xbf16, #tpu.memory_space<vmem>>, vector<1x2x32xbf16>
    %546 = vector.shape_cast %545 : vector<1x2x32xbf16> to vector<2x32xbf16>
    %cst_268 = arith.constant dense<0.000000e+00> : vector<2x256xf32>
    %547 = tpu.matmul %546, %463, %cst_268 {dimension_numbers = #tpu.dot_dimension_numbers<[1], [0], [0], [1], [0, 0, 1, 1], [], []>} : vector<2x32xbf16>, vector<32x256xbf16>, vector<2x256xf32> -> vector<2x256xf32>
    %c7_269 = arith.constant 7 : index
    %c0_270 = arith.constant 0 : index
    %c0_271 = arith.constant 0 : index
    %548 = vector.load %arg14[%c7_269, %c0_270, %c0_271] : memref<8x2x32xbf16, #tpu.memory_space<vmem>>, vector<1x2x32xbf16>
    %549 = vector.shape_cast %548 : vector<1x2x32xbf16> to vector<2x32xbf16>
    %cst_272 = arith.constant dense<0.000000e+00> : vector<2x256xf32>
    %550 = tpu.matmul %549, %464, %cst_272 {dimension_numbers = #tpu.dot_dimension_numbers<[1], [0], [0], [1], [0, 0, 1, 1], [], []>} : vector<2x32xbf16>, vector<32x256xbf16>, vector<2x256xf32> -> vector<2x256xf32>
    %551 = arith.addf %547, %550 : vector<2x256xf32>
    %552 = arith.addf %551, %467 : vector<2x256xf32>
    %c7_273 = arith.constant 7 : index
    %c0_274 = arith.constant 0 : index
    %c0_275 = arith.constant 0 : index
    %553 = vector.load %arg12[%c7_273, %c0_274, %c0_275] : memref<8x2x256xf32, #tpu.memory_space<vmem>>, vector<1x2x256xf32>
    %554 = vector.shape_cast %553 : vector<1x2x256xf32> to vector<2x256xf32>
    %555 = vector.shape_cast %552 : vector<2x256xf32> to vector<1x2x256xf32>
    tpu.vector_store %arg12[%c7_273, %c0_274, %c0_275], %555 {strides = array<i32>} : memref<8x2x256xf32, #tpu.memory_space<vmem>>, vector<1x2x256xf32>,
    %c0_276 = arith.constant 0 : index
    %c0_277 = arith.constant 0 : index
    %556 = vector.load %arg6[%c0_276, %c0_277] : memref<32x128xbf16, #tpu.memory_space<vmem>>, vector<32x128xbf16>
    %c0_278 = arith.constant 0 : index
    %c0_279 = arith.constant 0 : index
    %557 = vector.load %arg7[%c0_278, %c0_279] : memref<32x128xbf16, #tpu.memory_space<vmem>>, vector<32x128xbf16>
    %cst_280 = arith.constant 0.000000e+00 : f32
    %558 = vector.broadcast %cst_280 : f32 to vector<2x32xf32>
    %c0_281 = arith.constant 0 : index
    %c0_282 = arith.constant 0 : index
    %c0_283 = arith.constant 0 : index
    %559 = vector.load %arg12[%c0_281, %c0_282, %c0_283] : memref<8x2x256xf32, #tpu.memory_space<vmem>>, vector<1x2x128xf32>
    %560 = vector.shape_cast %559 : vector<1x2x128xf32> to vector<2x128xf32>
    %561 = arith.truncf %558 : vector<2x32xf32> to vector<2x32xbf16>
    %cst_284 = arith.constant dense<0.000000e+00> : vector<2x128xf32>
    %562 = tpu.matmul %561, %556, %cst_284 {dimension_numbers = #tpu.dot_dimension_numbers<[1], [0], [0], [1], [0, 0, 1, 1], [], []>} : vector<2x32xbf16>, vector<32x128xbf16>, vector<2x128xf32> -> vector<2x128xf32>
    %563 = arith.addf %560, %562 : vector<2x128xf32>
    %564 = vector.extract_strided_slice %563 {offsets = [0, 0], sizes = [2, 96], strides = [1, 1]} : vector<2x128xf32> to vector<2x96xf32>
    %565 = arith.negf %564 : vector<2x96xf32>
    %566 = math.exp %565 : vector<2x96xf32>
    %cst_285 = arith.constant 1.000000e+00 : f32
    %567 = vector.broadcast %cst_285 : f32 to vector<2x96xf32>
    %568 = arith.addf %567, %566 : vector<2x96xf32>
    %569 = arith.divf %567, %568 : vector<2x96xf32>
    %570 = vector.extract_strided_slice %563 {offsets = [0, 96], sizes = [2, 32], strides = [1, 1]} : vector<2x128xf32> to vector<2x32xf32>
    %571 = math.tanh %570 : vector<2x32xf32>
    %572 = vector.extract_strided_slice %569 {offsets = [0, 0], sizes = [2, 32], strides = [1, 1]} : vector<2x96xf32> to vector<2x32xf32>
    %573 = vector.extract_strided_slice %569 {offsets = [0, 32], sizes = [2, 32], strides = [1, 1]} : vector<2x96xf32> to vector<2x32xf32>
    %574 = vector.extract_strided_slice %569 {offsets = [0, 64], sizes = [2, 32], strides = [1, 1]} : vector<2x96xf32> to vector<2x32xf32>
    %575 = arith.mulf %573, %558 : vector<2x32xf32>
    %576 = arith.mulf %572, %571 : vector<2x32xf32>
    %577 = arith.addf %575, %576 : vector<2x32xf32>
    %578 = math.tanh %577 : vector<2x32xf32>
    %579 = arith.mulf %574, %578 : vector<2x32xf32>
    %c7_286 = arith.constant 7 : index
    %c0_287 = arith.constant 0 : index
    %c128_288 = arith.constant 128 : index
    %580 = vector.load %arg12[%c7_286, %c0_287, %c128_288] : memref<8x2x256xf32, #tpu.memory_space<vmem>>, vector<1x2x128xf32>
    %581 = vector.shape_cast %580 : vector<1x2x128xf32> to vector<2x128xf32>
    %582 = arith.truncf %558 : vector<2x32xf32> to vector<2x32xbf16>
    %cst_289 = arith.constant dense<0.000000e+00> : vector<2x128xf32>
    %583 = tpu.matmul %582, %557, %cst_289 {dimension_numbers = #tpu.dot_dimension_numbers<[1], [0], [0], [1], [0, 0, 1, 1], [], []>} : vector<2x32xbf16>, vector<32x128xbf16>, vector<2x128xf32> -> vector<2x128xf32>
    %584 = arith.addf %581, %583 : vector<2x128xf32>
    %585 = vector.extract_strided_slice %584 {offsets = [0, 0], sizes = [2, 96], strides = [1, 1]} : vector<2x128xf32> to vector<2x96xf32>
    %586 = arith.negf %585 : vector<2x96xf32>
    %587 = math.exp %586 : vector<2x96xf32>
    %cst_290 = arith.constant 1.000000e+00 : f32
    %588 = vector.broadcast %cst_290 : f32 to vector<2x96xf32>
    %589 = arith.addf %588, %587 : vector<2x96xf32>
    %590 = arith.divf %588, %589 : vector<2x96xf32>
    %591 = vector.extract_strided_slice %584 {offsets = [0, 96], sizes = [2, 32], strides = [1, 1]} : vector<2x128xf32> to vector<2x32xf32>
    %592 = math.tanh %591 : vector<2x32xf32>
    %593 = vector.extract_strided_slice %590 {offsets = [0, 0], sizes = [2, 32], strides = [1, 1]} : vector<2x96xf32> to vector<2x32xf32>
    %594 = vector.extract_strided_slice %590 {offsets = [0, 32], sizes = [2, 32], strides = [1, 1]} : vector<2x96xf32> to vector<2x32xf32>
    %595 = vector.extract_strided_slice %590 {offsets = [0, 64], sizes = [2, 32], strides = [1, 1]} : vector<2x96xf32> to vector<2x32xf32>
    %596 = arith.mulf %594, %558 : vector<2x32xf32>
    %597 = arith.mulf %593, %592 : vector<2x32xf32>
    %598 = arith.addf %596, %597 : vector<2x32xf32>
    %599 = math.tanh %598 : vector<2x32xf32>
    %600 = arith.mulf %595, %599 : vector<2x32xf32>
    %c1_291 = arith.constant 1 : index
    %c0_292 = arith.constant 0 : index
    %c0_293 = arith.constant 0 : index
    %601 = vector.load %arg12[%c1_291, %c0_292, %c0_293] : memref<8x2x256xf32, #tpu.memory_space<vmem>>, vector<1x2x128xf32>
    %602 = vector.shape_cast %601 : vector<1x2x128xf32> to vector<2x128xf32>
    %603 = arith.truncf %579 : vector<2x32xf32> to vector<2x32xbf16>
    %cst_294 = arith.constant dense<0.000000e+00> : vector<2x128xf32>
    %604 = tpu.matmul %603, %556, %cst_294 {dimension_numbers = #tpu.dot_dimension_numbers<[1], [0], [0], [1], [0, 0, 1, 1], [], []>} : vector<2x32xbf16>, vector<32x128xbf16>, vector<2x128xf32> -> vector<2x128xf32>
    %605 = arith.addf %602, %604 : vector<2x128xf32>
    %606 = vector.extract_strided_slice %605 {offsets = [0, 0], sizes = [2, 96], strides = [1, 1]} : vector<2x128xf32> to vector<2x96xf32>
    %607 = arith.negf %606 : vector<2x96xf32>
    %608 = math.exp %607 : vector<2x96xf32>
    %cst_295 = arith.constant 1.000000e+00 : f32
    %609 = vector.broadcast %cst_295 : f32 to vector<2x96xf32>
    %610 = arith.addf %609, %608 : vector<2x96xf32>
    %611 = arith.divf %609, %610 : vector<2x96xf32>
    %612 = vector.extract_strided_slice %605 {offsets = [0, 96], sizes = [2, 32], strides = [1, 1]} : vector<2x128xf32> to vector<2x32xf32>
    %613 = math.tanh %612 : vector<2x32xf32>
    %614 = vector.extract_strided_slice %611 {offsets = [0, 0], sizes = [2, 32], strides = [1, 1]} : vector<2x96xf32> to vector<2x32xf32>
    %615 = vector.extract_strided_slice %611 {offsets = [0, 32], sizes = [2, 32], strides = [1, 1]} : vector<2x96xf32> to vector<2x32xf32>
    %616 = vector.extract_strided_slice %611 {offsets = [0, 64], sizes = [2, 32], strides = [1, 1]} : vector<2x96xf32> to vector<2x32xf32>
    %617 = arith.mulf %615, %577 : vector<2x32xf32>
    %618 = arith.mulf %614, %613 : vector<2x32xf32>
    %619 = arith.addf %617, %618 : vector<2x32xf32>
    %620 = math.tanh %619 : vector<2x32xf32>
    %621 = arith.mulf %616, %620 : vector<2x32xf32>
    %c6_296 = arith.constant 6 : index
    %c0_297 = arith.constant 0 : index
    %c128_298 = arith.constant 128 : index
    %622 = vector.load %arg12[%c6_296, %c0_297, %c128_298] : memref<8x2x256xf32, #tpu.memory_space<vmem>>, vector<1x2x128xf32>
    %623 = vector.shape_cast %622 : vector<1x2x128xf32> to vector<2x128xf32>
    %624 = arith.truncf %600 : vector<2x32xf32> to vector<2x32xbf16>
    %cst_299 = arith.constant dense<0.000000e+00> : vector<2x128xf32>
    %625 = tpu.matmul %624, %557, %cst_299 {dimension_numbers = #tpu.dot_dimension_numbers<[1], [0], [0], [1], [0, 0, 1, 1], [], []>} : vector<2x32xbf16>, vector<32x128xbf16>, vector<2x128xf32> -> vector<2x128xf32>
    %626 = arith.addf %623, %625 : vector<2x128xf32>
    %627 = vector.extract_strided_slice %626 {offsets = [0, 0], sizes = [2, 96], strides = [1, 1]} : vector<2x128xf32> to vector<2x96xf32>
    %628 = arith.negf %627 : vector<2x96xf32>
    %629 = math.exp %628 : vector<2x96xf32>
    %cst_300 = arith.constant 1.000000e+00 : f32
    %630 = vector.broadcast %cst_300 : f32 to vector<2x96xf32>
    %631 = arith.addf %630, %629 : vector<2x96xf32>
    %632 = arith.divf %630, %631 : vector<2x96xf32>
    %633 = vector.extract_strided_slice %626 {offsets = [0, 96], sizes = [2, 32], strides = [1, 1]} : vector<2x128xf32> to vector<2x32xf32>
    %634 = math.tanh %633 : vector<2x32xf32>
    %635 = vector.extract_strided_slice %632 {offsets = [0, 0], sizes = [2, 32], strides = [1, 1]} : vector<2x96xf32> to vector<2x32xf32>
    %636 = vector.extract_strided_slice %632 {offsets = [0, 32], sizes = [2, 32], strides = [1, 1]} : vector<2x96xf32> to vector<2x32xf32>
    %637 = vector.extract_strided_slice %632 {offsets = [0, 64], sizes = [2, 32], strides = [1, 1]} : vector<2x96xf32> to vector<2x32xf32>
    %638 = arith.mulf %636, %598 : vector<2x32xf32>
    %639 = arith.mulf %635, %634 : vector<2x32xf32>
    %640 = arith.addf %638, %639 : vector<2x32xf32>
    %641 = math.tanh %640 : vector<2x32xf32>
    %642 = arith.mulf %637, %641 : vector<2x32xf32>
    %c2_301 = arith.constant 2 : index
    %c0_302 = arith.constant 0 : index
    %c0_303 = arith.constant 0 : index
    %643 = vector.load %arg12[%c2_301, %c0_302, %c0_303] : memref<8x2x256xf32, #tpu.memory_space<vmem>>, vector<1x2x128xf32>
    %644 = vector.shape_cast %643 : vector<1x2x128xf32> to vector<2x128xf32>
    %645 = arith.truncf %621 : vector<2x32xf32> to vector<2x32xbf16>
    %cst_304 = arith.constant dense<0.000000e+00> : vector<2x128xf32>
    %646 = tpu.matmul %645, %556, %cst_304 {dimension_numbers = #tpu.dot_dimension_numbers<[1], [0], [0], [1], [0, 0, 1, 1], [], []>} : vector<2x32xbf16>, vector<32x128xbf16>, vector<2x128xf32> -> vector<2x128xf32>
    %647 = arith.addf %644, %646 : vector<2x128xf32>
    %648 = vector.extract_strided_slice %647 {offsets = [0, 0], sizes = [2, 96], strides = [1, 1]} : vector<2x128xf32> to vector<2x96xf32>
    %649 = arith.negf %648 : vector<2x96xf32>
    %650 = math.exp %649 : vector<2x96xf32>
    %cst_305 = arith.constant 1.000000e+00 : f32
    %651 = vector.broadcast %cst_305 : f32 to vector<2x96xf32>
    %652 = arith.addf %651, %650 : vector<2x96xf32>
    %653 = arith.divf %651, %652 : vector<2x96xf32>
    %654 = vector.extract_strided_slice %647 {offsets = [0, 96], sizes = [2, 32], strides = [1, 1]} : vector<2x128xf32> to vector<2x32xf32>
    %655 = math.tanh %654 : vector<2x32xf32>
    %656 = vector.extract_strided_slice %653 {offsets = [0, 0], sizes = [2, 32], strides = [1, 1]} : vector<2x96xf32> to vector<2x32xf32>
    %657 = vector.extract_strided_slice %653 {offsets = [0, 32], sizes = [2, 32], strides = [1, 1]} : vector<2x96xf32> to vector<2x32xf32>
    %658 = vector.extract_strided_slice %653 {offsets = [0, 64], sizes = [2, 32], strides = [1, 1]} : vector<2x96xf32> to vector<2x32xf32>
    %659 = arith.mulf %657, %619 : vector<2x32xf32>
    %660 = arith.mulf %656, %655 : vector<2x32xf32>
    %661 = arith.addf %659, %660 : vector<2x32xf32>
    %662 = math.tanh %661 : vector<2x32xf32>
    %663 = arith.mulf %658, %662 : vector<2x32xf32>
    %c5_306 = arith.constant 5 : index
    %c0_307 = arith.constant 0 : index
    %c128_308 = arith.constant 128 : index
    %664 = vector.load %arg12[%c5_306, %c0_307, %c128_308] : memref<8x2x256xf32, #tpu.memory_space<vmem>>, vector<1x2x128xf32>
    %665 = vector.shape_cast %664 : vector<1x2x128xf32> to vector<2x128xf32>
    %666 = arith.truncf %642 : vector<2x32xf32> to vector<2x32xbf16>
    %cst_309 = arith.constant dense<0.000000e+00> : vector<2x128xf32>
    %667 = tpu.matmul %666, %557, %cst_309 {dimension_numbers = #tpu.dot_dimension_numbers<[1], [0], [0], [1], [0, 0, 1, 1], [], []>} : vector<2x32xbf16>, vector<32x128xbf16>, vector<2x128xf32> -> vector<2x128xf32>
    %668 = arith.addf %665, %667 : vector<2x128xf32>
    %669 = vector.extract_strided_slice %668 {offsets = [0, 0], sizes = [2, 96], strides = [1, 1]} : vector<2x128xf32> to vector<2x96xf32>
    %670 = arith.negf %669 : vector<2x96xf32>
    %671 = math.exp %670 : vector<2x96xf32>
    %cst_310 = arith.constant 1.000000e+00 : f32
    %672 = vector.broadcast %cst_310 : f32 to vector<2x96xf32>
    %673 = arith.addf %672, %671 : vector<2x96xf32>
    %674 = arith.divf %672, %673 : vector<2x96xf32>
    %675 = vector.extract_strided_slice %668 {offsets = [0, 96], sizes = [2, 32], strides = [1, 1]} : vector<2x128xf32> to vector<2x32xf32>
    %676 = math.tanh %675 : vector<2x32xf32>
    %677 = vector.extract_strided_slice %674 {offsets = [0, 0], sizes = [2, 32], strides = [1, 1]} : vector<2x96xf32> to vector<2x32xf32>
    %678 = vector.extract_strided_slice %674 {offsets = [0, 32], sizes = [2, 32], strides = [1, 1]} : vector<2x96xf32> to vector<2x32xf32>
    %679 = vector.extract_strided_slice %674 {offsets = [0, 64], sizes = [2, 32], strides = [1, 1]} : vector<2x96xf32> to vector<2x32xf32>
    %680 = arith.mulf %678, %640 : vector<2x32xf32>
    %681 = arith.mulf %677, %676 : vector<2x32xf32>
    %682 = arith.addf %680, %681 : vector<2x32xf32>
    %683 = math.tanh %682 : vector<2x32xf32>
    %684 = arith.mulf %679, %683 : vector<2x32xf32>
    %c3_311 = arith.constant 3 : index
    %c0_312 = arith.constant 0 : index
    %c0_313 = arith.constant 0 : index
    %685 = vector.load %arg12[%c3_311, %c0_312, %c0_313] : memref<8x2x256xf32, #tpu.memory_space<vmem>>, vector<1x2x128xf32>
    %686 = vector.shape_cast %685 : vector<1x2x128xf32> to vector<2x128xf32>
    %687 = arith.truncf %663 : vector<2x32xf32> to vector<2x32xbf16>
    %cst_314 = arith.constant dense<0.000000e+00> : vector<2x128xf32>
    %688 = tpu.matmul %687, %556, %cst_314 {dimension_numbers = #tpu.dot_dimension_numbers<[1], [0], [0], [1], [0, 0, 1, 1], [], []>} : vector<2x32xbf16>, vector<32x128xbf16>, vector<2x128xf32> -> vector<2x128xf32>
    %689 = arith.addf %686, %688 : vector<2x128xf32>
    %690 = vector.extract_strided_slice %689 {offsets = [0, 0], sizes = [2, 96], strides = [1, 1]} : vector<2x128xf32> to vector<2x96xf32>
    %691 = arith.negf %690 : vector<2x96xf32>
    %692 = math.exp %691 : vector<2x96xf32>
    %cst_315 = arith.constant 1.000000e+00 : f32
    %693 = vector.broadcast %cst_315 : f32 to vector<2x96xf32>
    %694 = arith.addf %693, %692 : vector<2x96xf32>
    %695 = arith.divf %693, %694 : vector<2x96xf32>
    %696 = vector.extract_strided_slice %689 {offsets = [0, 96], sizes = [2, 32], strides = [1, 1]} : vector<2x128xf32> to vector<2x32xf32>
    %697 = math.tanh %696 : vector<2x32xf32>
    %698 = vector.extract_strided_slice %695 {offsets = [0, 0], sizes = [2, 32], strides = [1, 1]} : vector<2x96xf32> to vector<2x32xf32>
    %699 = vector.extract_strided_slice %695 {offsets = [0, 32], sizes = [2, 32], strides = [1, 1]} : vector<2x96xf32> to vector<2x32xf32>
    %700 = vector.extract_strided_slice %695 {offsets = [0, 64], sizes = [2, 32], strides = [1, 1]} : vector<2x96xf32> to vector<2x32xf32>
    %701 = arith.mulf %699, %661 : vector<2x32xf32>
    %702 = arith.mulf %698, %697 : vector<2x32xf32>
    %703 = arith.addf %701, %702 : vector<2x32xf32>
    %704 = math.tanh %703 : vector<2x32xf32>
    %705 = arith.mulf %700, %704 : vector<2x32xf32>
    %c4_316 = arith.constant 4 : index
    %c0_317 = arith.constant 0 : index
    %c128_318 = arith.constant 128 : index
    %706 = vector.load %arg12[%c4_316, %c0_317, %c128_318] : memref<8x2x256xf32, #tpu.memory_space<vmem>>, vector<1x2x128xf32>
    %707 = vector.shape_cast %706 : vector<1x2x128xf32> to vector<2x128xf32>
    %708 = arith.truncf %684 : vector<2x32xf32> to vector<2x32xbf16>
    %cst_319 = arith.constant dense<0.000000e+00> : vector<2x128xf32>
    %709 = tpu.matmul %708, %557, %cst_319 {dimension_numbers = #tpu.dot_dimension_numbers<[1], [0], [0], [1], [0, 0, 1, 1], [], []>} : vector<2x32xbf16>, vector<32x128xbf16>, vector<2x128xf32> -> vector<2x128xf32>
    %710 = arith.addf %707, %709 : vector<2x128xf32>
    %711 = vector.extract_strided_slice %710 {offsets = [0, 0], sizes = [2, 96], strides = [1, 1]} : vector<2x128xf32> to vector<2x96xf32>
    %712 = arith.negf %711 : vector<2x96xf32>
    %713 = math.exp %712 : vector<2x96xf32>
    %cst_320 = arith.constant 1.000000e+00 : f32
    %714 = vector.broadcast %cst_320 : f32 to vector<2x96xf32>
    %715 = arith.addf %714, %713 : vector<2x96xf32>
    %716 = arith.divf %714, %715 : vector<2x96xf32>
    %717 = vector.extract_strided_slice %710 {offsets = [0, 96], sizes = [2, 32], strides = [1, 1]} : vector<2x128xf32> to vector<2x32xf32>
    %718 = math.tanh %717 : vector<2x32xf32>
    %719 = vector.extract_strided_slice %716 {offsets = [0, 0], sizes = [2, 32], strides = [1, 1]} : vector<2x96xf32> to vector<2x32xf32>
    %720 = vector.extract_strided_slice %716 {offsets = [0, 32], sizes = [2, 32], strides = [1, 1]} : vector<2x96xf32> to vector<2x32xf32>
    %721 = vector.extract_strided_slice %716 {offsets = [0, 64], sizes = [2, 32], strides = [1, 1]} : vector<2x96xf32> to vector<2x32xf32>
    %722 = arith.mulf %720, %682 : vector<2x32xf32>
    %723 = arith.mulf %719, %718 : vector<2x32xf32>
    %724 = arith.addf %722, %723 : vector<2x32xf32>
    %725 = math.tanh %724 : vector<2x32xf32>
    %726 = arith.mulf %721, %725 : vector<2x32xf32>
    %c4_321 = arith.constant 4 : index
    %c0_322 = arith.constant 0 : index
    %c0_323 = arith.constant 0 : index
    %727 = vector.load %arg12[%c4_321, %c0_322, %c0_323] : memref<8x2x256xf32, #tpu.memory_space<vmem>>, vector<1x2x128xf32>
    %728 = vector.shape_cast %727 : vector<1x2x128xf32> to vector<2x128xf32>
    %729 = arith.truncf %705 : vector<2x32xf32> to vector<2x32xbf16>
    %cst_324 = arith.constant dense<0.000000e+00> : vector<2x128xf32>
    %730 = tpu.matmul %729, %556, %cst_324 {dimension_numbers = #tpu.dot_dimension_numbers<[1], [0], [0], [1], [0, 0, 1, 1], [], []>} : vector<2x32xbf16>, vector<32x128xbf16>, vector<2x128xf32> -> vector<2x128xf32>
    %731 = arith.addf %728, %730 : vector<2x128xf32>
    %732 = vector.extract_strided_slice %731 {offsets = [0, 0], sizes = [2, 96], strides = [1, 1]} : vector<2x128xf32> to vector<2x96xf32>
    %733 = arith.negf %732 : vector<2x96xf32>
    %734 = math.exp %733 : vector<2x96xf32>
    %cst_325 = arith.constant 1.000000e+00 : f32
    %735 = vector.broadcast %cst_325 : f32 to vector<2x96xf32>
    %736 = arith.addf %735, %734 : vector<2x96xf32>
    %737 = arith.divf %735, %736 : vector<2x96xf32>
    %738 = vector.extract_strided_slice %731 {offsets = [0, 96], sizes = [2, 32], strides = [1, 1]} : vector<2x128xf32> to vector<2x32xf32>
    %739 = math.tanh %738 : vector<2x32xf32>
    %740 = vector.extract_strided_slice %737 {offsets = [0, 0], sizes = [2, 32], strides = [1, 1]} : vector<2x96xf32> to vector<2x32xf32>
    %741 = vector.extract_strided_slice %737 {offsets = [0, 32], sizes = [2, 32], strides = [1, 1]} : vector<2x96xf32> to vector<2x32xf32>
    %742 = vector.extract_strided_slice %737 {offsets = [0, 64], sizes = [2, 32], strides = [1, 1]} : vector<2x96xf32> to vector<2x32xf32>
    %743 = arith.mulf %741, %703 : vector<2x32xf32>
    %744 = arith.mulf %740, %739 : vector<2x32xf32>
    %745 = arith.addf %743, %744 : vector<2x32xf32>
    %746 = math.tanh %745 : vector<2x32xf32>
    %747 = arith.mulf %742, %746 : vector<2x32xf32>
    %c3_326 = arith.constant 3 : index
    %c0_327 = arith.constant 0 : index
    %c128_328 = arith.constant 128 : index
    %748 = vector.load %arg12[%c3_326, %c0_327, %c128_328] : memref<8x2x256xf32, #tpu.memory_space<vmem>>, vector<1x2x128xf32>
    %749 = vector.shape_cast %748 : vector<1x2x128xf32> to vector<2x128xf32>
    %750 = arith.truncf %726 : vector<2x32xf32> to vector<2x32xbf16>
    %cst_329 = arith.constant dense<0.000000e+00> : vector<2x128xf32>
    %751 = tpu.matmul %750, %557, %cst_329 {dimension_numbers = #tpu.dot_dimension_numbers<[1], [0], [0], [1], [0, 0, 1, 1], [], []>} : vector<2x32xbf16>, vector<32x128xbf16>, vector<2x128xf32> -> vector<2x128xf32>
    %752 = arith.addf %749, %751 : vector<2x128xf32>
    %753 = vector.extract_strided_slice %752 {offsets = [0, 0], sizes = [2, 96], strides = [1, 1]} : vector<2x128xf32> to vector<2x96xf32>
    %754 = arith.negf %753 : vector<2x96xf32>
    %755 = math.exp %754 : vector<2x96xf32>
    %cst_330 = arith.constant 1.000000e+00 : f32
    %756 = vector.broadcast %cst_330 : f32 to vector<2x96xf32>
    %757 = arith.addf %756, %755 : vector<2x96xf32>
    %758 = arith.divf %756, %757 : vector<2x96xf32>
    %759 = vector.extract_strided_slice %752 {offsets = [0, 96], sizes = [2, 32], strides = [1, 1]} : vector<2x128xf32> to vector<2x32xf32>
    %760 = math.tanh %759 : vector<2x32xf32>
    %761 = vector.extract_strided_slice %758 {offsets = [0, 0], sizes = [2, 32], strides = [1, 1]} : vector<2x96xf32> to vector<2x32xf32>
    %762 = vector.extract_strided_slice %758 {offsets = [0, 32], sizes = [2, 32], strides = [1, 1]} : vector<2x96xf32> to vector<2x32xf32>
    %763 = vector.extract_strided_slice %758 {offsets = [0, 64], sizes = [2, 32], strides = [1, 1]} : vector<2x96xf32> to vector<2x32xf32>
    %764 = arith.mulf %762, %724 : vector<2x32xf32>
    %765 = arith.mulf %761, %760 : vector<2x32xf32>
    %766 = arith.addf %764, %765 : vector<2x32xf32>
    %767 = math.tanh %766 : vector<2x32xf32>
    %768 = arith.mulf %763, %767 : vector<2x32xf32>
    %c5_331 = arith.constant 5 : index
    %c0_332 = arith.constant 0 : index
    %c0_333 = arith.constant 0 : index
    %769 = vector.load %arg12[%c5_331, %c0_332, %c0_333] : memref<8x2x256xf32, #tpu.memory_space<vmem>>, vector<1x2x128xf32>
    %770 = vector.shape_cast %769 : vector<1x2x128xf32> to vector<2x128xf32>
    %771 = arith.truncf %747 : vector<2x32xf32> to vector<2x32xbf16>
    %cst_334 = arith.constant dense<0.000000e+00> : vector<2x128xf32>
    %772 = tpu.matmul %771, %556, %cst_334 {dimension_numbers = #tpu.dot_dimension_numbers<[1], [0], [0], [1], [0, 0, 1, 1], [], []>} : vector<2x32xbf16>, vector<32x128xbf16>, vector<2x128xf32> -> vector<2x128xf32>
    %773 = arith.addf %770, %772 : vector<2x128xf32>
    %774 = vector.extract_strided_slice %773 {offsets = [0, 0], sizes = [2, 96], strides = [1, 1]} : vector<2x128xf32> to vector<2x96xf32>
    %775 = arith.negf %774 : vector<2x96xf32>
    %776 = math.exp %775 : vector<2x96xf32>
    %cst_335 = arith.constant 1.000000e+00 : f32
    %777 = vector.broadcast %cst_335 : f32 to vector<2x96xf32>
    %778 = arith.addf %777, %776 : vector<2x96xf32>
    %779 = arith.divf %777, %778 : vector<2x96xf32>
    %780 = vector.extract_strided_slice %773 {offsets = [0, 96], sizes = [2, 32], strides = [1, 1]} : vector<2x128xf32> to vector<2x32xf32>
    %781 = math.tanh %780 : vector<2x32xf32>
    %782 = vector.extract_strided_slice %779 {offsets = [0, 0], sizes = [2, 32], strides = [1, 1]} : vector<2x96xf32> to vector<2x32xf32>
    %783 = vector.extract_strided_slice %779 {offsets = [0, 32], sizes = [2, 32], strides = [1, 1]} : vector<2x96xf32> to vector<2x32xf32>
    %784 = vector.extract_strided_slice %779 {offsets = [0, 64], sizes = [2, 32], strides = [1, 1]} : vector<2x96xf32> to vector<2x32xf32>
    %785 = arith.mulf %783, %745 : vector<2x32xf32>
    %786 = arith.mulf %782, %781 : vector<2x32xf32>
    %787 = arith.addf %785, %786 : vector<2x32xf32>
    %788 = math.tanh %787 : vector<2x32xf32>
    %789 = arith.mulf %784, %788 : vector<2x32xf32>
    %c2_336 = arith.constant 2 : index
    %c0_337 = arith.constant 0 : index
    %c128_338 = arith.constant 128 : index
    %790 = vector.load %arg12[%c2_336, %c0_337, %c128_338] : memref<8x2x256xf32, #tpu.memory_space<vmem>>, vector<1x2x128xf32>
    %791 = vector.shape_cast %790 : vector<1x2x128xf32> to vector<2x128xf32>
    %792 = arith.truncf %768 : vector<2x32xf32> to vector<2x32xbf16>
    %cst_339 = arith.constant dense<0.000000e+00> : vector<2x128xf32>
    %793 = tpu.matmul %792, %557, %cst_339 {dimension_numbers = #tpu.dot_dimension_numbers<[1], [0], [0], [1], [0, 0, 1, 1], [], []>} : vector<2x32xbf16>, vector<32x128xbf16>, vector<2x128xf32> -> vector<2x128xf32>
    %794 = arith.addf %791, %793 : vector<2x128xf32>
    %795 = vector.extract_strided_slice %794 {offsets = [0, 0], sizes = [2, 96], strides = [1, 1]} : vector<2x128xf32> to vector<2x96xf32>
    %796 = arith.negf %795 : vector<2x96xf32>
    %797 = math.exp %796 : vector<2x96xf32>
    %cst_340 = arith.constant 1.000000e+00 : f32
    %798 = vector.broadcast %cst_340 : f32 to vector<2x96xf32>
    %799 = arith.addf %798, %797 : vector<2x96xf32>
    %800 = arith.divf %798, %799 : vector<2x96xf32>
    %801 = vector.extract_strided_slice %794 {offsets = [0, 96], sizes = [2, 32], strides = [1, 1]} : vector<2x128xf32> to vector<2x32xf32>
    %802 = math.tanh %801 : vector<2x32xf32>
    %803 = vector.extract_strided_slice %800 {offsets = [0, 0], sizes = [2, 32], strides = [1, 1]} : vector<2x96xf32> to vector<2x32xf32>
    %804 = vector.extract_strided_slice %800 {offsets = [0, 32], sizes = [2, 32], strides = [1, 1]} : vector<2x96xf32> to vector<2x32xf32>
    %805 = vector.extract_strided_slice %800 {offsets = [0, 64], sizes = [2, 32], strides = [1, 1]} : vector<2x96xf32> to vector<2x32xf32>
    %806 = arith.mulf %804, %766 : vector<2x32xf32>
    %807 = arith.mulf %803, %802 : vector<2x32xf32>
    %808 = arith.addf %806, %807 : vector<2x32xf32>
    %809 = math.tanh %808 : vector<2x32xf32>
    %810 = arith.mulf %805, %809 : vector<2x32xf32>
    %c6_341 = arith.constant 6 : index
    %c0_342 = arith.constant 0 : index
    %c0_343 = arith.constant 0 : index
    %811 = vector.load %arg12[%c6_341, %c0_342, %c0_343] : memref<8x2x256xf32, #tpu.memory_space<vmem>>, vector<1x2x128xf32>
    %812 = vector.shape_cast %811 : vector<1x2x128xf32> to vector<2x128xf32>
    %813 = arith.truncf %789 : vector<2x32xf32> to vector<2x32xbf16>
    %cst_344 = arith.constant dense<0.000000e+00> : vector<2x128xf32>
    %814 = tpu.matmul %813, %556, %cst_344 {dimension_numbers = #tpu.dot_dimension_numbers<[1], [0], [0], [1], [0, 0, 1, 1], [], []>} : vector<2x32xbf16>, vector<32x128xbf16>, vector<2x128xf32> -> vector<2x128xf32>
    %815 = arith.addf %812, %814 : vector<2x128xf32>
    %816 = vector.extract_strided_slice %815 {offsets = [0, 0], sizes = [2, 96], strides = [1, 1]} : vector<2x128xf32> to vector<2x96xf32>
    %817 = arith.negf %816 : vector<2x96xf32>
    %818 = math.exp %817 : vector<2x96xf32>
    %cst_345 = arith.constant 1.000000e+00 : f32
    %819 = vector.broadcast %cst_345 : f32 to vector<2x96xf32>
    %820 = arith.addf %819, %818 : vector<2x96xf32>
    %821 = arith.divf %819, %820 : vector<2x96xf32>
    %822 = vector.extract_strided_slice %815 {offsets = [0, 96], sizes = [2, 32], strides = [1, 1]} : vector<2x128xf32> to vector<2x32xf32>
    %823 = math.tanh %822 : vector<2x32xf32>
    %824 = vector.extract_strided_slice %821 {offsets = [0, 0], sizes = [2, 32], strides = [1, 1]} : vector<2x96xf32> to vector<2x32xf32>
    %825 = vector.extract_strided_slice %821 {offsets = [0, 32], sizes = [2, 32], strides = [1, 1]} : vector<2x96xf32> to vector<2x32xf32>
    %826 = vector.extract_strided_slice %821 {offsets = [0, 64], sizes = [2, 32], strides = [1, 1]} : vector<2x96xf32> to vector<2x32xf32>
    %827 = arith.mulf %825, %787 : vector<2x32xf32>
    %828 = arith.mulf %824, %823 : vector<2x32xf32>
    %829 = arith.addf %827, %828 : vector<2x32xf32>
    %830 = math.tanh %829 : vector<2x32xf32>
    %831 = arith.mulf %826, %830 : vector<2x32xf32>
    %c1_346 = arith.constant 1 : index
    %c0_347 = arith.constant 0 : index
    %c128_348 = arith.constant 128 : index
    %832 = vector.load %arg12[%c1_346, %c0_347, %c128_348] : memref<8x2x256xf32, #tpu.memory_space<vmem>>, vector<1x2x128xf32>
    %833 = vector.shape_cast %832 : vector<1x2x128xf32> to vector<2x128xf32>
    %834 = arith.truncf %810 : vector<2x32xf32> to vector<2x32xbf16>
    %cst_349 = arith.constant dense<0.000000e+00> : vector<2x128xf32>
    %835 = tpu.matmul %834, %557, %cst_349 {dimension_numbers = #tpu.dot_dimension_numbers<[1], [0], [0], [1], [0, 0, 1, 1], [], []>} : vector<2x32xbf16>, vector<32x128xbf16>, vector<2x128xf32> -> vector<2x128xf32>
    %836 = arith.addf %833, %835 : vector<2x128xf32>
    %837 = vector.extract_strided_slice %836 {offsets = [0, 0], sizes = [2, 96], strides = [1, 1]} : vector<2x128xf32> to vector<2x96xf32>
    %838 = arith.negf %837 : vector<2x96xf32>
    %839 = math.exp %838 : vector<2x96xf32>
    %cst_350 = arith.constant 1.000000e+00 : f32
    %840 = vector.broadcast %cst_350 : f32 to vector<2x96xf32>
    %841 = arith.addf %840, %839 : vector<2x96xf32>
    %842 = arith.divf %840, %841 : vector<2x96xf32>
    %843 = vector.extract_strided_slice %836 {offsets = [0, 96], sizes = [2, 32], strides = [1, 1]} : vector<2x128xf32> to vector<2x32xf32>
    %844 = math.tanh %843 : vector<2x32xf32>
    %845 = vector.extract_strided_slice %842 {offsets = [0, 0], sizes = [2, 32], strides = [1, 1]} : vector<2x96xf32> to vector<2x32xf32>
    %846 = vector.extract_strided_slice %842 {offsets = [0, 32], sizes = [2, 32], strides = [1, 1]} : vector<2x96xf32> to vector<2x32xf32>
    %847 = vector.extract_strided_slice %842 {offsets = [0, 64], sizes = [2, 32], strides = [1, 1]} : vector<2x96xf32> to vector<2x32xf32>
    %848 = arith.mulf %846, %808 : vector<2x32xf32>
    %849 = arith.mulf %845, %844 : vector<2x32xf32>
    %850 = arith.addf %848, %849 : vector<2x32xf32>
    %851 = math.tanh %850 : vector<2x32xf32>
    %852 = arith.mulf %847, %851 : vector<2x32xf32>
    %c7_351 = arith.constant 7 : index
    %c0_352 = arith.constant 0 : index
    %c0_353 = arith.constant 0 : index
    %853 = vector.load %arg12[%c7_351, %c0_352, %c0_353] : memref<8x2x256xf32, #tpu.memory_space<vmem>>, vector<1x2x128xf32>
    %854 = vector.shape_cast %853 : vector<1x2x128xf32> to vector<2x128xf32>
    %855 = arith.truncf %831 : vector<2x32xf32> to vector<2x32xbf16>
    %cst_354 = arith.constant dense<0.000000e+00> : vector<2x128xf32>
    %856 = tpu.matmul %855, %556, %cst_354 {dimension_numbers = #tpu.dot_dimension_numbers<[1], [0], [0], [1], [0, 0, 1, 1], [], []>} : vector<2x32xbf16>, vector<32x128xbf16>, vector<2x128xf32> -> vector<2x128xf32>
    %857 = arith.addf %854, %856 : vector<2x128xf32>
    %858 = vector.extract_strided_slice %857 {offsets = [0, 0], sizes = [2, 96], strides = [1, 1]} : vector<2x128xf32> to vector<2x96xf32>
    %859 = arith.negf %858 : vector<2x96xf32>
    %860 = math.exp %859 : vector<2x96xf32>
    %cst_355 = arith.constant 1.000000e+00 : f32
    %861 = vector.broadcast %cst_355 : f32 to vector<2x96xf32>
    %862 = arith.addf %861, %860 : vector<2x96xf32>
    %863 = arith.divf %861, %862 : vector<2x96xf32>
    %864 = vector.extract_strided_slice %857 {offsets = [0, 96], sizes = [2, 32], strides = [1, 1]} : vector<2x128xf32> to vector<2x32xf32>
    %865 = math.tanh %864 : vector<2x32xf32>
    %866 = vector.extract_strided_slice %863 {offsets = [0, 0], sizes = [2, 32], strides = [1, 1]} : vector<2x96xf32> to vector<2x32xf32>
    %867 = vector.extract_strided_slice %863 {offsets = [0, 32], sizes = [2, 32], strides = [1, 1]} : vector<2x96xf32> to vector<2x32xf32>
    %868 = vector.extract_strided_slice %863 {offsets = [0, 64], sizes = [2, 32], strides = [1, 1]} : vector<2x96xf32> to vector<2x32xf32>
    %869 = arith.mulf %867, %829 : vector<2x32xf32>
    %870 = arith.mulf %866, %865 : vector<2x32xf32>
    %871 = arith.addf %869, %870 : vector<2x32xf32>
    %872 = math.tanh %871 : vector<2x32xf32>
    %873 = arith.mulf %868, %872 : vector<2x32xf32>
    %c0_356 = arith.constant 0 : index
    %c0_357 = arith.constant 0 : index
    %c128_358 = arith.constant 128 : index
    %874 = vector.load %arg12[%c0_356, %c0_357, %c128_358] : memref<8x2x256xf32, #tpu.memory_space<vmem>>, vector<1x2x128xf32>
    %875 = vector.shape_cast %874 : vector<1x2x128xf32> to vector<2x128xf32>
    %876 = arith.truncf %852 : vector<2x32xf32> to vector<2x32xbf16>
    %cst_359 = arith.constant dense<0.000000e+00> : vector<2x128xf32>
    %877 = tpu.matmul %876, %557, %cst_359 {dimension_numbers = #tpu.dot_dimension_numbers<[1], [0], [0], [1], [0, 0, 1, 1], [], []>} : vector<2x32xbf16>, vector<32x128xbf16>, vector<2x128xf32> -> vector<2x128xf32>
    %878 = arith.addf %875, %877 : vector<2x128xf32>
    %879 = vector.extract_strided_slice %878 {offsets = [0, 0], sizes = [2, 96], strides = [1, 1]} : vector<2x128xf32> to vector<2x96xf32>
    %880 = arith.negf %879 : vector<2x96xf32>
    %881 = math.exp %880 : vector<2x96xf32>
    %cst_360 = arith.constant 1.000000e+00 : f32
    %882 = vector.broadcast %cst_360 : f32 to vector<2x96xf32>
    %883 = arith.addf %882, %881 : vector<2x96xf32>
    %884 = arith.divf %882, %883 : vector<2x96xf32>
    %885 = vector.extract_strided_slice %878 {offsets = [0, 96], sizes = [2, 32], strides = [1, 1]} : vector<2x128xf32> to vector<2x32xf32>
    %886 = math.tanh %885 : vector<2x32xf32>
    %887 = vector.extract_strided_slice %884 {offsets = [0, 0], sizes = [2, 32], strides = [1, 1]} : vector<2x96xf32> to vector<2x32xf32>
    %888 = vector.extract_strided_slice %884 {offsets = [0, 32], sizes = [2, 32], strides = [1, 1]} : vector<2x96xf32> to vector<2x32xf32>
    %889 = vector.extract_strided_slice %884 {offsets = [0, 64], sizes = [2, 32], strides = [1, 1]} : vector<2x96xf32> to vector<2x32xf32>
    %890 = arith.mulf %888, %850 : vector<2x32xf32>
    %891 = arith.mulf %887, %886 : vector<2x32xf32>
    %892 = arith.addf %890, %891 : vector<2x32xf32>
    %893 = math.tanh %892 : vector<2x32xf32>
    %894 = arith.mulf %889, %893 : vector<2x32xf32>
    %c0_361 = arith.constant 0 : index
    %c0_362 = arith.constant 0 : index
    %895 = vector.load %arg9[%c0_361, %c0_362] : memref<64x128xf32, #tpu.memory_space<vmem>>, vector<64x128xf32>
    %896 = vector.extract_strided_slice %895 {offsets = [0, 0], sizes = [32, 128], strides = [1, 1]} : vector<64x128xf32> to vector<32x128xf32>
    %cst_363 = arith.constant dense<0.000000e+00> : vector<2x128xf32>
    %897 = tpu.matmul %873, %896, %cst_363 {dimension_numbers = #tpu.dot_dimension_numbers<[1], [0], [0], [1], [0, 0, 1, 1], [], []>} : vector<2x32xf32>, vector<32x128xf32>, vector<2x128xf32> -> vector<2x128xf32>
    %898 = vector.extract_strided_slice %895 {offsets = [32, 0], sizes = [32, 128], strides = [1, 1]} : vector<64x128xf32> to vector<32x128xf32>
    %cst_364 = arith.constant dense<0.000000e+00> : vector<2x128xf32>
    %899 = tpu.matmul %894, %898, %cst_364 {dimension_numbers = #tpu.dot_dimension_numbers<[1], [0], [0], [1], [0, 0, 1, 1], [], []>} : vector<2x32xf32>, vector<32x128xf32>, vector<2x128xf32> -> vector<2x128xf32>
    %900 = arith.addf %897, %899 : vector<2x128xf32>
    %c0_365 = arith.constant 0 : index
    %c0_366 = arith.constant 0 : index
    %901 = vector.load %arg10[%c0_365, %c0_366] : memref<1x128xf32, #tpu.memory_space<vmem>>, vector<1x128xf32>
    %902 = vector.broadcast %901 : vector<1x128xf32> to vector<2x128xf32>
    %903 = arith.addf %900, %902 : vector<2x128xf32>
    %cst_367 = arith.constant dense<0xFF800000> : vector<2xf32>
    %904 = vector.multi_reduction <maximumf>, %903, %cst_367 [1] : vector<2x128xf32> to vector<2xf32>
    %905 = vector.shape_cast %904 : vector<2xf32> to vector<2x1xf32>
    %906 = vector.broadcast %905 : vector<2x1xf32> to vector<2x128xf32>
    %907 = arith.subf %903, %906 : vector<2x128xf32>
    %908 = math.exp %907 : vector<2x128xf32>
    %cst_368 = arith.constant dense<0.000000e+00> : vector<2xf32>
    %909 = vector.multi_reduction <add>, %908, %cst_368 [1] : vector<2x128xf32> to vector<2xf32>
    %910 = vector.shape_cast %909 : vector<2xf32> to vector<2x1xf32>
    %911 = vector.broadcast %910 : vector<2x1xf32> to vector<2x128xf32>
    %912 = arith.divf %908, %911 : vector<2x128xf32>
    %c0_369 = arith.constant 0 : index
    %c0_370 = arith.constant 0 : index
    %913 = vector.load %arg11[%c0_369, %c0_370] : memref<2x128xf32, #tpu.memory_space<vmem>>, vector<2x128xf32>
    tpu.vector_store %arg11[%c0_369, %c0_370], %912 {strides = array<i32>} : memref<2x128xf32, #tpu.memory_space<vmem>>, vector<2x128xf32>,
    return
  }
}

</mosaic_0001>

<bundles_post_ra>
// kernel: bidirectional_lstm_classifier.1
= control target key start
LH: loop header
LB: loop body
LE: loop exit
PB: predicated region body
PF: predicated region fallthrough
CT: control target
= control target key end

     0   :  { %v5220_v2 = vmov 0   ;;  %vm99_vm0 = vcmask 1040384   ;;  %vm95_vm1 = vcmask 408576   ;;  %s6296_s0 = inlined_call_operand.vmem [shape: bf16[8,2,50], index: 0, kind: input, shape index: {}]   ;;  %s6297_s1 = inlined_call_operand.vmem [shape: bf16[50,256], index: 1, kind: input, shape index: {}]   ;;  %s6298_s2 = inlined_call_operand.vmem [shape: bf16[32,128], index: 2, kind: input, shape index: {}]   ;;  %s6299_s3 = inlined_call_operand.vmem [shape: bf16[32,128], index: 3, kind: input, shape index: {}]   ;;  %s6300_s4 = inlined_call_operand.vmem [shape: f32[1,256], index: 4, kind: input, shape index: {}]   ;;  %s6301_s5 = inlined_call_operand.vmem [shape: bf16[64,256], index: 5, kind: input, shape index: {}]   ;;  %s6302_s6 = inlined_call_operand.vmem [shape: bf16[32,128], index: 6, kind: input, shape index: {}]   ;;  %s6303_s7 = inlined_call_operand.vmem [shape: bf16[32,128], index: 7, kind: input, shape index: {}]   ;;  %s6304_s8 = inlined_call_operand.vmem [shape: f32[1,256], index: 8, kind: input, shape index: {}]   ;;  %s6305_s9 = inlined_call_operand.vmem [shape: f32[64,128], index: 9, kind: input, shape index: {}]   ;;  %s6306_s10 = inlined_call_operand.vmem [shape: f32[1,128], index: 10, kind: input, shape index: {}]   ;;  %s6307_s11 = inlined_call_operand.hbm [shape: f32[2,128], index: 11, kind: output, shape index: {}]  }
   0x1   :  { %v5292_v0 = vld [vmem:[%s6297_s1 + $0x4] ss:$8 sps:$4 sm:$0xff]   ;;  %v5297_v1 = vld [vmem:[%s6297_s1] ss:$8 sps:$4 sm:$0xff]   ;;  %196 = vmatprep.mubr.bf16.mxu1 %v5220_v2  ;;  %138 = vmatprep.mubr.bf16.mxu0 %v5220_v2  ;;  %v5305_v3 = vld [vmem:[%s6297_s1 + $0x14] ss:$8 sps:$4 sm:$0xff]  }
   0x2   :  { %164 = vmatprep.subr.bf16.mxu1 %v5292_v0  ;;  %106 = vmatprep.subr.bf16.mxu0 %v5292_v0  ;;  %v5312_v4 = vld [vmem:[%s6297_s1 + $0x10] ss:$8 sps:$4 sm:$0xff]   ;;  %v5319_v5 = vld [vmem:[%s6297_s1 + $0x24] ss:$8 sps:$4 sm:$0xff]   ;;  %v5329_v7 = vld [vmem:[%s6297_s1 + $0x20] ss:$8 sps:$4 sm:$0xff]  }
   0x3   :  { %165 = vmatpush1.bf16.msra.mxu1 %v5297_v1  ;;  %107 = vmatpush1.bf16.msra.mxu0 %v5297_v1  ;;  %v46_v6 = vld [vmem:[%s6297_s1 + $0x30] sm:$0x11]  ;;  %v4365_v11 = vld [vmem:[%s6296_s0 + $0x1] sm:$0x1]  ;;  %v59_v12 = vld [vmem:[%s6296_s0] sm:$0x1] }
   0x4   :  { %166 = vmatprep.subr.bf16.mxu1 %v5305_v3  ;;  %108 = vmatprep.subr.bf16.mxu0 %v5305_v3  ;;  %v5333_v8 = vcombine.high %v46_v6, %v46_v6  ;;  %v4360_v9 = vcombine.low %v46_v6, %v46_v6 }
   0x6   :  { %v5341_v10 = vsel %vm99_vm0, %v4360_v9, 0 }
   0x7   :  { %167 = vmatpush1.bf16.msra.mxu1 %v5312_v4  ;;  %109 = vmatpush1.bf16.msra.mxu0 %v5312_v4 }
   0x8   :  { %168 = vmatprep.subr.bf16.mxu1 %v5319_v5  ;;  %110 = vmatprep.subr.bf16.mxu0 %v5319_v5 }
   0xb   :  { %169 = vmatpush1.bf16.msra.mxu1 %v5329_v7  ;;  %111 = vmatpush1.bf16.msra.mxu0 %v5329_v7 }
   0xc   :  { %4366 = vmatprep.subr.msk.bf16.mxu1 %vm99_vm0, %v5333_v8  ;;  %4362 = vmatprep.subr.msk.bf16.mxu0 %vm99_vm0, %v5333_v8 }
   0xf   :  { %171 = vmatpush1.bf16.msra.mxu1 %v5341_v10  ;;  %113 = vmatpush1.bf16.msra.mxu0 %v5341_v10 }
  0x10   :  { %16 = vsyncpa [#allocation6], 0  ;;  %282 = vmatprep.subr.bf16.mxu1 %v5292_v0  ;;  %223 = vmatprep.subr.bf16.mxu0 %v5292_v0  ;;  %v4373_v13 = vld [vmem:[%s6296_s0 + $0x3] sm:$0x1]  ;;  %v4369_v14 = vld [vmem:[%s6296_s0 + $0x2] sm:$0x1]  ;;  %v49_v24 = vlaneseq }
  0x11   :  { %v4381_v15 = vld [vmem:[%s6296_s0 + $0x5] sm:$0x1]  ;;  %v4377_v16 = vld [vmem:[%s6296_s0 + $0x4] sm:$0x1]  ;;  %v4389_v17 = vld [vmem:[%s6296_s0 + $0x7] sm:$0x1] }
  0x12   :  { %4367 = vmatmul.mubr.msk.bf16.vlgmr.msra.gmra.mrb[0].mxu1 %vm95_vm1, %v4365_v11  ;;  %4363 = vmatmul.mubr.msk.bf16.vlgmr.msra.gmra.mrb[0].mxu0 %vm95_vm1, %v59_v12  ;;  %v5436_v18 = vld [vmem:[%s6299_s3] sm:$0xff]   ;;  %v5221_v20 = vmov 0.0   ;;  %v5455_v22 = vld [vmem:[%s6299_s3 + $0x8] sm:$0xff]   ;;  %vm5222_vm2 = vmmov 0   ;;  %v5487_v25 = vshrl.u32 %v49_v24, 7  ;;  %s5224_s16 = smov 64  }
  0x13   :  { %283 = vmatpush1.bf16.msra.mxu1 %v5297_v1  ;;  %224 = vmatpush1.bf16.msra.mxu0 %v5297_v1  ;;  %v4385_v19 = vld [vmem:[%s6296_s0 + $0x6] sm:$0x1]  ;;  %v5464_v23 = vld [vmem:[%s6298_s2 + $0x8] sm:$0xff]   ;;  %v47_v27 = vld [vmem:[%s6300_s4] sm:$0x3]  ;;  %s5223_s4 = smov 32  }
  0x14   :  { %284 = vmatprep.subr.bf16.mxu1 %v5305_v3  ;;  %225 = vmatprep.subr.bf16.mxu0 %v5305_v3  ;;  %v5447_v21 = vld [vmem:[%s6298_s2] sm:$0xff]   ;;  %v51_v26 = vsub.s32 0, %v5487_v25  ;;  %v55_v28 = vsub.s32 1, %v5487_v25  ;;  %vm593_vm3 = vcmask 261120   ;;  %vm759_vm4 = vcmask 253952  }
  0x15   :  { %314 = vmatprep.mubr.bf16.mxu1 %v5220_v2  ;;  %255 = vmatprep.mubr.bf16.mxu0 %v5220_v2  ;;  %vm4327_vm5 = vcmask 1041408  }
  0x16   :  { %v52_v29 = vrot.slane %v47_v27, %v51_v26  ;;  %v56_v30 = vrot.slane %v47_v27, %v55_v28 }
  0x17   :  { %285 = vmatpush1.bf16.msra.mxu1 %v5312_v4  ;;  %226 = vmatpush1.bf16.msra.mxu0 %v5312_v4 }
  0x18   :  { %286 = vmatprep.subr.bf16.mxu1 %v5319_v5  ;;  %227 = vmatprep.subr.bf16.mxu0 %v5319_v5 }
  0x1b   :  { %287 = vmatpush1.bf16.msra.mxu1 %v5329_v7  ;;  %228 = vmatpush1.bf16.msra.mxu0 %v5329_v7 }
  0x1c   :  { %4374 = vmatprep.subr.msk.bf16.mxu1 %vm99_vm0, %v5333_v8  ;;  %4370 = vmatprep.subr.msk.bf16.mxu0 %vm99_vm0, %v5333_v8 }
  0x1f   :  { %289 = vmatpush1.bf16.msra.mxu1 %v5341_v10  ;;  %230 = vmatpush1.bf16.msra.mxu0 %v5341_v10 }
  0x20   :  { %400 = vmatprep.subr.bf16.mxu1 %v5292_v0  ;;  %341 = vmatprep.subr.bf16.mxu0 %v5292_v0 }
  0x22   :  { %4375 = vmatmul.mubr.msk.bf16.vlgmr.msra.gmra.mrb[4].mxu1 %vm95_vm1, %v4373_v13  ;;  %4371 = vmatmul.mubr.msk.bf16.vlgmr.msra.gmra.mrb[4].mxu0 %vm95_vm1, %v4369_v14 }
  0x23   :  { %401 = vmatpush1.bf16.msra.mxu1 %v5297_v1  ;;  %342 = vmatpush1.bf16.msra.mxu0 %v5297_v1 }
  0x24   :  { %402 = vmatprep.subr.bf16.mxu1 %v5305_v3  ;;  %343 = vmatprep.subr.bf16.mxu0 %v5305_v3 }
  0x25   :  { %432 = vmatprep.mubr.bf16.mxu1 %v5220_v2  ;;  %373 = vmatprep.mubr.bf16.mxu0 %v5220_v2 }
  0x27   :  { %403 = vmatpush1.bf16.msra.mxu1 %v5312_v4  ;;  %344 = vmatpush1.bf16.msra.mxu0 %v5312_v4 }
  0x28   :  { %404 = vmatprep.subr.bf16.mxu1 %v5319_v5  ;;  %345 = vmatprep.subr.bf16.mxu0 %v5319_v5 }
  0x2b   :  { %405 = vmatpush1.bf16.msra.mxu1 %v5329_v7  ;;  %346 = vmatpush1.bf16.msra.mxu0 %v5329_v7 }
  0x2c   :  { %4382 = vmatprep.subr.msk.bf16.mxu1 %vm99_vm0, %v5333_v8  ;;  %4378 = vmatprep.subr.msk.bf16.mxu0 %vm99_vm0, %v5333_v8 }
  0x2f   :  { %407 = vmatpush1.bf16.msra.mxu1 %v5341_v10  ;;  %348 = vmatpush1.bf16.msra.mxu0 %v5341_v10 }
  0x30   :  { %518 = vmatprep.subr.bf16.mxu1 %v5292_v0  ;;  %459 = vmatprep.subr.bf16.mxu0 %v5292_v0 }
  0x32   :  { %4383 = vmatmul.mubr.msk.bf16.vlgmr.msra.gmra.mrb[8].mxu1 %vm95_vm1, %v4381_v15  ;;  %4379 = vmatmul.mubr.msk.bf16.vlgmr.msra.gmra.mrb[8].mxu0 %vm95_vm1, %v4377_v16 }
  0x33   :  { %519 = vmatpush1.bf16.msra.mxu1 %v5297_v1  ;;  %460 = vmatpush1.bf16.msra.mxu0 %v5297_v1 }
  0x34   :  { %520 = vmatprep.subr.bf16.mxu1 %v5305_v3  ;;  %461 = vmatprep.subr.bf16.mxu0 %v5305_v3 }
  0x35   :  { %550 = vmatprep.mubr.bf16.mxu1 %v5220_v2  ;;  %491 = vmatprep.mubr.bf16.mxu0 %v5220_v2 }
  0x37   :  { %521 = vmatpush1.bf16.msra.mxu1 %v5312_v4  ;;  %462 = vmatpush1.bf16.msra.mxu0 %v5312_v4 }
  0x38   :  { %522 = vmatprep.subr.bf16.mxu1 %v5319_v5  ;;  %463 = vmatprep.subr.bf16.mxu0 %v5319_v5 }
  0x3b   :  { %523 = vmatpush1.bf16.msra.mxu1 %v5329_v7  ;;  %464 = vmatpush1.bf16.msra.mxu0 %v5329_v7 }
  0x3c   :  { %4390 = vmatprep.subr.msk.bf16.mxu1 %vm99_vm0, %v5333_v8  ;;  %4386 = vmatprep.subr.msk.bf16.mxu0 %vm99_vm0, %v5333_v8 }
  0x3f   :  { %525 = vmatpush1.bf16.msra.mxu1 %v5341_v10  ;;  %466 = vmatpush1.bf16.msra.mxu0 %v5341_v10 }
  0x40   :  { %4610 = vmatprep.subr.bf16.mxu1 %v5221_v20  ;;  %4602 = vmatprep.subr.bf16.mxu0 %v5221_v20 }
  0x42   :  { %4391 = vmatmul.mubr.msk.bf16.vlgmr.msra.gmra.mrb[12].mxu1 %vm95_vm1, %v4389_v17  ;;  %4387 = vmatmul.mubr.msk.bf16.vlgmr.msra.gmra.mrb[12].mxu0 %vm95_vm1, %v4385_v19 }
  0x43   :  { %4611 = vmatpush3.bf16.msra.mxu1 %v5436_v18  ;;  %4614 = vmatprep.mubr.msk.bf16.mxu1 %vm5222_vm2, %v5221_v20 }
  0x44   :  { %4612 = vmatprep.subr.bf16.mxu1 %v5221_v20  ;;  %4603 = vmatpush3.bf16.msra.mxu0 %v5447_v21 }
  0x45   :  { %4604 = vmatprep.subr.bf16.mxu0 %v5221_v20  ;;  %4606 = vmatprep.mubr.msk.bf16.mxu0 %vm5222_vm2, %v5221_v20 }
  0x47   :  { %4613 = vmatpush3.bf16.msra.mxu1 %v5455_v22 }
  0x48   :  { %4605 = vmatpush3.bf16.msra.mxu0 %v5464_v23  ;;  %4626 = vmatprep.subr.bf16.mxu1 %v5221_v20 }
  0x49   :  { %4618 = vmatprep.subr.bf16.mxu0 %v5221_v20 }
  0x4a   :  { %4615 = vmatmul.mubr.bf16.vlgmr.msra.gmra.mrb[16].mxu1 %v5220_v2 }
  0x4b   :  { %4607 = vmatmul.mubr.bf16.vlgmr.msra.gmra.mrb[16].mxu0 %v5220_v2  ;;  %4627 = vmatpush3.bf16.msra.mxu1 %v5436_v18 }
  0x4c   :  { %4628 = vmatprep.subr.bf16.mxu1 %v5221_v20  ;;  %4619 = vmatpush3.bf16.msra.mxu0 %v5447_v21 }
  0x4d   :  { %4630 = vmatprep.mubr.msk.bf16.mxu1 %vm5222_vm2, %v5221_v20  ;;  %4620 = vmatprep.subr.bf16.mxu0 %v5221_v20 }
  0x4e   :  { %4622 = vmatprep.mubr.msk.bf16.mxu0 %vm5222_vm2, %v5221_v20 }
  0x4f   :  { %4629 = vmatpush3.bf16.msra.mxu1 %v5455_v22 }
  0x50   :  { %4621 = vmatpush3.bf16.msra.mxu0 %v5464_v23  ;;  %4642 = vmatprep.subr.bf16.mxu1 %v5221_v20 }
  0x51   :  { %4634 = vmatprep.subr.bf16.mxu0 %v5221_v20 }
  0xe5   :  { %v198_v31 = vpop.f32.mrb[0].mxu1  ;;  %v140_v32 = vpop.f32.mrb[0].mxu0 }
  0xe6   :  { %v199_v33 = vadd.f32 %v198_v31, %v52_v29  ;;  %v200_v34 = vpop.f32.mrb[1].mxu1  ;;  %v141_v35 = vadd.f32 %v140_v32, %v52_v29  ;;  %v142_v36 = vpop.f32.mrb[1].mxu0 }
  0xe7   :  { %v201_v37 = vadd.f32 %v200_v34, %v56_v30  ;;  %v202_v38 = vpop.f32.mrb[2].mxu1  ;;  %v143_v39 = vadd.f32 %v142_v36, %v56_v30  ;;  %v144_v40 = vpop.f32.mrb[2].mxu0 }
  0xe8   :  { %v203_v41 = vpop.f32.mrb[3].mxu1  ;;  %v145_v42 = vpop.f32.mrb[3].mxu0 }
  0xe9   :  { %v207_v43 = vcombine.low %v199_v33, %v201_v37  ;;  %v149_v44 = vcombine.low %v141_v35, %v143_v39 }
  0xeb   :  { %4368 = vst.sshfl [vmem:[#allocation2 + $0x4] sm:$0x33 pattern:$0x76325410] %v207_v43 }
  0xec   :  { %4364 = vst.sshfl [vmem:[#allocation2] sm:$0x33 pattern:$0x76325410] %v149_v44 }
  0xf3   :  { %v580_v40 = vld [vmem:[#allocation2] sm:$0x3] }
  0xf5   :  { %v316_v45 = vpop.f32.mrb[4].mxu1  ;;  %v257_v46 = vpop.f32.mrb[4].mxu0 }
  0xf6   :  { %v317_v47 = vadd.f32 %v316_v45, %v52_v29  ;;  %v318_v48 = vpop.f32.mrb[5].mxu1  ;;  %v258_v49 = vadd.f32 %v257_v46, %v52_v29  ;;  %v259_v50 = vpop.f32.mrb[5].mxu0 }
  0xf7   :  { %v319_v51 = vadd.f32 %v318_v48, %v56_v30  ;;  %v320_v52 = vpop.f32.mrb[6].mxu1  ;;  %v260_v53 = vadd.f32 %v259_v50, %v56_v30  ;;  %v261_v54 = vpop.f32.mrb[6].mxu0 }
  0xf8   :  { %v321_v55 = vpop.f32.mrb[7].mxu1  ;;  %v262_v56 = vpop.f32.mrb[7].mxu0 }
  0xf9   :  { %v325_v57 = vcombine.low %v317_v47, %v319_v51  ;;  %v266_v58 = vcombine.low %v258_v49, %v260_v53 }
  0xfb   :  { %4376 = vst.sshfl [vmem:[#allocation2 + $0xc] sm:$0x33 pattern:$0x76325410] %v325_v57 }
  0xfc   :  { %4372 = vst.sshfl [vmem:[#allocation2 + $0x8] sm:$0x33 pattern:$0x76325410] %v266_v58 }
 0x105   :  { %v434_v59 = vpop.f32.mrb[8].mxu1  ;;  %v375_v60 = vpop.f32.mrb[8].mxu0 }
 0x106   :  { %v435_v61 = vadd.f32 %v434_v59, %v52_v29  ;;  %v436_v62 = vpop.f32.mrb[9].mxu1  ;;  %v376_v63 = vadd.f32 %v375_v60, %v52_v29  ;;  %v377_v0 = vpop.f32.mrb[9].mxu0 }
 0x107   :  { %v437_v1 = vadd.f32 %v436_v62, %v56_v30  ;;  %v438_v3 = vpop.f32.mrb[10].mxu1  ;;  %v378_v4 = vadd.f32 %v377_v0, %v56_v30  ;;  %v379_v5 = vpop.f32.mrb[10].mxu0 }
 0x108   :  { %v439_v6 = vpop.f32.mrb[11].mxu1  ;;  %v380_v7 = vpop.f32.mrb[11].mxu0 }
 0x109   :  { %v443_v8 = vcombine.low %v435_v61, %v437_v1  ;;  %v384_v9 = vcombine.low %v376_v63, %v378_v4 }
 0x10b   :  { %4384 = vst.sshfl [vmem:[#allocation2 + $0x14] sm:$0x33 pattern:$0x76325410] %v443_v8 }
 0x10c   :  { %4380 = vst.sshfl [vmem:[#allocation2 + $0x10] sm:$0x33 pattern:$0x76325410] %v384_v9 }
 0x115   :  { %v552_v10 = vpop.f32.mrb[12].mxu1  ;;  %v493_v11 = vpop.f32.mrb[12].mxu0 }
 0x116   :  { %v553_v12 = vadd.f32 %v552_v10, %v52_v29  ;;  %v554_v13 = vpop.f32.mrb[13].mxu1  ;;  %v494_v14 = vadd.f32 %v493_v11, %v52_v29  ;;  %v495_v15 = vpop.f32.mrb[13].mxu0 }
 0x117   :  { %v555_v16 = vadd.f32 %v554_v13, %v56_v30  ;;  %v556_v17 = vpop.f32.mrb[14].mxu1  ;;  %v496_v19 = vadd.f32 %v495_v15, %v56_v30  ;;  %v497_v24 = vpop.f32.mrb[14].mxu0 }
 0x118   :  { %v557_v27 = vpop.f32.mrb[15].mxu1  ;;  %v498_v31 = vpop.f32.mrb[15].mxu0  ;;  %v782_v17 = vld [vmem:[#allocation2 + $0x4] sm:$0x3] }
 0x119   :  { %v561_v32 = vcombine.low %v553_v12, %v555_v16  ;;  %v502_v33 = vcombine.low %v494_v14, %v496_v19 }
 0x11b   :  { %4392 = vst.sshfl [vmem:[#allocation2 + $0x1c] sm:$0x33 pattern:$0x76325410] %v561_v32 }
 0x11c   :  { %4388 = vst.sshfl [vmem:[#allocation2 + $0x18] sm:$0x33 pattern:$0x76325410] %v502_v33 }
 0x11d   :  { %v709_v34 = vpop.f32.mrb[16].mxu1 }
 0x11e   :  { %v4616_v35 = vpop.f32.mrb[17].mxu1  ;;  %v631_v36 = vpop.f32.mrb[16].mxu0 }
 0x11f   :  { %v712_v37 = vpop.f32.mrb[18].mxu1  ;;  %v4608_v38 = vpop.f32.mrb[17].mxu0  ;;  %v637_v44 = vadd.f32 %v631_v36, %v580_v40 }
 0x120   :  { %v4617_v39 = vpop.f32.mrb[19].mxu1  ;;  %v634_v41 = vpop.f32.mrb[18].mxu0 }
 0x121   :  { %v4609_v29 = vpop.f32.mrb[19].mxu0  ;;  %v4395_v47 = vmul.f32 -1.442695, %v637_v44 }
 0x122   :  { %v662_v42 = vld [vmem:[#allocation2 + $0x1e] sm:$0x3] }
 0x123   :  { %v715_v43 = vadd.f32 %v709_v34, %v662_v42  ;;  %v853_v11 = vld [vmem:[#allocation2 + $0x1a] sm:$0x3] }
 0x125   :  { %4930 = vtanh.f32 %v715_v43  ;;  %v4398_v46 = vmul.f32 -1.442695, %v715_v43 }
 0x126   :  { %4932 = vtanh.f32 %v637_v44 }
 0x127   :  { %4934 = vpow2.f32 %v4398_v46 }
 0x128   :  { %4936 = vpow2.f32 %v4395_v47 }
 0x12f   :  { %v4931_v30 = vpop.eup %4930 }
 0x130   :  { %725 = vrot.lane.b32.xlu0 %v4931_v30, %s5223_s4  ;;  %v4933_v45 = vpop.eup %4932 }
 0x131   :  { %v4935_v48 = vpop.eup %4934 }
 0x132   :  { %v719_v49 = vadd.f32 1.0, %v4935_v48  ;;  %v4937_v50 = vpop.eup %4936 }
 0x133   :  { %v641_v51 = vadd.f32 1.0, %v4937_v50 }
 0x134   :  { %647 = vrot.lane.b32.xlu0 %v4933_v45, %s5223_s4  ;;  %4938 = vrcp.f32 %v719_v49 }
 0x135   :  { %4940 = vrcp.f32 %v641_v51 }
 0x13e   :  { %v4939_v52 = vpop.eup %4938 }
 0x13f   :  { %v4941_v55 = vpop.eup %4940  ;;  %v723_v58 = vmul.f32 0.0, %v4939_v52 }
 0x140   :  { %v645_v61 = vmul.f32 0.0, %v4941_v55 }
 0x1a2   :  { %v726_v53 = vpop.permute.xlu0 %725 }
 0x1a3   :  { %v728_v54 = vmul.f32 %v4939_v52, %v726_v53 }
 0x1a5   :  { %730 = vrot.lane.b32.xlu1 %v728_v54, %s5223_s4 }
 0x1a6   :  { %v648_v56 = vpop.permute.xlu0 %647 }
 0x1a7   :  { %v650_v57 = vmul.f32 %v4941_v55, %v648_v56 }
 0x1a9   :  { %652 = vrot.lane.b32.xlu1 %v650_v57, %s5223_s4 }
 0x217   :  { %v731_v59 = vpop.permute.xlu1 %730 }
 0x218   :  { %v5502_v60 = vadd.f32 %v731_v59, %v723_v58 }
 0x21a   :  { %4942 = vtanh.f32 %v5502_v60 }
 0x21b   :  { %v653_v62 = vpop.permute.xlu1 %652 }
 0x21c   :  { %v5505_v63 = vadd.f32 %v653_v62, %v645_v61  ;;  %v1037_v61 = vld [vmem:[#allocation2 + $0x16] sm:$0x3] }
 0x21e   :  { %4944 = vtanh.f32 %v5505_v63 }
 0x224   :  { %v4943_v0 = vpop.eup %4942 }
 0x225   :  { %736 = vrot.lane.b32.xlu0 %v4943_v0, %s5223_s4 }
 0x228   :  { %v4945_v1 = vpop.eup %4944 }
 0x229   :  { %658 = vrot.lane.b32.xlu1 %v4945_v1, %s5223_s4 }
 0x297   :  { %v737_v3 = vpop.permute.xlu0 %736 }
 0x298   :  { %v739_v4 = vmul.f32 %v4939_v52, %v737_v3 }
 0x29a   :  { %v5510_v5 = vpack.c.bf16 %v739_v4, %v739_v4  ;;  %v966_v4 = vld [vmem:[#allocation2 + $0x8] sm:$0x3] }
 0x29b   :  { %v659_v6 = vpop.permute.xlu1 %658 }
 0x29c   :  { %v661_v7 = vmul.f32 %v4941_v55, %v659_v6  ;;  %854 = vrot.lane.b32.xlu0 %v5510_v5, %s5224_s16 }
 0x29e   :  { %v5514_v8 = vpack.c.bf16 %v661_v7, %v661_v7 }
 0x2a0   :  { %783 = vrot.lane.b32.xlu1 %v5514_v8, %s5224_s16 }
 0x30e   :  { %v855_v9 = vpop.permute.xlu0 %854 }
 0x30f   :  { %4631 = vmatmul.mubr.msk.bf16.vlgmr.msra.gmra.mrb[20].mxu1 %vm593_vm3, %v855_v9 }
 0x310   :  { %4643 = vmatpush3.bf16.msra.mxu1 %v5436_v18  ;;  %4646 = vmatprep.mubr.msk.bf16.mxu1 %vm5222_vm2, %v5221_v20 }
 0x311   :  { %4644 = vmatprep.subr.bf16.mxu1 %v5221_v20 }
 0x312   :  { %v784_v10 = vpop.permute.xlu1 %783 }
 0x313   :  { %4623 = vmatmul.mubr.msk.bf16.vlgmr.msra.gmra.mrb[20].mxu0 %vm593_vm3, %v784_v10 }
 0x314   :  { %4645 = vmatpush3.bf16.msra.mxu1 %v5455_v22  ;;  %4635 = vmatpush3.bf16.msra.mxu0 %v5447_v21 }
 0x315   :  { %4636 = vmatprep.subr.bf16.mxu0 %v5221_v20  ;;  %4638 = vmatprep.mubr.msk.bf16.mxu0 %vm5222_vm2, %v5221_v20 }
 0x316   :  { %4658 = vmatprep.subr.bf16.mxu1 %v5221_v20 }
 0x318   :  { %4637 = vmatpush3.bf16.msra.mxu0 %v5464_v23 }
 0x319   :  { %4650 = vmatprep.subr.bf16.mxu0 %v5221_v20 }
 0x3e2   :  { %v893_v12 = vpop.f32.mrb[20].mxu1 }
 0x3e3   :  { %v899_v13 = vadd.f32 %v893_v12, %v853_v11  ;;  %v4632_v14 = vpop.f32.mrb[21].mxu1 }
 0x3e4   :  { %v896_v15 = vpop.f32.mrb[22].mxu1 }
 0x3e5   :  { %4946 = vtanh.f32 %v899_v13  ;;  %v4633_v16 = vpop.f32.mrb[23].mxu1  ;;  %v4402_v35 = vmul.f32 -1.442695, %v899_v13 }
 0x3e6   :  { %v822_v19 = vpop.f32.mrb[20].mxu0 }
 0x3e7   :  { %v828_v24 = vadd.f32 %v822_v19, %v782_v17  ;;  %v4624_v27 = vpop.f32.mrb[21].mxu0 }
 0x3e8   :  { %v825_v31 = vpop.f32.mrb[22].mxu0 }
 0x3e9   :  { %4948 = vtanh.f32 %v828_v24  ;;  %v4625_v32 = vpop.f32.mrb[23].mxu0  ;;  %v4400_v36 = vmul.f32 -1.442695, %v828_v24 }
 0x3ea   :  { %4950 = vpow2.f32 %v4402_v35 }
 0x3eb   :  { %4952 = vpow2.f32 %v4400_v36 }
 0x3ef   :  { %v4947_v33 = vpop.eup %4946 }
 0x3f0   :  { %909 = vrot.lane.b32.xlu0 %v4947_v33, %s5223_s4 }
 0x3f3   :  { %v4949_v34 = vpop.eup %4948 }
 0x3f4   :  { %838 = vrot.lane.b32.xlu1 %v4949_v34, %s5223_s4  ;;  %v4951_v37 = vpop.eup %4950 }
 0x3f5   :  { %v903_v38 = vadd.f32 1.0, %v4951_v37  ;;  %v4953_v39 = vpop.eup %4952 }
 0x3f6   :  { %v832_v40 = vadd.f32 1.0, %v4953_v39 }
 0x3f7   :  { %4954 = vrcp.f32 %v903_v38 }
 0x3f8   :  { %4956 = vrcp.f32 %v832_v40 }
 0x401   :  { %v4955_v41 = vpop.eup %4954 }
 0x402   :  { %v4957_v43 = vpop.eup %4956  ;;  %v907_v45 = vmul.f32 %v4955_v41, %v5502_v60 }
 0x403   :  { %v836_v48 = vmul.f32 %v4957_v43, %v5505_v63 }
 0x462   :  { %v910_v29 = vpop.permute.xlu0 %909 }
 0x463   :  { %v912_v42 = vmul.f32 %v4955_v41, %v910_v29 }
 0x465   :  { %914 = vrot.lane.b32.xlu0 %v912_v42, %s5223_s4 }
 0x466   :  { %v839_v44 = vpop.permute.xlu1 %838 }
 0x467   :  { %v841_v30 = vmul.f32 %v4957_v43, %v839_v44 }
 0x469   :  { %843 = vrot.lane.b32.xlu1 %v841_v30, %s5223_s4 }
 0x4d7   :  { %v915_v46 = vpop.permute.xlu0 %914 }
 0x4d8   :  { %v5537_v47 = vadd.f32 %v915_v46, %v907_v45 }
 0x4da   :  { %4958 = vtanh.f32 %v5537_v47 }
 0x4db   :  { %v844_v49 = vpop.permute.xlu1 %843 }
 0x4dc   :  { %v5541_v50 = vadd.f32 %v844_v49, %v836_v48 }
 0x4de   :  { %4960 = vtanh.f32 %v5541_v50 }
 0x4e4   :  { %v4959_v51 = vpop.eup %4958 }
 0x4e5   :  { %920 = vrot.lane.b32.xlu0 %v4959_v51, %s5223_s4 }
 0x4e8   :  { %v4961_v52 = vpop.eup %4960 }
 0x4e9   :  { %849 = vrot.lane.b32.xlu1 %v4961_v52, %s5223_s4 }
 0x557   :  { %v921_v53 = vpop.permute.xlu0 %920 }
 0x558   :  { %v923_v54 = vmul.f32 %v4955_v41, %v921_v53 }
 0x55a   :  { %v5546_v55 = vpack.c.bf16 %v923_v54, %v923_v54 }
 0x55b   :  { %v850_v56 = vpop.permute.xlu1 %849 }
 0x55c   :  { %v852_v57 = vmul.f32 %v4957_v43, %v850_v56  ;;  %1038 = vrot.lane.b32.xlu0 %v5546_v55, %s5224_s16 }
 0x55e   :  { %v5550_v58 = vpack.c.bf16 %v852_v57, %v852_v57  ;;  %v1150_v57 = vld [vmem:[#allocation2 + $0xc] sm:$0x3] }
 0x560   :  { %967 = vrot.lane.b32.xlu1 %v5550_v58, %s5224_s16 }
 0x5ce   :  { %v1039_v59 = vpop.permute.xlu0 %1038 }
 0x5cf   :  { %4647 = vmatmul.mubr.msk.bf16.vlgmr.msra.gmra.mrb[24].mxu1 %vm593_vm3, %v1039_v59 }
 0x5d0   :  { %4659 = vmatpush3.bf16.msra.mxu1 %v5436_v18  ;;  %4662 = vmatprep.mubr.msk.bf16.mxu1 %vm5222_vm2, %v5221_v20 }
 0x5d1   :  { %4660 = vmatprep.subr.bf16.mxu1 %v5221_v20 }
 0x5d2   :  { %v968_v60 = vpop.permute.xlu1 %967 }
 0x5d3   :  { %4639 = vmatmul.mubr.msk.bf16.vlgmr.msra.gmra.mrb[24].mxu0 %vm593_vm3, %v968_v60 }
 0x5d4   :  { %4661 = vmatpush3.bf16.msra.mxu1 %v5455_v22  ;;  %4651 = vmatpush3.bf16.msra.mxu0 %v5447_v21 }
 0x5d5   :  { %4652 = vmatprep.subr.bf16.mxu0 %v5221_v20  ;;  %4654 = vmatprep.mubr.msk.bf16.mxu0 %vm5222_vm2, %v5221_v20 }
 0x5d6   :  { %4674 = vmatprep.subr.bf16.mxu1 %v5221_v20 }
 0x5d8   :  { %4653 = vmatpush3.bf16.msra.mxu0 %v5464_v23 }
 0x5d9   :  { %4666 = vmatprep.subr.bf16.mxu0 %v5221_v20 }
 0x6a2   :  { %v1077_v62 = vpop.f32.mrb[24].mxu1 }
 0x6a3   :  { %v1083_v63 = vadd.f32 %v1077_v62, %v1037_v61  ;;  %v4648_v0 = vpop.f32.mrb[25].mxu1 }
 0x6a4   :  { %v1080_v1 = vpop.f32.mrb[26].mxu1 }
 0x6a5   :  { %4962 = vtanh.f32 %v1083_v63  ;;  %v4649_v3 = vpop.f32.mrb[27].mxu1  ;;  %v4406_v14 = vmul.f32 -1.442695, %v1083_v63 }
 0x6a6   :  { %v1006_v6 = vpop.f32.mrb[24].mxu0 }
 0x6a7   :  { %v1012_v7 = vadd.f32 %v1006_v6, %v966_v4  ;;  %v4640_v9 = vpop.f32.mrb[25].mxu0 }
 0x6a8   :  { %v1009_v10 = vpop.f32.mrb[26].mxu0 }
 0x6a9   :  { %4964 = vtanh.f32 %v1012_v7  ;;  %v4641_v11 = vpop.f32.mrb[27].mxu0  ;;  %v4404_v15 = vmul.f32 -1.442695, %v1012_v7 }
 0x6aa   :  { %4966 = vpow2.f32 %v4406_v14 }
 0x6ab   :  { %4968 = vpow2.f32 %v4404_v15 }
 0x6af   :  { %v4963_v12 = vpop.eup %4962 }
 0x6b0   :  { %1093 = vrot.lane.b32.xlu0 %v4963_v12, %s5223_s4 }
 0x6b3   :  { %v4965_v13 = vpop.eup %4964 }
 0x6b4   :  { %1022 = vrot.lane.b32.xlu1 %v4965_v13, %s5223_s4  ;;  %v4967_v16 = vpop.eup %4966 }
 0x6b5   :  { %v1087_v17 = vadd.f32 1.0, %v4967_v16  ;;  %v4969_v19 = vpop.eup %4968 }
 0x6b6   :  { %v1016_v24 = vadd.f32 1.0, %v4969_v19 }
 0x6b7   :  { %4970 = vrcp.f32 %v1087_v17 }
 0x6b8   :  { %4972 = vrcp.f32 %v1016_v24 }
 0x6c1   :  { %v4971_v27 = vpop.eup %4970 }
 0x6c2   :  { %v4973_v33 = vpop.eup %4972  ;;  %v1091_v36 = vmul.f32 %v4971_v27, %v5537_v47 }
 0x6c3   :  { %v1020_v39 = vmul.f32 %v4973_v33, %v5541_v50  ;;  %v1221_v50 = vld [vmem:[#allocation2 + $0x12] sm:$0x3] }
 0x722   :  { %v1094_v31 = vpop.permute.xlu0 %1093 }
 0x723   :  { %v1096_v32 = vmul.f32 %v4971_v27, %v1094_v31 }
 0x725   :  { %1098 = vrot.lane.b32.xlu0 %v1096_v32, %s5223_s4 }
 0x726   :  { %v1023_v34 = vpop.permute.xlu1 %1022 }
 0x727   :  { %v1025_v35 = vmul.f32 %v4973_v33, %v1023_v34 }
 0x729   :  { %1027 = vrot.lane.b32.xlu1 %v1025_v35, %s5223_s4 }
 0x797   :  { %v1099_v37 = vpop.permute.xlu0 %1098 }
 0x798   :  { %v5573_v38 = vadd.f32 %v1099_v37, %v1091_v36 }
 0x79a   :  { %4974 = vtanh.f32 %v5573_v38 }
 0x79b   :  { %v1028_v40 = vpop.permute.xlu1 %1027 }
 0x79c   :  { %v5577_v41 = vadd.f32 %v1028_v40, %v1020_v39 }
 0x79e   :  { %4976 = vtanh.f32 %v5577_v41 }
 0x7a4   :  { %v4975_v29 = vpop.eup %4974 }
 0x7a5   :  { %1104 = vrot.lane.b32.xlu0 %v4975_v29, %s5223_s4 }
 0x7a8   :  { %v4977_v42 = vpop.eup %4976 }
 0x7a9   :  { %1033 = vrot.lane.b32.xlu1 %v4977_v42, %s5223_s4  ;;  %v1405_v42 = vld [vmem:[#allocation2 + $0xe] sm:$0x3] }
 0x817   :  { %v1105_v43 = vpop.permute.xlu0 %1104 }
 0x818   :  { %v1107_v44 = vmul.f32 %v4971_v27, %v1105_v43 }
 0x81a   :  { %v5582_v30 = vpack.c.bf16 %v1107_v44, %v1107_v44 }
 0x81b   :  { %v1034_v45 = vpop.permute.xlu1 %1033 }
 0x81c   :  { %v1036_v46 = vmul.f32 %v4973_v33, %v1034_v45  ;;  %1222 = vrot.lane.b32.xlu0 %v5582_v30, %s5224_s16 }
 0x81e   :  { %v5586_v47 = vpack.c.bf16 %v1036_v46, %v1036_v46 }
 0x820   :  { %1151 = vrot.lane.b32.xlu1 %v5586_v47, %s5224_s16 }
 0x88e   :  { %v1223_v48 = vpop.permute.xlu0 %1222 }
 0x88f   :  { %4663 = vmatmul.mubr.msk.bf16.vlgmr.msra.gmra.mrb[28].mxu1 %vm593_vm3, %v1223_v48 }
 0x890   :  { %4675 = vmatpush3.bf16.msra.mxu1 %v5436_v18  ;;  %4678 = vmatprep.mubr.msk.bf16.mxu1 %vm5222_vm2, %v5221_v20 }
 0x891   :  { %4676 = vmatprep.subr.bf16.mxu1 %v5221_v20 }
 0x892   :  { %v1152_v49 = vpop.permute.xlu1 %1151 }
 0x893   :  { %4655 = vmatmul.mubr.msk.bf16.vlgmr.msra.gmra.mrb[28].mxu0 %vm593_vm3, %v1152_v49  ;;  %v1334_v49 = vld [vmem:[#allocation2 + $0x10] sm:$0x3] }
 0x894   :  { %4677 = vmatpush3.bf16.msra.mxu1 %v5455_v22  ;;  %4667 = vmatpush3.bf16.msra.mxu0 %v5447_v21 }
 0x895   :  { %4668 = vmatprep.subr.bf16.mxu0 %v5221_v20  ;;  %4670 = vmatprep.mubr.msk.bf16.mxu0 %vm5222_vm2, %v5221_v20 }
 0x896   :  { %4690 = vmatprep.subr.bf16.mxu1 %v5221_v20 }
 0x898   :  { %4669 = vmatpush3.bf16.msra.mxu0 %v5464_v23 }
 0x899   :  { %4682 = vmatprep.subr.bf16.mxu0 %v5221_v20 }
 0x962   :  { %v1261_v51 = vpop.f32.mrb[28].mxu1 }
 0x963   :  { %v1267_v52 = vadd.f32 %v1261_v51, %v1221_v50  ;;  %v4664_v53 = vpop.f32.mrb[29].mxu1 }
 0x964   :  { %v1264_v54 = vpop.f32.mrb[30].mxu1 }
 0x965   :  { %4978 = vtanh.f32 %v1267_v52  ;;  %v4665_v56 = vpop.f32.mrb[31].mxu1  ;;  %v4410_v3 = vmul.f32 -1.442695, %v1267_v52 }
 0x966   :  { %v1190_v59 = vpop.f32.mrb[28].mxu0 }
 0x967   :  { %v1196_v60 = vadd.f32 %v1190_v59, %v1150_v57  ;;  %v4656_v61 = vpop.f32.mrb[29].mxu0 }
 0x968   :  { %v1193_v62 = vpop.f32.mrb[30].mxu0 }
 0x969   :  { %4980 = vtanh.f32 %v1196_v60  ;;  %v4657_v63 = vpop.f32.mrb[31].mxu0  ;;  %v4408_v4 = vmul.f32 -1.442695, %v1196_v60 }
 0x96a   :  { %4982 = vpow2.f32 %v4410_v3 }
 0x96b   :  { %4984 = vpow2.f32 %v4408_v4 }
 0x96f   :  { %v4979_v0 = vpop.eup %4978 }
 0x970   :  { %1277 = vrot.lane.b32.xlu0 %v4979_v0, %s5223_s4 }
 0x973   :  { %v4981_v1 = vpop.eup %4980 }
 0x974   :  { %1206 = vrot.lane.b32.xlu1 %v4981_v1, %s5223_s4  ;;  %v4983_v6 = vpop.eup %4982 }
 0x975   :  { %v1271_v7 = vadd.f32 1.0, %v4983_v6  ;;  %v4985_v9 = vpop.eup %4984 }
 0x976   :  { %v1200_v10 = vadd.f32 1.0, %v4985_v9 }
 0x977   :  { %4986 = vrcp.f32 %v1271_v7 }
 0x978   :  { %4988 = vrcp.f32 %v1200_v10 }
 0x981   :  { %v4987_v11 = vpop.eup %4986 }
 0x982   :  { %v4989_v14 = vpop.eup %4988  ;;  %v1275_v17 = vmul.f32 %v4987_v11, %v5573_v38 }
 0x983   :  { %v1204_v27 = vmul.f32 %v4989_v14, %v5577_v41 }
 0x9e2   :  { %v1278_v12 = vpop.permute.xlu0 %1277 }
 0x9e3   :  { %v1280_v13 = vmul.f32 %v4987_v11, %v1278_v12 }
 0x9e5   :  { %1282 = vrot.lane.b32.xlu0 %v1280_v13, %s5223_s4 }
 0x9e6   :  { %v1207_v15 = vpop.permute.xlu1 %1206 }
 0x9e7   :  { %v1209_v16 = vmul.f32 %v4989_v14, %v1207_v15 }
 0x9e9   :  { %1211 = vrot.lane.b32.xlu1 %v1209_v16, %s5223_s4 }
 0xa57   :  { %v1283_v19 = vpop.permute.xlu0 %1282 }
 0xa58   :  { %v5609_v24 = vadd.f32 %v1283_v19, %v1275_v17 }
 0xa5a   :  { %4990 = vtanh.f32 %v5609_v24 }
 0xa5b   :  { %v1212_v31 = vpop.permute.xlu1 %1211 }
 0xa5c   :  { %v5613_v32 = vadd.f32 %v1212_v31, %v1204_v27 }
 0xa5e   :  { %4992 = vtanh.f32 %v5613_v32 }
 0xa64   :  { %v4991_v33 = vpop.eup %4990 }
 0xa65   :  { %1288 = vrot.lane.b32.xlu0 %v4991_v33, %s5223_s4 }
 0xa68   :  { %v4993_v34 = vpop.eup %4992 }
 0xa69   :  { %1217 = vrot.lane.b32.xlu1 %v4993_v34, %s5223_s4 }
 0xad7   :  { %v1289_v35 = vpop.permute.xlu0 %1288 }
 0xad8   :  { %v1291_v36 = vmul.f32 %v4987_v11, %v1289_v35 }
 0xada   :  { %v5618_v37 = vpack.c.bf16 %v1291_v36, %v1291_v36 }
 0xadb   :  { %v1218_v38 = vpop.permute.xlu1 %1217 }
 0xadc   :  { %v1220_v39 = vmul.f32 %v4989_v14, %v1218_v38  ;;  %1406 = vrot.lane.b32.xlu0 %v5618_v37, %s5224_s16 }
 0xade   :  { %v5622_v40 = vpack.c.bf16 %v1220_v39, %v1220_v39 }
 0xae0   :  { %1335 = vrot.lane.b32.xlu1 %v5622_v40, %s5224_s16 }
 0xb4e   :  { %v1407_v41 = vpop.permute.xlu0 %1406 }
 0xb4f   :  { %4679 = vmatmul.mubr.msk.bf16.vlgmr.msra.gmra.mrb[32].mxu1 %vm593_vm3, %v1407_v41 }
 0xb50   :  { %4691 = vmatpush3.bf16.msra.mxu1 %v5436_v18  ;;  %4694 = vmatprep.mubr.msk.bf16.mxu1 %vm5222_vm2, %v5221_v20 }
 0xb51   :  { %4692 = vmatprep.subr.bf16.mxu1 %v5221_v20 }
 0xb52   :  { %v1336_v29 = vpop.permute.xlu1 %1335 }
 0xb53   :  { %4671 = vmatmul.mubr.msk.bf16.vlgmr.msra.gmra.mrb[32].mxu0 %vm593_vm3, %v1336_v29 }
 0xb54   :  { %4693 = vmatpush3.bf16.msra.mxu1 %v5455_v22  ;;  %4683 = vmatpush3.bf16.msra.mxu0 %v5447_v21 }
 0xb55   :  { %4684 = vmatprep.subr.bf16.mxu0 %v5221_v20  ;;  %4686 = vmatprep.mubr.msk.bf16.mxu0 %vm5222_vm2, %v5221_v20 }
 0xb56   :  { %4706 = vmatprep.subr.bf16.mxu1 %v5221_v20 }
 0xb58   :  { %4685 = vmatpush3.bf16.msra.mxu0 %v5464_v23 }
 0xb59   :  { %4698 = vmatprep.subr.bf16.mxu0 %v5221_v20 }
 0xc22   :  { %v1445_v43 = vpop.f32.mrb[32].mxu1 }
 0xc23   :  { %v1451_v44 = vadd.f32 %v1445_v43, %v1405_v42  ;;  %v4680_v45 = vpop.f32.mrb[33].mxu1  ;;  %v1518_v42 = vld [vmem:[#allocation2 + $0x14] sm:$0x3] }
 0xc24   :  { %v1448_v46 = vpop.f32.mrb[34].mxu1 }
 0xc25   :  { %4994 = vtanh.f32 %v1451_v44  ;;  %v4681_v48 = vpop.f32.mrb[35].mxu1  ;;  %v4414_v59 = vmul.f32 -1.442695, %v1451_v44 }
 0xc26   :  { %v1374_v50 = vpop.f32.mrb[32].mxu0 }
 0xc27   :  { %v1380_v51 = vadd.f32 %v1374_v50, %v1334_v49  ;;  %v4672_v52 = vpop.f32.mrb[33].mxu0 }
 0xc28   :  { %v1377_v53 = vpop.f32.mrb[34].mxu0 }
 0xc29   :  { %4996 = vtanh.f32 %v1380_v51  ;;  %v4673_v54 = vpop.f32.mrb[35].mxu0  ;;  %v4412_v60 = vmul.f32 -1.442695, %v1380_v51 }
 0xc2a   :  { %4998 = vpow2.f32 %v4414_v59 }
 0xc2b   :  { %5000 = vpow2.f32 %v4412_v60 }
 0xc2f   :  { %v4995_v56 = vpop.eup %4994 }
 0xc30   :  { %1461 = vrot.lane.b32.xlu0 %v4995_v56, %s5223_s4 }
 0xc33   :  { %v4997_v57 = vpop.eup %4996 }
 0xc34   :  { %1390 = vrot.lane.b32.xlu1 %v4997_v57, %s5223_s4  ;;  %v4999_v61 = vpop.eup %4998 }
 0xc35   :  { %v1455_v62 = vadd.f32 1.0, %v4999_v61  ;;  %v5001_v63 = vpop.eup %5000 }
 0xc36   :  { %v1384_v0 = vadd.f32 1.0, %v5001_v63 }
 0xc37   :  { %5002 = vrcp.f32 %v1455_v62 }
 0xc38   :  { %5004 = vrcp.f32 %v1384_v0 }
 0xc41   :  { %v5003_v1 = vpop.eup %5002 }
 0xc42   :  { %v5005_v6 = vpop.eup %5004  ;;  %v1459_v10 = vmul.f32 %v5003_v1, %v5609_v24 }
 0xc43   :  { %v1388_v13 = vmul.f32 %v5005_v6, %v5613_v32 }
 0xca2   :  { %v1462_v3 = vpop.permute.xlu0 %1461 }
 0xca3   :  { %v1464_v4 = vmul.f32 %v5003_v1, %v1462_v3 }
 0xca5   :  { %1466 = vrot.lane.b32.xlu0 %v1464_v4, %s5223_s4 }
 0xca6   :  { %v1391_v7 = vpop.permute.xlu1 %1390 }
 0xca7   :  { %v1393_v9 = vmul.f32 %v5005_v6, %v1391_v7 }
 0xca9   :  { %1395 = vrot.lane.b32.xlu1 %v1393_v9, %s5223_s4 }
 0xd17   :  { %v1467_v11 = vpop.permute.xlu0 %1466 }
 0xd18   :  { %v5645_v12 = vadd.f32 %v1467_v11, %v1459_v10 }
 0xd1a   :  { %5006 = vtanh.f32 %v5645_v12 }
 0xd1b   :  { %v1396_v14 = vpop.permute.xlu1 %1395 }
 0xd1c   :  { %v5649_v15 = vadd.f32 %v1396_v14, %v1388_v13 }
 0xd1e   :  { %5008 = vtanh.f32 %v5649_v15 }
 0xd24   :  { %v5007_v16 = vpop.eup %5006 }
 0xd25   :  { %1472 = vrot.lane.b32.xlu0 %v5007_v16, %s5223_s4 }
 0xd28   :  { %v5009_v17 = vpop.eup %5008 }
 0xd29   :  { %1401 = vrot.lane.b32.xlu1 %v5009_v17, %s5223_s4 }
 0xd97   :  { %v1473_v19 = vpop.permute.xlu0 %1472 }
 0xd98   :  { %v1475_v24 = vmul.f32 %v5003_v1, %v1473_v19  ;;  %v5190_v19 = vld [vmem:[%s6299_s3] sm:$0xff]  }
 0xd9a   :  { %v5654_v27 = vpack.c.bf16 %v1475_v24, %v1475_v24 }
 0xd9b   :  { %v1402_v31 = vpop.permute.xlu1 %1401 }
 0xd9c   :  { %v1404_v33 = vmul.f32 %v5005_v6, %v1402_v31  ;;  %1590 = vrot.lane.b32.xlu0 %v5654_v27, %s5224_s16  ;;  %v5191_v31 = vld [vmem:[%s6298_s2] sm:$0xff]  }
 0xd9e   :  { %v5658_v32 = vpack.c.bf16 %v1404_v33, %v1404_v33  ;;  %v1773_v33 = vld [vmem:[#allocation2 + $0x6] sm:$0x3] }
 0xda0   :  { %1519 = vrot.lane.b32.xlu1 %v5658_v32, %s5224_s16 }
 0xe0e   :  { %v1591_v34 = vpop.permute.xlu0 %1590 }
 0xe0f   :  { %4695 = vmatmul.mubr.msk.bf16.vlgmr.msra.gmra.mrb[36].mxu1 %vm593_vm3, %v1591_v34 }
 0xe10   :  { %4707 = vmatpush3.bf16.msra.mxu1 %v5436_v18  ;;  %4710 = vmatprep.mubr.msk.bf16.mxu1 %vm5222_vm2, %v5221_v20  ;;  %v1589_v18 = vld [vmem:[#allocation2 + $0xa] sm:$0x3] }
 0xe11   :  { %4708 = vmatprep.subr.bf16.mxu1 %v5221_v20 }
 0xe12   :  { %v1520_v35 = vpop.permute.xlu1 %1519 }
 0xe13   :  { %4687 = vmatmul.mubr.msk.bf16.vlgmr.msra.gmra.mrb[36].mxu0 %vm593_vm3, %v1520_v35 }
 0xe14   :  { %4709 = vmatpush3.bf16.msra.mxu1 %v5455_v22  ;;  %4699 = vmatpush3.bf16.msra.mxu0 %v5447_v21 }
 0xe15   :  { %4700 = vmatprep.subr.bf16.mxu0 %v5221_v20  ;;  %4702 = vmatprep.mubr.msk.bf16.mxu0 %vm5222_vm2, %v5221_v20 }
 0xe16   :  { %4722 = vmatprep.subr.bf16.mxu1 %v5221_v20 }
 0xe18   :  { %4701 = vmatpush3.bf16.msra.mxu0 %v5464_v23 }
 0xe19   :  { %4714 = vmatprep.subr.bf16.mxu0 %v5221_v20 }
 0xee2   :  { %v1629_v36 = vpop.f32.mrb[36].mxu1 }
 0xee3   :  { %v1635_v38 = vadd.f32 %v1629_v36, %v1589_v18  ;;  %v4696_v39 = vpop.f32.mrb[37].mxu1 }
 0xee4   :  { %v1632_v41 = vpop.f32.mrb[38].mxu1 }
 0xee5   :  { %5010 = vtanh.f32 %v1635_v38  ;;  %v4697_v29 = vpop.f32.mrb[39].mxu1  ;;  %v4418_v50 = vmul.f32 -1.442695, %v1635_v38 }
 0xee6   :  { %v1558_v21 = vpop.f32.mrb[36].mxu0 }
 0xee7   :  { %v1564_v43 = vadd.f32 %v1558_v21, %v1518_v42  ;;  %v4688_v44 = vpop.f32.mrb[37].mxu0 }
 0xee8   :  { %v1561_v45 = vpop.f32.mrb[38].mxu0 }
 0xee9   :  { %5012 = vtanh.f32 %v1564_v43  ;;  %v4689_v46 = vpop.f32.mrb[39].mxu0  ;;  %v4416_v51 = vmul.f32 -1.442695, %v1564_v43 }
 0xeea   :  { %5014 = vpow2.f32 %v4418_v50 }
 0xeeb   :  { %5016 = vpow2.f32 %v4416_v51 }
 0xeef   :  { %v5011_v48 = vpop.eup %5010 }
 0xef0   :  { %1645 = vrot.lane.b32.xlu0 %v5011_v48, %s5223_s4 }
 0xef3   :  { %v5013_v49 = vpop.eup %5012 }
 0xef4   :  { %1574 = vrot.lane.b32.xlu1 %v5013_v49, %s5223_s4  ;;  %v5015_v52 = vpop.eup %5014 }
 0xef5   :  { %v1639_v53 = vadd.f32 1.0, %v5015_v52  ;;  %v5017_v54 = vpop.eup %5016 }
 0xef6   :  { %v1568_v56 = vadd.f32 1.0, %v5017_v54 }
 0xef7   :  { %5018 = vrcp.f32 %v1639_v53 }
 0xef8   :  { %5020 = vrcp.f32 %v1568_v56 }
 0xf01   :  { %v5019_v57 = vpop.eup %5018 }
 0xf02   :  { %v5021_v61 = vpop.eup %5020  ;;  %v1643_v0 = vmul.f32 %v5019_v57, %v5645_v12 }
 0xf03   :  { %v1572_v4 = vmul.f32 %v5021_v61, %v5649_v15 }
 0xf62   :  { %v1646_v59 = vpop.permute.xlu0 %1645 }
 0xf63   :  { %v1648_v60 = vmul.f32 %v5019_v57, %v1646_v59 }
 0xf65   :  { %1650 = vrot.lane.b32.xlu0 %v1648_v60, %s5223_s4 }
 0xf66   :  { %v1575_v62 = vpop.permute.xlu1 %1574 }
 0xf67   :  { %v1577_v63 = vmul.f32 %v5021_v61, %v1575_v62 }
 0xf69   :  { %1579 = vrot.lane.b32.xlu1 %v1577_v63, %s5223_s4 }
 0xfd7   :  { %v1651_v1 = vpop.permute.xlu0 %1650 }
 0xfd8   :  { %v5681_v3 = vadd.f32 %v1651_v1, %v1643_v0 }
 0xfda   :  { %5022 = vtanh.f32 %v5681_v3 }
 0xfdb   :  { %v1580_v6 = vpop.permute.xlu1 %1579 }
 0xfdc   :  { %v5685_v7 = vadd.f32 %v1580_v6, %v1572_v4 }
 0xfde   :  { %5024 = vtanh.f32 %v5685_v7 }
 0xfe4   :  { %v5023_v9 = vpop.eup %5022 }
 0xfe5   :  { %1656 = vrot.lane.b32.xlu0 %v5023_v9, %s5223_s4 }
 0xfe8   :  { %v5025_v10 = vpop.eup %5024 }
 0xfe9   :  { %1585 = vrot.lane.b32.xlu1 %v5025_v10, %s5223_s4 }
0x1057   :  { %v1657_v11 = vpop.permute.xlu0 %1656 }
0x1058   :  { %v1659_v12 = vmul.f32 %v5019_v57, %v1657_v11 }
0x105a   :  { %v5690_v13 = vpack.c.bf16 %v1659_v12, %v1659_v12 }
0x105b   :  { %v1586_v14 = vpop.permute.xlu1 %1585 }
0x105c   :  { %v1588_v16 = vmul.f32 %v5021_v61, %v1586_v14  ;;  %1774 = vrot.lane.b32.xlu0 %v5690_v13, %s5224_s16 }
0x105e   :  { %v5694_v15 = vpack.c.bf16 %v1588_v16, %v1588_v16  ;;  %v1957_v16 = vld [vmem:[#allocation2 + $0x2] sm:$0x3] }
0x1060   :  { %1703 = vrot.lane.b32.xlu1 %v5694_v15, %s5224_s16 }
0x10ce   :  { %v1775_v17 = vpop.permute.xlu0 %1774 }
0x10cf   :  { %4711 = vmatmul.mubr.msk.bf16.vlgmr.msra.gmra.mrb[40].mxu1 %vm593_vm3, %v1775_v17 }
0x10d0   :  { %4723 = vmatpush3.bf16.msra.mxu1 %v5190_v19  ;;  %4726 = vmatprep.mubr.msk.bf16.mxu1 %vm5222_vm2, %v5221_v20 }
0x10d1   :  { %4724 = vmatprep.subr.bf16.mxu1 %v5221_v20 }
0x10d2   :  { %v1704_v24 = vpop.permute.xlu1 %1703 }
0x10d3   :  { %4703 = vmatmul.mubr.msk.bf16.vlgmr.msra.gmra.mrb[40].mxu0 %vm593_vm3, %v1704_v24 }
0x10d4   :  { %4725 = vmatpush3.bf16.msra.mxu1 %v5455_v22  ;;  %4715 = vmatpush3.bf16.msra.mxu0 %v5191_v31  ;;  %v1702_v22 = vld [vmem:[#allocation2 + $0x18] sm:$0x3] }
0x10d5   :  { %4716 = vmatprep.subr.bf16.mxu0 %v5221_v20  ;;  %4718 = vmatprep.mubr.msk.bf16.mxu0 %vm5222_vm2, %v5221_v20 }
0x10d8   :  { %4717 = vmatpush3.bf16.msra.mxu0 %v5464_v23 }
0x11a2   :  { %v1813_v34 = vpop.f32.mrb[40].mxu1 }
0x11a3   :  { %v1819_v35 = vadd.f32 %v1813_v34, %v1773_v33  ;;  %v4712_v18 = vpop.f32.mrb[41].mxu1  ;;  %v1886_v34 = vld [vmem:[#allocation2 + $0x1c] sm:$0x3] }
0x11a4   :  { %v1816_v36 = vpop.f32.mrb[42].mxu1 }
0x11a5   :  { %5026 = vtanh.f32 %v1819_v35  ;;  %v4713_v38 = vpop.f32.mrb[43].mxu1  ;;  %v4422_v23 = vmul.f32 -1.442695, %v1819_v35 }
0x11a6   :  { %v1742_v39 = vpop.f32.mrb[40].mxu0 }
0x11a7   :  { %v1748_v41 = vadd.f32 %v1742_v39, %v1702_v22  ;;  %v4704_v29 = vpop.f32.mrb[41].mxu0 }
0x11a8   :  { %v1745_v42 = vpop.f32.mrb[42].mxu0 }
0x11a9   :  { %5028 = vtanh.f32 %v1748_v41  ;;  %v4705_v21 = vpop.f32.mrb[43].mxu0  ;;  %v4420_v45 = vmul.f32 -1.442695, %v1748_v41 }
0x11aa   :  { %5030 = vpow2.f32 %v4422_v23 }
0x11ab   :  { %5032 = vpow2.f32 %v4420_v45 }
0x11af   :  { %v5027_v43 = vpop.eup %5026 }
0x11b0   :  { %1829 = vrot.lane.b32.xlu0 %v5027_v43, %s5223_s4 }
0x11b3   :  { %v5029_v44 = vpop.eup %5028 }
0x11b4   :  { %1758 = vrot.lane.b32.xlu1 %v5029_v44, %s5223_s4  ;;  %v5031_v46 = vpop.eup %5030 }
0x11b5   :  { %v1823_v48 = vadd.f32 1.0, %v5031_v46  ;;  %v5033_v49 = vpop.eup %5032 }
0x11b6   :  { %v1752_v50 = vadd.f32 1.0, %v5033_v49 }
0x11b7   :  { %5034 = vrcp.f32 %v1823_v48 }
0x11b8   :  { %5036 = vrcp.f32 %v1752_v50 }
0x11c1   :  { %v5035_v51 = vpop.eup %5034 }
0x11c2   :  { %v5037_v54 = vpop.eup %5036  ;;  %v1827_v59 = vmul.f32 %v5035_v51, %v5681_v3 }
0x11c3   :  { %v1756_v62 = vmul.f32 %v5037_v54, %v5685_v7 }
0x1222   :  { %v1830_v52 = vpop.permute.xlu0 %1829 }
0x1223   :  { %v1832_v53 = vmul.f32 %v5035_v51, %v1830_v52 }
0x1225   :  { %1834 = vrot.lane.b32.xlu0 %v1832_v53, %s5223_s4 }
0x1226   :  { %v1759_v56 = vpop.permute.xlu1 %1758 }
0x1227   :  { %v1761_v57 = vmul.f32 %v5037_v54, %v1759_v56  ;;  %v5225_v56 = vmov 1966171168  }
0x1229   :  { %1763 = vrot.lane.b32.xlu1 %v1761_v57, %s5223_s4  ;;  %v743_v57 = vunpack.c.l.s4 %v5225_v56 }
0x1297   :  { %v1835_v60 = vpop.permute.xlu0 %1834 }
0x1298   :  { %v1837_v61 = vadd.f32 %v1835_v60, %v1827_v59 }
0x129a   :  { %5038 = vtanh.f32 %v1837_v61 }
0x129b   :  { %v1764_v63 = vpop.permute.xlu1 %1763 }
0x129c   :  { %v1766_v0 = vadd.f32 %v1764_v63, %v1756_v62  ;;  %v5749_v62 = vld [vmem:[%s6301_s5 + $0x4] ss:$8 sps:$4 sm:$0xff]  }
0x129d   :  { %2178 = vmatprep.subr.bf16.mxu1 %v5749_v62 }
0x129e   :  { %5040 = vtanh.f32 %v1766_v0 }
0x12a4   :  { %v5039_v1 = vpop.eup %5038 }
0x12a5   :  { %1840 = vrot.lane.b32.xlu0 %v5039_v1, %s5223_s4  ;;  %v5754_v1 = vld [vmem:[%s6301_s5] ss:$8 sps:$4 sm:$0xff]  }
0x12a8   :  { %v5041_v4 = vpop.eup %5040 }
0x12a9   :  { %1769 = vrot.lane.b32.xlu1 %v5041_v4, %s5223_s4  ;;  %v5766_v4 = vld [vmem:[%s6301_s5 + $0x10] ss:$8 sps:$4 sm:$0xff]  }
0x1317   :  { %v1841_v6 = vpop.permute.xlu0 %1840 }
0x1318   :  { %v1843_v9 = vmul.f32 %v5035_v51, %v1841_v6 }
0x131a   :  { %v5722_v10 = vpack.c.bf16 %v1843_v9, %v1843_v9 }
0x131b   :  { %v1770_v11 = vpop.permute.xlu1 %1769 }
0x131c   :  { %v1772_v3 = vmul.f32 %v5037_v54, %v1770_v11  ;;  %1958 = vrot.lane.b32.xlu0 %v5722_v10, %s5224_s16 }
0x131e   :  { %v5726_v12 = vpack.c.bf16 %v1772_v3, %v1772_v3 }
0x1320   :  { %1887 = vrot.lane.b32.xlu1 %v5726_v12, %s5224_s16 }
0x138e   :  { %v1959_v7 = vpop.permute.xlu0 %1958 }
0x138f   :  { %4727 = vmatmul.mubr.msk.bf16.vlgmr.msra.gmra.mrb[44].mxu1 %vm593_vm3, %v1959_v7 }
0x1390   :  { %2210 = vmatprep.mubr.bf16.mxu1 %v5220_v2  ;;  %2179 = vmatpush1.bf16.msra.mxu1 %v5754_v1 }
0x1392   :  { %v1888_v14 = vpop.permute.xlu1 %1887 }
0x1393   :  { %4719 = vmatmul.mubr.msk.bf16.vlgmr.msra.gmra.mrb[44].mxu0 %vm593_vm3, %v1888_v14 }
0x1394   :  { %2146 = vmatprep.mubr.bf16.mxu0 %v5220_v2 }
0x1462   :  { %v1997_v17 = vpop.f32.mrb[44].mxu1 }
0x1463   :  { %v2003_v19 = vadd.f32 %v1997_v17, %v1957_v16  ;;  %v4728_v24 = vpop.f32.mrb[45].mxu1 }
0x1464   :  { %v2000_v31 = vpop.f32.mrb[46].mxu1 }
0x1465   :  { %5042 = vtanh.f32 %v2003_v19  ;;  %v4729_v33 = vpop.f32.mrb[47].mxu1  ;;  %v4426_v29 = vmul.f32 -1.442695, %v2003_v19 }
0x1466   :  { %v1926_v35 = vpop.f32.mrb[44].mxu0 }
0x1467   :  { %v1932_v18 = vadd.f32 %v1926_v35, %v1886_v34  ;;  %v4720_v36 = vpop.f32.mrb[45].mxu0  ;;  %v2073_v35 = vld [vmem:[%s6301_s5 + $0x20] sm:$0xff] }
0x1468   :  { %v1929_v38 = vpop.f32.mrb[46].mxu0 }
0x1469   :  { %5044 = vtanh.f32 %v1932_v18  ;;  %v4721_v22 = vpop.f32.mrb[47].mxu0  ;;  %v4424_v42 = vmul.f32 -1.442695, %v1932_v18  ;;  %v2074_v18 = vld [vmem:[%s6301_s5 + $0x28] sm:$0xff]  ;;  %v2075_v38 = vld [vmem:[%s6301_s5 + $0x30] sm:$0xff] }
0x146a   :  { %5046 = vpow2.f32 %v4426_v29  ;;  %v5820_v36 = vcombine.low %v2073_v35, %v2074_v18  ;;  %v2076_v22 = vld [vmem:[%s6301_s5 + $0x38] sm:$0xff] }
0x146b   :  { %5048 = vpow2.f32 %v4424_v42 }
0x146f   :  { %v5043_v39 = vpop.eup %5042 }
0x1470   :  { %2013 = vrot.lane.b32.xlu0 %v5043_v39, %s5223_s4 }
0x1473   :  { %v5045_v41 = vpop.eup %5044 }
0x1474   :  { %1942 = vrot.lane.b32.xlu1 %v5045_v41, %s5223_s4  ;;  %v5047_v21 = vpop.eup %5046  ;;  %v5835_v41 = vcombine.low %v2075_v38, %v2076_v22 }
0x1475   :  { %v2007_v43 = vadd.f32 1.0, %v5047_v21  ;;  %v5049_v44 = vpop.eup %5048 }
0x1476   :  { %v1936_v23 = vadd.f32 1.0, %v5049_v44 }
0x1477   :  { %5050 = vrcp.f32 %v2007_v43 }
0x1478   :  { %5052 = vrcp.f32 %v1936_v23 }
0x1481   :  { %v5736_v45 = vpop.eup %5050 }
0x1482   :  { %v5740_v49 = vpop.eup %5052  ;;  %v2011_v52 = vmul.f32 %v5736_v45, %v1837_v61  ;;  %v744_v61 = vunpack.c.0.s8 %v743_v57 }
0x1483   :  { %v1940_v59 = vmul.f32 %v5740_v49, %v1766_v0  ;;  %v5761_v0 = vld [vmem:[%s6301_s5 + $0x14] ss:$8 sps:$4 sm:$0xff]  }
0x1484   :  { %v5769_v6 = vsub.s32 %v744_v61, %v5487_v25  ;;  %2180 = vmatprep.subr.bf16.mxu1 %v5761_v0 }
0x1485   :  { %2181 = vmatpush1.bf16.msra.mxu1 %v5766_v4 }
0x1486   :  { %v748_v9 = vrot.slane %v5514_v8, %v5769_v6  ;;  %2282 = vmatprep.subr.bf16.mxu1 %v5749_v62  ;;  %v932_v3 = vrot.slane %v5550_v58, %v5769_v6  ;;  %v1116_v16 = vrot.slane %v5586_v47, %v5769_v6  ;;  %v1300_v17 = vrot.slane %v5622_v40, %v5769_v6 }
0x1487   :  { %v1321_v58 = vrot.slane %v5618_v37, %v5769_v6  ;;  %v1137_v47 = vrot.slane %v5582_v30, %v5769_v6  ;;  %v953_v40 = vrot.slane %v5546_v55, %v5769_v6  ;;  %v5804_v37 = vld [vmem:[%s6301_s5 + $0x24] ss:$8 sps:$4 sm:$0xff]   ;;  %v769_v30 = vrot.slane %v5510_v5, %v5769_v6  ;;  %v5825_v5 = vld [vmem:[%s6301_s5 + $0x34] ss:$8 sps:$4 sm:$0xff]  }
0x1488   :  { %v755_v7 = vrot.slane %v748_v9, %v5769_v6  ;;  %v939_v8 = vrot.slane %v932_v3, %v5769_v6  ;;  %v1123_v19 = vrot.slane %v1116_v16, %v5769_v6  ;;  %v1307_v24 = vrot.slane %v1300_v17, %v5769_v6  ;;  %2114 = vmatprep.subr.bf16.mxu0 %v5804_v37 }
0x1489   :  { %v1328_v31 = vrot.slane %v1321_v58, %v5769_v6  ;;  %v1144_v33 = vrot.slane %v1137_v47, %v5769_v6  ;;  %v960_v34 = vrot.slane %v953_v40, %v5769_v6  ;;  %v776_v55 = vrot.slane %v769_v30, %v5769_v6  ;;  %2115 = vmatpush1.bf16.msra.mxu0 %v5820_v36 }
0x148a   :  { %2116 = vmatprep.subr.bf16.mxu0 %v5825_v5  ;;  %v1873_v44 = vrot.slane %v5722_v10, %v5769_v6  ;;  %v1505_v10 = vrot.slane %v5654_v27, %v5769_v6  ;;  %v1852_v61 = vrot.slane %v5726_v12, %v5769_v6 }
0x148c   :  { %v1859_v12 = vrot.slane %v1852_v61, %v5769_v6 }
0x148d   :  { %2117 = vmatpush1.bf16.msra.mxu0 %v5835_v41 }
0x148e   :  { %2238 = vmatprep.subr.bf16.mxu0 %v5804_v37 }
0x14e2   :  { %v2014_v46 = vpop.permute.xlu0 %2013 }
0x14e3   :  { %v2016_v48 = vmul.f32 %v5736_v45, %v2014_v46 }
0x14e5   :  { %2018 = vrot.lane.b32.xlu0 %v2016_v48, %s5223_s4  ;;  %v1880_v48 = vrot.slane %v1873_v44, %v5769_v6 }
0x14e6   :  { %v1943_v50 = vpop.permute.xlu1 %1942 }
0x14e7   :  { %v1945_v51 = vmul.f32 %v5740_v49, %v1943_v50 }
0x14e9   :  { %1947 = vrot.lane.b32.xlu1 %v1945_v51, %s5223_s4 }
0x1557   :  { %v2019_v53 = vpop.permute.xlu0 %2018 }
0x1558   :  { %v2021_v54 = vadd.f32 %v2019_v53, %v2011_v52  ;;  %v1484_v53 = vrot.slane %v5658_v32, %v5769_v6  ;;  %v1668_v32 = vrot.slane %v5694_v15, %v5769_v6 }
0x155a   :  { %5054 = vtanh.f32 %v2021_v54  ;;  %v1512_v54 = vrot.slane %v1505_v10, %v5769_v6 }
0x155b   :  { %v1948_v60 = vpop.permute.xlu1 %1947 }
0x155c   :  { %v1950_v63 = vadd.f32 %v1948_v60, %v1940_v59  ;;  %v1491_v60 = vrot.slane %v1484_v53, %v5769_v6 }
0x155e   :  { %5056 = vtanh.f32 %v1950_v63 }
0x1564   :  { %v5055_v11 = vpop.eup %5054 }
0x1565   :  { %2024 = vrot.lane.b32.xlu0 %v5055_v11, %s5223_s4  ;;  %v1675_v11 = vrot.slane %v1668_v32, %v5769_v6 }
0x1568   :  { %v5057_v14 = vpop.eup %5056 }
0x1569   :  { %1953 = vrot.lane.b32.xlu1 %v5057_v14, %s5223_s4  ;;  %756 = vrot.lane.b32.xlu0 %v755_v7, %s5224_s16 }
0x156d   :  { %940 = vrot.lane.b32.xlu0 %v939_v8, %s5224_s16 }
0x1571   :  { %1124 = vrot.lane.b32.xlu0 %v1123_v19, %s5224_s16 }
0x1575   :  { %1308 = vrot.lane.b32.xlu0 %v1307_v24, %s5224_s16 }
0x1579   :  { %1329 = vrot.lane.b32.xlu0 %v1328_v31, %s5224_s16 }
0x157d   :  { %1145 = vrot.lane.b32.xlu0 %v1144_v33, %s5224_s16 }
0x1581   :  { %961 = vrot.lane.b32.xlu0 %v960_v34, %s5224_s16 }
0x1585   :  { %777 = vrot.lane.b32.xlu0 %v776_v55, %s5224_s16 }
0x15d7   :  { %v2025_v39 = vpop.permute.xlu0 %2024 }
0x15d8   :  { %v2027_v29 = vmul.f32 %v5736_v45, %v2025_v39  ;;  %v1689_v45 = vrot.slane %v5690_v13, %v5769_v6 }
0x15da   :  { %v2049_v42 = vpack.c.bf16 %v2027_v29, %v2027_v29  ;;  %v1696_v52 = vrot.slane %v1689_v45, %v5769_v6 }
0x15db   :  { %v757_v21 = vpop.permute.xlu0 %756  ;;  %v1954_v56 = vpop.permute.xlu1 %1953 }
0x15dc   :  { %v2057_v43 = vrot.slane %v2049_v42, %v5769_v6  ;;  %760 = vst.msk [vmem:[#allocation3] sm:$0x1] %vm759_vm4, %v757_v21  ;;  %v1956_v59 = vmul.f32 %v5740_v49, %v1954_v56 }
0x15de   :  { %v2064_v23 = vrot.slane %v2057_v43, %v5769_v6  ;;  %v2028_v9 = vpack.c.bf16 %v1956_v59, %v1956_v59 }
0x15df   :  { %v941_v46 = vpop.permute.xlu0 %940 }
0x15e0   :  { %944 = vst.msk [vmem:[#allocation3 + $0x1] sm:$0x1] %vm759_vm4, %v941_v46  ;;  %2065 = vrot.lane.b32.xlu1 %v2064_v23, %s5224_s16  ;;  %v2036_v3 = vrot.slane %v2028_v9, %v5769_v6 }
0x15e2   :  { %v2043_v14 = vrot.slane %v2036_v3, %v5769_v6 }
0x15e3   :  { %v1125_v50 = vpop.permute.xlu0 %1124  ;;  %v2089_v51 = vld [vmem:[#allocation3] sm:$0x1] }
0x15e4   :  { %1128 = vst.msk [vmem:[#allocation3 + $0x2] sm:$0x1] %vm759_vm4, %v1125_v50  ;;  %1881 = vrot.lane.b32.xlu1 %v1880_v48, %s5224_s16  ;;  %4436 = vmatmul.mubr.msk.bf16.vlgmr.msra.gmra.mrb[48].mxu1 %vm593_vm3, %v2089_v51 }
0x15e5   :  { %2283 = vmatpush1.bf16.msra.mxu1 %v5754_v1  ;;  %2314 = vmatprep.mubr.bf16.mxu1 %v5220_v2 }
0x15e6   :  { %2284 = vmatprep.subr.bf16.mxu1 %v5761_v0 }
0x15e7   :  { %v1309_v13 = vpop.permute.xlu0 %1308  ;;  %v2233_v57 = vld [vmem:[#allocation3 + $0x1] sm:$0x1] }
0x15e8   :  { %1312 = vst.msk [vmem:[#allocation3 + $0x3] sm:$0x1] %vm759_vm4, %v1309_v13  ;;  %1697 = vrot.lane.b32.xlu1 %v1696_v52, %s5224_s16  ;;  %v2077_v13 = vld [vmem:[%s6304_s8] sm:$0x3] }
0x15e9   :  { %2285 = vmatpush1.bf16.msra.mxu1 %v5766_v4  ;;  %v6024_v53 = vrot.slane %v2077_v13, %v51_v26  ;;  %v6028_v56 = vrot.slane %v2077_v13, %v55_v28 }
0x15ea   :  { %2386 = vmatprep.subr.bf16.mxu1 %v5749_v62 }
0x15eb   :  { %v1330_v27 = vpop.permute.xlu0 %1329  ;;  %v2337_v49 = vld [vmem:[#allocation3 + $0x2] sm:$0x1] }
0x15ec   :  { %1333 = vst.msk [vmem:[#allocation4 + $0x4] sm:$0x1] %vm759_vm4, %v1330_v27  ;;  %1513 = vrot.lane.b32.xlu1 %v1512_v54, %s5224_s16  ;;  %4439 = vmatmul.mubr.msk.bf16.vlgmr.msra.gmra.mrb[52].mxu1 %vm593_vm3, %v2233_v57 }
0x15ed   :  { %2387 = vmatpush1.bf16.msra.mxu1 %v5754_v1  ;;  %2418 = vmatprep.mubr.bf16.mxu1 %v5220_v2 }
0x15ee   :  { %2388 = vmatprep.subr.bf16.mxu1 %v5761_v0 }
0x15ef   :  { %v1146_v63 = vpop.permute.xlu0 %1145  ;;  %v2441_v16 = vld [vmem:[#allocation3 + $0x3] sm:$0x1] }
0x15f0   :  { %1149 = vst.msk [vmem:[#allocation4 + $0x5] sm:$0x1] %vm759_vm4, %v1146_v63  ;;  %1492 = vrot.lane.b32.xlu1 %v1491_v60, %s5224_s16 }
0x15f1   :  { %2389 = vmatpush1.bf16.msra.mxu1 %v5766_v4 }
0x15f2   :  { %2490 = vmatprep.subr.bf16.mxu1 %v5749_v62 }
0x15f3   :  { %v962_v15 = vpop.permute.xlu0 %961  ;;  %v2546_v18 = vld [vmem:[#allocation4 + $0x4] sm:$0x1] }
0x15f4   :  { %965 = vst.msk [vmem:[#allocation4 + $0x6] sm:$0x1] %vm759_vm4, %v962_v15  ;;  %1676 = vrot.lane.b32.xlu1 %v1675_v11, %s5224_s16  ;;  %4442 = vmatmul.mubr.msk.bf16.vlgmr.msra.gmra.mrb[56].mxu1 %vm593_vm3, %v2337_v49 }
0x15f5   :  { %2491 = vmatpush1.bf16.msra.mxu1 %v5754_v1  ;;  %2522 = vmatprep.mubr.bf16.mxu1 %v5220_v2 }
0x15f6   :  { %2492 = vmatprep.subr.bf16.mxu1 %v5761_v0 }
0x15f7   :  { %v778_v7 = vpop.permute.xlu0 %777 }
0x15f8   :  { %781 = vst.msk [vmem:[#allocation4 + $0x7] sm:$0x1] %vm759_vm4, %v778_v7  ;;  %1860 = vrot.lane.b32.xlu1 %v1859_v12, %s5224_s16 }
0x15f9   :  { %2493 = vmatpush1.bf16.msra.mxu1 %v5766_v4 }
0x15fa   :  { %2594 = vmatprep.subr.bf16.mxu1 %v5749_v62 }
0x15fc   :  { %2044 = vrot.lane.b32.xlu1 %v2043_v14, %s5224_s16  ;;  %4445 = vmatmul.mubr.msk.bf16.vlgmr.msra.gmra.mrb[60].mxu1 %vm593_vm3, %v2441_v16 }
0x15fd   :  { %2595 = vmatpush1.bf16.msra.mxu1 %v5754_v1  ;;  %2626 = vmatprep.mubr.bf16.mxu1 %v5220_v2 }
0x15fe   :  { %2596 = vmatprep.subr.bf16.mxu1 %v5761_v0 }
0x1601   :  { %2597 = vmatpush1.bf16.msra.mxu1 %v5766_v4 }
0x1602   :  { %2698 = vmatprep.subr.bf16.mxu1 %v5749_v62 }
0x1652   :  { %v2066_v8 = vpop.permute.xlu1 %2065 }
0x1653   :  { %2068 = vst.msk [vmem:[#allocation4] sm:$0x1] %vm759_vm4, %v2066_v8 }
0x1656   :  { %v1882_v6 = vpop.permute.xlu1 %1881 }
0x1657   :  { %1885 = vst.msk [vmem:[#allocation4 + $0x1] sm:$0x1] %vm759_vm4, %v1882_v6 }
0x165a   :  { %v1698_v17 = vpop.permute.xlu1 %1697  ;;  %v2090_v19 = vld [vmem:[#allocation4] sm:$0x1] }
0x165b   :  { %1701 = vst.msk [vmem:[#allocation4 + $0x2] sm:$0x1] %vm759_vm4, %v1698_v17  ;;  %4431 = vmatmul.mubr.msk.bf16.vlgmr.msra.gmra.mrb[48].mxu0 %vm593_vm3, %v2090_v19 }
0x165c   :  { %2239 = vmatpush1.bf16.msra.mxu0 %v5820_v36  ;;  %2270 = vmatprep.mubr.bf16.mxu0 %v5220_v2 }
0x165d   :  { %2240 = vmatprep.subr.bf16.mxu0 %v5825_v5 }
0x165e   :  { %v1514_v58 = vpop.permute.xlu1 %1513  ;;  %v2234_v47 = vld [vmem:[#allocation4 + $0x1] sm:$0x1] }
0x165f   :  { %1517 = vst.msk [vmem:[#allocation4 + $0x3] sm:$0x1] %vm759_vm4, %v1514_v58 }
0x1660   :  { %2241 = vmatpush1.bf16.msra.mxu0 %v5835_v41 }
0x1661   :  { %2342 = vmatprep.subr.bf16.mxu0 %v5804_v37 }
0x1662   :  { %v1493_v24 = vpop.permute.xlu1 %1492  ;;  %v2338_v33 = vld [vmem:[#allocation4 + $0x2] sm:$0x1] }
0x1663   :  { %1496 = vst.msk [vmem:[#allocation3 + $0x4] sm:$0x1] %vm759_vm4, %v1493_v24  ;;  %4438 = vmatmul.mubr.msk.bf16.vlgmr.msra.gmra.mrb[52].mxu0 %vm593_vm3, %v2234_v47 }
0x1664   :  { %2343 = vmatpush1.bf16.msra.mxu0 %v5820_v36  ;;  %2374 = vmatprep.mubr.bf16.mxu0 %v5220_v2 }
0x1665   :  { %2344 = vmatprep.subr.bf16.mxu0 %v5825_v5 }
0x1666   :  { %v1677_v31 = vpop.permute.xlu1 %1676  ;;  %v2442_v55 = vld [vmem:[#allocation4 + $0x3] sm:$0x1] }
0x1667   :  { %1680 = vst.msk [vmem:[#allocation3 + $0x5] sm:$0x1] %vm759_vm4, %v1677_v31 }
0x1668   :  { %2345 = vmatpush1.bf16.msra.mxu0 %v5835_v41 }
0x1669   :  { %2446 = vmatprep.subr.bf16.mxu0 %v5804_v37 }
0x166a   :  { %v1861_v40 = vpop.permute.xlu1 %1860  ;;  %v2545_v30 = vld [vmem:[#allocation3 + $0x4] sm:$0x1] }
0x166b   :  { %1864 = vst.msk [vmem:[#allocation3 + $0x6] sm:$0x1] %vm759_vm4, %v1861_v40  ;;  %4441 = vmatmul.mubr.msk.bf16.vlgmr.msra.gmra.mrb[56].mxu0 %vm593_vm3, %v2338_v33  ;;  %4448 = vmatmul.mubr.msk.bf16.vlgmr.msra.gmra.mrb[64].mxu1 %vm593_vm3, %v2545_v30 }
0x166c   :  { %2447 = vmatpush1.bf16.msra.mxu0 %v5820_v36  ;;  %2699 = vmatpush1.bf16.msra.mxu1 %v5754_v1 }
0x166d   :  { %2448 = vmatprep.subr.bf16.mxu0 %v5825_v5  ;;  %2700 = vmatprep.subr.bf16.mxu1 %v5761_v0 }
0x166e   :  { %v2045_v34 = vpop.permute.xlu1 %2044  ;;  %2478 = vmatprep.mubr.bf16.mxu0 %v5220_v2  ;;  %2730 = vmatprep.mubr.bf16.mxu1 %v5220_v2  ;;  %v2649_v35 = vld [vmem:[#allocation3 + $0x5] sm:$0x1] }
0x166f   :  { %2048 = vst.msk [vmem:[#allocation3 + $0x7] sm:$0x1] %vm759_vm4, %v2045_v34 }
0x1670   :  { %2449 = vmatpush1.bf16.msra.mxu0 %v5835_v41  ;;  %2701 = vmatpush1.bf16.msra.mxu1 %v5766_v4 }
0x1671   :  { %2550 = vmatprep.subr.bf16.mxu0 %v5804_v37  ;;  %2802 = vmatprep.subr.bf16.mxu1 %v5749_v62 }
0x1672   :  { %v2753_v38 = vld [vmem:[#allocation3 + $0x6] sm:$0x1] }
0x1673   :  { %4444 = vmatmul.mubr.msk.bf16.vlgmr.msra.gmra.mrb[60].mxu0 %vm593_vm3, %v2442_v55  ;;  %4451 = vmatmul.mubr.msk.bf16.vlgmr.msra.gmra.mrb[68].mxu1 %vm593_vm3, %v2649_v35 }
0x1674   :  { %2551 = vmatpush1.bf16.msra.mxu0 %v5820_v36  ;;  %2803 = vmatpush1.bf16.msra.mxu1 %v5754_v1 }
0x1675   :  { %2552 = vmatprep.subr.bf16.mxu0 %v5825_v5  ;;  %2804 = vmatprep.subr.bf16.mxu1 %v5761_v0 }
0x1676   :  { %2582 = vmatprep.mubr.bf16.mxu0 %v5220_v2  ;;  %2834 = vmatprep.mubr.bf16.mxu1 %v5220_v2  ;;  %v2857_v22 = vld [vmem:[#allocation3 + $0x7] sm:$0x1] }
0x1678   :  { %2553 = vmatpush1.bf16.msra.mxu0 %v5835_v41  ;;  %2805 = vmatpush1.bf16.msra.mxu1 %v5766_v4 }
0x1679   :  { %2654 = vmatprep.subr.bf16.mxu0 %v5804_v37  ;;  %2906 = vmatprep.subr.bf16.mxu1 %v5749_v62  ;;  %v5962_v62 = vld [vmem:[%s6303_s7] sm:$0xff]  }
0x167b   :  { %4447 = vmatmul.mubr.msk.bf16.vlgmr.msra.gmra.mrb[64].mxu0 %vm593_vm3, %v2546_v18  ;;  %4454 = vmatmul.mubr.msk.bf16.vlgmr.msra.gmra.mrb[72].mxu1 %vm593_vm3, %v2753_v38 }
0x167c   :  { %2655 = vmatpush1.bf16.msra.mxu0 %v5820_v36  ;;  %2907 = vmatpush1.bf16.msra.mxu1 %v5754_v1  ;;  %v2650_v1 = vld [vmem:[#allocation4 + $0x5] sm:$0x1] }
0x167d   :  { %2656 = vmatprep.subr.bf16.mxu0 %v5825_v5  ;;  %2908 = vmatprep.subr.bf16.mxu1 %v5761_v0  ;;  %v5973_v0 = vld [vmem:[%s6303_s7 + $0x8] sm:$0xff]  }
0x167e   :  { %2686 = vmatprep.mubr.bf16.mxu0 %v5220_v2  ;;  %2938 = vmatprep.mubr.bf16.mxu1 %v5220_v2 }
0x1680   :  { %2657 = vmatpush1.bf16.msra.mxu0 %v5835_v41  ;;  %2909 = vmatpush1.bf16.msra.mxu1 %v5766_v4  ;;  %v2754_v4 = vld [vmem:[#allocation4 + $0x6] sm:$0x1] }
0x1681   :  { %2758 = vmatprep.subr.bf16.mxu0 %v5804_v37  ;;  %4738 = vmatprep.subr.bf16.mxu1 %v5221_v20 }
0x1683   :  { %4450 = vmatmul.mubr.msk.bf16.vlgmr.msra.gmra.mrb[68].mxu0 %vm593_vm3, %v2650_v1  ;;  %4457 = vmatmul.mubr.msk.bf16.vlgmr.msra.gmra.mrb[76].mxu1 %vm593_vm3, %v2857_v22 }
0x1684   :  { %2759 = vmatpush1.bf16.msra.mxu0 %v5820_v36  ;;  %2790 = vmatprep.mubr.bf16.mxu0 %v5220_v2 }
0x1685   :  { %2760 = vmatprep.subr.bf16.mxu0 %v5825_v5  ;;  %4739 = vmatpush3.bf16.msra.mxu1 %v5962_v62 }
0x1686   :  { %4740 = vmatprep.subr.bf16.mxu1 %v5221_v20  ;;  %4742 = vmatprep.mubr.msk.bf16.mxu1 %vm5222_vm2, %v5221_v20 }
0x1688   :  { %2761 = vmatpush1.bf16.msra.mxu0 %v5835_v41 }
0x1689   :  { %2862 = vmatprep.subr.bf16.mxu0 %v5804_v37  ;;  %4741 = vmatpush3.bf16.msra.mxu1 %v5973_v0  ;;  %v5995_v37 = vld [vmem:[%s6302_s6] sm:$0xff]  }
0x168a   :  { %4754 = vmatprep.subr.bf16.mxu1 %v5221_v20 }
0x168b   :  { %4453 = vmatmul.mubr.msk.bf16.vlgmr.msra.gmra.mrb[72].mxu0 %vm593_vm3, %v2754_v4 }
0x168c   :  { %2863 = vmatpush1.bf16.msra.mxu0 %v5820_v36  ;;  %2894 = vmatprep.mubr.bf16.mxu0 %v5220_v2  ;;  %v2858_v36 = vld [vmem:[#allocation4 + $0x7] sm:$0x1] }
0x168d   :  { %2864 = vmatprep.subr.bf16.mxu0 %v5825_v5  ;;  %4743 = vmatmul.mubr.bf16.vlgmr.msra.gmra.mrb[80].mxu1 %v5220_v2  ;;  %v6005_v5 = vld [vmem:[%s6302_s6 + $0x8] sm:$0xff]  }
0x168e   :  { %4755 = vmatpush3.bf16.msra.mxu1 %v5962_v62  ;;  %4758 = vmatprep.mubr.msk.bf16.mxu1 %vm5222_vm2, %v5221_v20 }
0x168f   :  { %4756 = vmatprep.subr.bf16.mxu1 %v5221_v20 }
0x1690   :  { %2865 = vmatpush1.bf16.msra.mxu0 %v5835_v41 }
0x1691   :  { %4730 = vmatprep.subr.bf16.mxu0 %v5221_v20 }
0x1692   :  { %4757 = vmatpush3.bf16.msra.mxu1 %v5973_v0 }
0x1693   :  { %4456 = vmatmul.mubr.msk.bf16.vlgmr.msra.gmra.mrb[76].mxu0 %vm593_vm3, %v2858_v36  ;;  %4770 = vmatprep.subr.bf16.mxu1 %v5221_v20 }
0x1694   :  { %4731 = vmatpush3.bf16.msra.mxu0 %v5995_v37  ;;  %4734 = vmatprep.mubr.msk.bf16.mxu0 %vm5222_vm2, %v5221_v20 }
0x1695   :  { %4732 = vmatprep.subr.bf16.mxu0 %v5221_v20 }
0x1698   :  { %4733 = vmatpush3.bf16.msra.mxu0 %v6005_v5 }
0x1699   :  { %4746 = vmatprep.subr.bf16.mxu0 %v5221_v20 }
0x169b   :  { %4735 = vmatmul.mubr.bf16.vlgmr.msra.gmra.mrb[80].mxu0 %v5220_v2 }
0x169c   :  { %4747 = vmatpush3.bf16.msra.mxu0 %v5995_v37  ;;  %4750 = vmatprep.mubr.msk.bf16.mxu0 %vm5222_vm2, %v5221_v20 }
0x169d   :  { %4748 = vmatprep.subr.bf16.mxu0 %v5221_v20 }
0x16a0   :  { %4749 = vmatpush3.bf16.msra.mxu0 %v6005_v5 }
0x16a1   :  { %4762 = vmatprep.subr.bf16.mxu0 %v5221_v20 }
0x16b7   :  { %v2212_v39 = vpop.f32.mrb[48].mxu1 }
0x16b8   :  { %v2214_v41 = vpop.f32.mrb[49].mxu1 }
0x16b9   :  { %v2216_v29 = vpop.f32.mrb[50].mxu1 }
0x16ba   :  { %v2217_v42 = vpop.f32.mrb[51].mxu1 }
0x16bf   :  { %v2316_v21 = vpop.f32.mrb[52].mxu1 }
0x16c0   :  { %v2318_v43 = vpop.f32.mrb[53].mxu1 }
0x16c1   :  { %v2320_v44 = vpop.f32.mrb[54].mxu1 }
0x16c2   :  { %v2321_v23 = vpop.f32.mrb[55].mxu1 }
0x16c7   :  { %v2420_v2 = vpop.f32.mrb[56].mxu1 }
0x16c8   :  { %v2422_v46 = vpop.f32.mrb[57].mxu1 }
0x16c9   :  { %v2424_v45 = vpop.f32.mrb[58].mxu1 }
0x16ca   :  { %v2425_v48 = vpop.f32.mrb[59].mxu1 }
0x16cf   :  { %v2524_v50 = vpop.f32.mrb[60].mxu1 }
0x16d0   :  { %v2526_v51 = vpop.f32.mrb[61].mxu1 }
0x16d1   :  { %v2528_v10 = vpop.f32.mrb[62].mxu1 }
0x16d2   :  { %v2529_v52 = vpop.f32.mrb[63].mxu1 }
0x172e   :  { %v2148_v54 = vpop.f32.mrb[48].mxu0 }
0x172f   :  { %v2213_v27 = vadd.f32 %v2212_v39, %v2148_v54  ;;  %v2150_v57 = vpop.f32.mrb[49].mxu0 }
0x1730   :  { %v2215_v32 = vadd.f32 %v2214_v41, %v2150_v57  ;;  %v2152_v59 = vpop.f32.mrb[50].mxu0 }
0x1731   :  { %v2219_v60 = vadd.f32 %v2213_v27, %v6024_v53  ;;  %v2153_v63 = vpop.f32.mrb[51].mxu0 }
0x1732   :  { %v2220_v61 = vadd.f32 %v2215_v32, %v6028_v56 }
0x1734   :  { %v2223_v9 = vcombine.low %v2219_v60, %v2220_v61 }
0x1736   :  { %4437 = vst.sshfl [vmem:[#allocation2] sm:$0x33 pattern:$0x76325410] %v2223_v9  ;;  %v2272_v11 = vpop.f32.mrb[52].mxu0 }
0x1737   :  { %v2317_v15 = vadd.f32 %v2316_v21, %v2272_v11  ;;  %v2274_v26 = vpop.f32.mrb[53].mxu0 }
0x1738   :  { %v2319_v49 = vadd.f32 %v2318_v43, %v2274_v26  ;;  %v2276_v3 = vpop.f32.mrb[54].mxu0 }
0x1739   :  { %v2323_v12 = vadd.f32 %v2317_v15, %v6024_v53  ;;  %v2277_v28 = vpop.f32.mrb[55].mxu0 }
0x173a   :  { %v2324_v7 = vadd.f32 %v2319_v49, %v6028_v56 }
0x173c   :  { %v2327_v14 = vcombine.low %v2323_v12, %v2324_v7 }
0x173e   :  { %4440 = vst.sshfl [vmem:[#allocation2 + $0x4] sm:$0x33 pattern:$0x76325410] %v2327_v14  ;;  %v2376_v16 = vpop.f32.mrb[56].mxu0  ;;  %v2628_v8 = vpop.f32.mrb[64].mxu1 }
0x173f   :  { %v2421_v6 = vadd.f32 %v2420_v2, %v2376_v16  ;;  %v2378_v17 = vpop.f32.mrb[57].mxu0  ;;  %v2630_v19 = vpop.f32.mrb[65].mxu1 }
0x1740   :  { %v2423_v58 = vadd.f32 %v2422_v46, %v2378_v17  ;;  %v2380_v24 = vpop.f32.mrb[58].mxu0  ;;  %v2632_v47 = vpop.f32.mrb[66].mxu1 }
0x1741   :  { %v2427_v31 = vadd.f32 %v2421_v6, %v6024_v53  ;;  %v2381_v40 = vpop.f32.mrb[59].mxu0  ;;  %v2633_v33 = vpop.f32.mrb[67].mxu1 }
0x1742   :  { %v2428_v30 = vadd.f32 %v2423_v58, %v6028_v56 }
0x1744   :  { %v2431_v34 = vcombine.low %v2427_v31, %v2428_v30 }
0x1746   :  { %4443 = vst.sshfl [vmem:[#allocation2 + $0x8] sm:$0x33 pattern:$0x76325410] %v2431_v34  ;;  %v2480_v55 = vpop.f32.mrb[60].mxu0  ;;  %v2732_v35 = vpop.f32.mrb[68].mxu1 }
0x1747   :  { %v2525_v18 = vadd.f32 %v2524_v50, %v2480_v55  ;;  %v2482_v38 = vpop.f32.mrb[61].mxu0  ;;  %v2734_v1 = vpop.f32.mrb[69].mxu1 }
0x1748   :  { %v2527_v22 = vadd.f32 %v2526_v51, %v2482_v38  ;;  %v2484_v4 = vpop.f32.mrb[62].mxu0  ;;  %v2736_v36 = vpop.f32.mrb[70].mxu1 }
0x1749   :  { %v2531_v39 = vadd.f32 %v2525_v18, %v6024_v53  ;;  %v2485_v41 = vpop.f32.mrb[63].mxu0  ;;  %v2737_v29 = vpop.f32.mrb[71].mxu1 }
0x174a   :  { %v2532_v42 = vadd.f32 %v2527_v22, %v6028_v56  ;;  %v2969_v22 = vld [vmem:[#allocation2] sm:$0x3] }
0x174c   :  { %v2535_v21 = vcombine.low %v2531_v39, %v2532_v42 }
0x174e   :  { %4446 = vst.sshfl [vmem:[#allocation2 + $0xc] sm:$0x33 pattern:$0x76325410] %v2535_v21  ;;  %v2584_v43 = vpop.f32.mrb[64].mxu0  ;;  %v2836_v44 = vpop.f32.mrb[72].mxu1 }
0x174f   :  { %v2629_v23 = vadd.f32 %v2628_v8, %v2584_v43  ;;  %v2586_v2 = vpop.f32.mrb[65].mxu0  ;;  %v2838_v46 = vpop.f32.mrb[73].mxu1 }
0x1750   :  { %v2631_v45 = vadd.f32 %v2630_v19, %v2586_v2  ;;  %v2588_v48 = vpop.f32.mrb[66].mxu0  ;;  %v2840_v50 = vpop.f32.mrb[74].mxu1 }
0x1751   :  { %v2635_v51 = vadd.f32 %v2629_v23, %v6024_v53  ;;  %v2589_v10 = vpop.f32.mrb[67].mxu0  ;;  %v2841_v52 = vpop.f32.mrb[75].mxu1 }
0x1752   :  { %v2636_v13 = vadd.f32 %v2631_v45, %v6028_v56 }
0x1754   :  { %v2639_v54 = vcombine.low %v2635_v51, %v2636_v13 }
0x1756   :  { %4449 = vst.sshfl [vmem:[#allocation2 + $0x10] sm:$0x33 pattern:$0x76325410] %v2639_v54  ;;  %v2688_v27 = vpop.f32.mrb[68].mxu0  ;;  %v2940_v57 = vpop.f32.mrb[76].mxu1 }
0x1757   :  { %v2733_v32 = vadd.f32 %v2732_v35, %v2688_v27  ;;  %v2690_v59 = vpop.f32.mrb[69].mxu0  ;;  %v2942_v60 = vpop.f32.mrb[77].mxu1 }
0x1758   :  { %v2735_v63 = vadd.f32 %v2734_v1, %v2690_v59  ;;  %v2692_v61 = vpop.f32.mrb[70].mxu0  ;;  %v2944_v9 = vpop.f32.mrb[78].mxu1 }
0x1759   :  { %v2739_v11 = vadd.f32 %v2733_v32, %v6024_v53  ;;  %v2693_v15 = vpop.f32.mrb[71].mxu0  ;;  %v2945_v26 = vpop.f32.mrb[79].mxu1 }
0x175a   :  { %v2740_v49 = vadd.f32 %v2735_v63, %v6028_v56 }
0x175c   :  { %v2743_v3 = vcombine.low %v2739_v11, %v2740_v49 }
0x175e   :  { %4452 = vst.sshfl [vmem:[#allocation2 + $0x14] sm:$0x33 pattern:$0x76325410] %v2743_v3  ;;  %v2792_v12 = vpop.f32.mrb[72].mxu0 }
0x175f   :  { %v2837_v28 = vadd.f32 %v2836_v44, %v2792_v12  ;;  %v2794_v7 = vpop.f32.mrb[73].mxu0 }
0x1760   :  { %v2839_v14 = vadd.f32 %v2838_v46, %v2794_v7  ;;  %v2796_v16 = vpop.f32.mrb[74].mxu0  ;;  %v3094_v8 = vpop.f32.mrb[80].mxu1  ;;  %v3125_v7 = vld [vmem:[#allocation2 + $0x4] sm:$0x3] }
0x1761   :  { %v2843_v6 = vadd.f32 %v2837_v28, %v6024_v53  ;;  %v2797_v17 = vpop.f32.mrb[75].mxu0  ;;  %v4744_v19 = vpop.f32.mrb[81].mxu1 }
0x1762   :  { %v2844_v58 = vadd.f32 %v2839_v14, %v6028_v56  ;;  %v3097_v24 = vpop.f32.mrb[82].mxu1 }
0x1763   :  { %v4745_v47 = vpop.f32.mrb[83].mxu1 }
0x1764   :  { %v2847_v31 = vcombine.low %v2843_v6, %v2844_v58 }
0x1766   :  { %4455 = vst.sshfl [vmem:[#allocation2 + $0x18] sm:$0x33 pattern:$0x76325410] %v2847_v31  ;;  %v2896_v40 = vpop.f32.mrb[76].mxu0 }
0x1767   :  { %v2941_v33 = vadd.f32 %v2940_v57, %v2896_v40  ;;  %v2898_v30 = vpop.f32.mrb[77].mxu0 }
0x1768   :  { %v2943_v34 = vadd.f32 %v2942_v60, %v2898_v30  ;;  %v2900_v55 = vpop.f32.mrb[78].mxu0 }
0x1769   :  { %v2947_v35 = vadd.f32 %v2941_v33, %v6024_v53  ;;  %v2901_v18 = vpop.f32.mrb[79].mxu0 }
0x176a   :  { %v2948_v38 = vadd.f32 %v2943_v34, %v6028_v56 }
0x176c   :  { %v2951_v1 = vcombine.low %v2947_v35, %v2948_v38 }
0x176d   :  { %v3198_v19 = vld [vmem:[#allocation2 + $0x1a] sm:$0x3] }
0x176e   :  { %4458 = vst.sshfl [vmem:[#allocation2 + $0x1c] sm:$0x33 pattern:$0x76325410] %v2951_v1  ;;  %v3016_v4 = vpop.f32.mrb[80].mxu0 }
0x176f   :  { %v3022_v36 = vadd.f32 %v3016_v4, %v2969_v22  ;;  %v4736_v39 = vpop.f32.mrb[81].mxu0 }
0x1770   :  { %v3019_v41 = vpop.f32.mrb[82].mxu0 }
0x1771   :  { %5058 = vtanh.f32 %v3022_v36  ;;  %v4737_v29 = vpop.f32.mrb[83].mxu0  ;;  %v4461_v53 = vmul.f32 -1.442695, %v3022_v36 }
0x1775   :  { %v3047_v42 = vld [vmem:[#allocation2 + $0x1e] sm:$0x3] }
0x1776   :  { %v3100_v21 = vadd.f32 %v3094_v8, %v3047_v42 }
0x1778   :  { %5060 = vtanh.f32 %v3100_v21  ;;  %v4464_v56 = vmul.f32 -1.442695, %v3100_v21 }
0x1779   :  { %5062 = vpow2.f32 %v4461_v53 }
0x177a   :  { %5064 = vpow2.f32 %v4464_v56 }
0x177b   :  { %v5059_v43 = vpop.eup %5058 }
0x177c   :  { %3032 = vrot.lane.b32.xlu0 %v5059_v43, %s5223_s4 }
0x1782   :  { %v5061_v44 = vpop.eup %5060 }
0x1783   :  { %3110 = vrot.lane.b32.xlu1 %v5061_v44, %s5223_s4  ;;  %v5063_v23 = vpop.eup %5062 }
0x1784   :  { %v3026_v2 = vadd.f32 1.0, %v5063_v23  ;;  %v5065_v46 = vpop.eup %5064 }
0x1785   :  { %v3104_v45 = vadd.f32 1.0, %v5065_v46 }
0x1786   :  { %5066 = vrcp.f32 %v3026_v2 }
0x1787   :  { %5068 = vrcp.f32 %v3104_v45 }
0x1790   :  { %v5067_v48 = vpop.eup %5066 }
0x1791   :  { %v5069_v10 = vpop.eup %5068  ;;  %v3030_v54 = vmul.f32 0.0, %v5067_v48 }
0x1792   :  { %v3108_v32 = vmul.f32 0.0, %v5069_v10 }
0x17ee   :  { %v3033_v50 = vpop.permute.xlu0 %3032 }
0x17ef   :  { %v3035_v51 = vmul.f32 %v5067_v48, %v3033_v50 }
0x17f1   :  { %3037 = vrot.lane.b32.xlu0 %v3035_v51, %s5223_s4 }
0x17f5   :  { %v3111_v52 = vpop.permute.xlu1 %3110 }
0x17f6   :  { %v3113_v13 = vmul.f32 %v5069_v10, %v3111_v52 }
0x17f8   :  { %3115 = vrot.lane.b32.xlu1 %v3113_v13, %s5223_s4 }
0x1863   :  { %v3038_v27 = vpop.permute.xlu0 %3037 }
0x1864   :  { %v6050_v57 = vadd.f32 %v3038_v27, %v3030_v54  ;;  %v3271_v54 = vld [vmem:[#allocation2 + $0x8] sm:$0x3] }
0x1866   :  { %5070 = vtanh.f32 %v6050_v57 }
0x186a   :  { %v3116_v59 = vpop.permute.xlu1 %3115 }
0x186b   :  { %v6053_v60 = vadd.f32 %v3116_v59, %v3108_v32 }
0x186d   :  { %5072 = vtanh.f32 %v6053_v60 }
0x1870   :  { %v5071_v63 = vpop.eup %5070 }
0x1871   :  { %3043 = vrot.lane.b32.xlu0 %v5071_v63, %s5223_s4  ;;  %v3344_v63 = vld [vmem:[#allocation2 + $0x16] sm:$0x3] }
0x1877   :  { %v5073_v61 = vpop.eup %5072 }
0x1878   :  { %3121 = vrot.lane.b32.xlu1 %v5073_v61, %s5223_s4 }
0x18e3   :  { %v3044_v9 = vpop.permute.xlu0 %3043 }
0x18e4   :  { %v3046_v11 = vmul.f32 %v5067_v48, %v3044_v9 }
0x18e6   :  { %v3126_v15 = vpack.c.bf16 %v3046_v11, %v3046_v11 }
0x18e8   :  { %3128 = vrot.lane.b32.xlu0 %v3126_v15, %s5224_s16 }
0x18ea   :  { %v3122_v26 = vpop.permute.xlu1 %3121 }
0x18eb   :  { %v3124_v49 = vmul.f32 %v5069_v10, %v3122_v26 }
0x18ed   :  { %v3199_v3 = vpack.c.bf16 %v3124_v49, %v3124_v49 }
0x18ef   :  { %3201 = vrot.lane.b32.xlu1 %v3199_v3, %s5224_s16 }
0x195a   :  { %v3129_v12 = vpop.permute.xlu0 %3128 }
0x195b   :  { %4751 = vmatmul.mubr.msk.bf16.vlgmr.msra.gmra.mrb[84].mxu0 %vm593_vm3, %v3129_v12 }
0x195c   :  { %4763 = vmatpush3.bf16.msra.mxu0 %v5995_v37  ;;  %4766 = vmatprep.mubr.msk.bf16.mxu0 %vm5222_vm2, %v5221_v20 }
0x195d   :  { %4764 = vmatprep.subr.bf16.mxu0 %v5221_v20 }
0x1960   :  { %4765 = vmatpush3.bf16.msra.mxu0 %v6005_v5 }
0x1961   :  { %v3202_v28 = vpop.permute.xlu1 %3201  ;;  %4778 = vmatprep.subr.bf16.mxu0 %v5221_v20 }
0x1962   :  { %4759 = vmatmul.mubr.msk.bf16.vlgmr.msra.gmra.mrb[84].mxu1 %vm593_vm3, %v3202_v28 }
0x1963   :  { %4771 = vmatpush3.bf16.msra.mxu1 %v5962_v62  ;;  %4774 = vmatprep.mubr.msk.bf16.mxu1 %vm5222_vm2, %v5221_v20 }
0x1964   :  { %4772 = vmatprep.subr.bf16.mxu1 %v5221_v20 }
0x1967   :  { %4773 = vmatpush3.bf16.msra.mxu1 %v5973_v0 }
0x1968   :  { %4786 = vmatprep.subr.bf16.mxu1 %v5221_v20 }
0x1a2e   :  { %v3167_v14 = vpop.f32.mrb[84].mxu0 }
0x1a2f   :  { %v3173_v16 = vadd.f32 %v3167_v14, %v3125_v7  ;;  %v4752_v8 = vpop.f32.mrb[85].mxu0 }
0x1a30   :  { %v3170_v6 = vpop.f32.mrb[86].mxu0 }
0x1a31   :  { %5074 = vtanh.f32 %v3173_v16  ;;  %v4753_v17 = vpop.f32.mrb[87].mxu0  ;;  %v4466_v34 = vmul.f32 -1.442695, %v3173_v16 }
0x1a35   :  { %v3240_v58 = vpop.f32.mrb[84].mxu1 }
0x1a36   :  { %v3246_v24 = vadd.f32 %v3240_v58, %v3198_v19  ;;  %v4760_v47 = vpop.f32.mrb[85].mxu1 }
0x1a37   :  { %v3243_v31 = vpop.f32.mrb[86].mxu1 }
0x1a38   :  { %5076 = vtanh.f32 %v3246_v24  ;;  %v4761_v40 = vpop.f32.mrb[87].mxu1  ;;  %v4468_v55 = vmul.f32 -1.442695, %v3246_v24 }
0x1a39   :  { %5078 = vpow2.f32 %v4466_v34 }
0x1a3a   :  { %5080 = vpow2.f32 %v4468_v55 }
0x1a3b   :  { %v5075_v33 = vpop.eup %5074 }
0x1a3c   :  { %3183 = vrot.lane.b32.xlu0 %v5075_v33, %s5223_s4 }
0x1a42   :  { %v5077_v30 = vpop.eup %5076 }
0x1a43   :  { %3256 = vrot.lane.b32.xlu1 %v5077_v30, %s5223_s4  ;;  %v5079_v35 = vpop.eup %5078 }
0x1a44   :  { %v3177_v18 = vadd.f32 1.0, %v5079_v35  ;;  %v5081_v38 = vpop.eup %5080 }
0x1a45   :  { %v3250_v1 = vadd.f32 1.0, %v5081_v38 }
0x1a46   :  { %5082 = vrcp.f32 %v3177_v18 }
0x1a47   :  { %5084 = vrcp.f32 %v3250_v1 }
0x1a50   :  { %v5083_v22 = vpop.eup %5082 }
0x1a51   :  { %v5085_v39 = vpop.eup %5084  ;;  %v3181_v42 = vmul.f32 %v5083_v22, %v6050_v57 }
0x1a52   :  { %v3254_v44 = vmul.f32 %v5085_v39, %v6053_v60 }
0x1aae   :  { %v3184_v4 = vpop.permute.xlu0 %3183 }
0x1aaf   :  { %v3186_v36 = vmul.f32 %v5083_v22, %v3184_v4 }
0x1ab1   :  { %3188 = vrot.lane.b32.xlu0 %v3186_v36, %s5223_s4 }
0x1ab5   :  { %v3257_v41 = vpop.permute.xlu1 %3256 }
0x1ab6   :  { %v3259_v29 = vmul.f32 %v5085_v39, %v3257_v41 }
0x1ab8   :  { %3261 = vrot.lane.b32.xlu1 %v3259_v29, %s5223_s4 }
0x1b23   :  { %v3189_v21 = vpop.permute.xlu0 %3188 }
0x1b24   :  { %v6079_v43 = vadd.f32 %v3189_v21, %v3181_v42  ;;  %v3417_v42 = vld [vmem:[#allocation2 + $0xc] sm:$0x3] }
0x1b26   :  { %5086 = vtanh.f32 %v6079_v43 }
0x1b2a   :  { %v3262_v53 = vpop.permute.xlu1 %3261 }
0x1b2b   :  { %v6083_v56 = vadd.f32 %v3262_v53, %v3254_v44 }
0x1b2d   :  { %5088 = vtanh.f32 %v6083_v56 }
0x1b30   :  { %v5087_v23 = vpop.eup %5086 }
0x1b31   :  { %3194 = vrot.lane.b32.xlu0 %v5087_v23, %s5223_s4  ;;  %v3490_v23 = vld [vmem:[#allocation2 + $0x12] sm:$0x3] }
0x1b37   :  { %v5089_v2 = vpop.eup %5088 }
0x1b38   :  { %3267 = vrot.lane.b32.xlu1 %v5089_v2, %s5223_s4 }
0x1ba3   :  { %v3195_v46 = vpop.permute.xlu0 %3194 }
0x1ba4   :  { %v3197_v45 = vmul.f32 %v5083_v22, %v3195_v46 }
0x1ba6   :  { %v3272_v48 = vpack.c.bf16 %v3197_v45, %v3197_v45 }
0x1ba8   :  { %3274 = vrot.lane.b32.xlu0 %v3272_v48, %s5224_s16 }
0x1baa   :  { %v3268_v50 = vpop.permute.xlu1 %3267 }
0x1bab   :  { %v3270_v51 = vmul.f32 %v5085_v39, %v3268_v50 }
0x1bad   :  { %v3345_v10 = vpack.c.bf16 %v3270_v51, %v3270_v51 }
0x1baf   :  { %3347 = vrot.lane.b32.xlu1 %v3345_v10, %s5224_s16 }
0x1c1a   :  { %v3275_v52 = vpop.permute.xlu0 %3274 }
0x1c1b   :  { %4767 = vmatmul.mubr.msk.bf16.vlgmr.msra.gmra.mrb[88].mxu0 %vm593_vm3, %v3275_v52 }
0x1c1c   :  { %4779 = vmatpush3.bf16.msra.mxu0 %v5995_v37  ;;  %4782 = vmatprep.mubr.msk.bf16.mxu0 %vm5222_vm2, %v5221_v20 }
0x1c1d   :  { %4780 = vmatprep.subr.bf16.mxu0 %v5221_v20 }
0x1c20   :  { %4781 = vmatpush3.bf16.msra.mxu0 %v6005_v5 }
0x1c21   :  { %v3348_v13 = vpop.permute.xlu1 %3347  ;;  %4794 = vmatprep.subr.bf16.mxu0 %v5221_v20 }
0x1c22   :  { %4775 = vmatmul.mubr.msk.bf16.vlgmr.msra.gmra.mrb[88].mxu1 %vm593_vm3, %v3348_v13 }
0x1c23   :  { %4787 = vmatpush3.bf16.msra.mxu1 %v5962_v62  ;;  %4790 = vmatprep.mubr.msk.bf16.mxu1 %vm5222_vm2, %v5221_v20 }
0x1c24   :  { %4788 = vmatprep.subr.bf16.mxu1 %v5221_v20 }
0x1c27   :  { %4789 = vmatpush3.bf16.msra.mxu1 %v5973_v0 }
0x1c28   :  { %4802 = vmatprep.subr.bf16.mxu1 %v5221_v20 }
0x1cee   :  { %v3313_v27 = vpop.f32.mrb[88].mxu0 }
0x1cef   :  { %v3319_v57 = vadd.f32 %v3313_v27, %v3271_v54  ;;  %v4768_v32 = vpop.f32.mrb[89].mxu0 }
0x1cf0   :  { %v3316_v59 = vpop.f32.mrb[90].mxu0 }
0x1cf1   :  { %5090 = vtanh.f32 %v3319_v57  ;;  %v4769_v60 = vpop.f32.mrb[91].mxu0  ;;  %v4470_v12 = vmul.f32 -1.442695, %v3319_v57 }
0x1cf5   :  { %v3386_v61 = vpop.f32.mrb[88].mxu1 }
0x1cf6   :  { %v3392_v9 = vadd.f32 %v3386_v61, %v3344_v63  ;;  %v4776_v11 = vpop.f32.mrb[89].mxu1 }
0x1cf7   :  { %v3389_v15 = vpop.f32.mrb[90].mxu1 }
0x1cf8   :  { %5092 = vtanh.f32 %v3392_v9  ;;  %v4777_v26 = vpop.f32.mrb[91].mxu1  ;;  %v4472_v28 = vmul.f32 -1.442695, %v3392_v9 }
0x1cf9   :  { %5094 = vpow2.f32 %v4470_v12 }
0x1cfa   :  { %5096 = vpow2.f32 %v4472_v28 }
0x1cfb   :  { %v5091_v49 = vpop.eup %5090 }
0x1cfc   :  { %3329 = vrot.lane.b32.xlu0 %v5091_v49, %s5223_s4 }
0x1d02   :  { %v5093_v3 = vpop.eup %5092 }
0x1d03   :  { %3402 = vrot.lane.b32.xlu1 %v5093_v3, %s5223_s4  ;;  %v5095_v7 = vpop.eup %5094 }
0x1d04   :  { %v3323_v14 = vadd.f32 1.0, %v5095_v7  ;;  %v5097_v16 = vpop.eup %5096 }
0x1d05   :  { %v3396_v8 = vadd.f32 1.0, %v5097_v16 }
0x1d06   :  { %5098 = vrcp.f32 %v3323_v14 }
0x1d07   :  { %5100 = vrcp.f32 %v3396_v8 }
0x1d10   :  { %v5099_v6 = vpop.eup %5098 }
0x1d11   :  { %v5101_v58 = vpop.eup %5100  ;;  %v3327_v31 = vmul.f32 %v5099_v6, %v6079_v43 }
0x1d12   :  { %v3400_v30 = vmul.f32 %v5101_v58, %v6083_v56 }
0x1d6e   :  { %v3330_v17 = vpop.permute.xlu0 %3329 }
0x1d6f   :  { %v3332_v19 = vmul.f32 %v5099_v6, %v3330_v17 }
0x1d71   :  { %3334 = vrot.lane.b32.xlu0 %v3332_v19, %s5223_s4 }
0x1d75   :  { %v3403_v24 = vpop.permute.xlu1 %3402 }
0x1d76   :  { %v3405_v47 = vmul.f32 %v5101_v58, %v3403_v24 }
0x1d78   :  { %3407 = vrot.lane.b32.xlu1 %v3405_v47, %s5223_s4 }
0x1de3   :  { %v3335_v40 = vpop.permute.xlu0 %3334 }
0x1de4   :  { %v6109_v33 = vadd.f32 %v3335_v40, %v3327_v31  ;;  %v3563_v31 = vld [vmem:[#allocation2 + $0x10] sm:$0x3] }
0x1de6   :  { %5102 = vtanh.f32 %v6109_v33 }
0x1dea   :  { %v3408_v34 = vpop.permute.xlu1 %3407 }
0x1deb   :  { %v6113_v55 = vadd.f32 %v3408_v34, %v3400_v30 }
0x1ded   :  { %5104 = vtanh.f32 %v6113_v55 }
0x1df0   :  { %v5103_v35 = vpop.eup %5102 }
0x1df1   :  { %3340 = vrot.lane.b32.xlu0 %v5103_v35, %s5223_s4  ;;  %v3636_v35 = vld [vmem:[#allocation2 + $0xe] sm:$0x3] }
0x1df7   :  { %v5105_v18 = vpop.eup %5104 }
0x1df8   :  { %3413 = vrot.lane.b32.xlu1 %v5105_v18, %s5223_s4 }
0x1e63   :  { %v3341_v38 = vpop.permute.xlu0 %3340 }
0x1e64   :  { %v3343_v1 = vmul.f32 %v5099_v6, %v3341_v38 }
0x1e66   :  { %v3418_v22 = vpack.c.bf16 %v3343_v1, %v3343_v1 }
0x1e68   :  { %3420 = vrot.lane.b32.xlu0 %v3418_v22, %s5224_s16 }
0x1e6a   :  { %v3414_v4 = vpop.permute.xlu1 %3413 }
0x1e6b   :  { %v3416_v36 = vmul.f32 %v5101_v58, %v3414_v4 }
0x1e6d   :  { %v3491_v39 = vpack.c.bf16 %v3416_v36, %v3416_v36 }
0x1e6f   :  { %3493 = vrot.lane.b32.xlu1 %v3491_v39, %s5224_s16 }
0x1eda   :  { %v3421_v41 = vpop.permute.xlu0 %3420 }
0x1edb   :  { %4783 = vmatmul.mubr.msk.bf16.vlgmr.msra.gmra.mrb[92].mxu0 %vm593_vm3, %v3421_v41 }
0x1edc   :  { %4795 = vmatpush3.bf16.msra.mxu0 %v5995_v37  ;;  %4798 = vmatprep.mubr.msk.bf16.mxu0 %vm5222_vm2, %v5221_v20 }
0x1edd   :  { %4796 = vmatprep.subr.bf16.mxu0 %v5221_v20 }
0x1ee0   :  { %4797 = vmatpush3.bf16.msra.mxu0 %v6005_v5 }
0x1ee1   :  { %v3494_v29 = vpop.permute.xlu1 %3493  ;;  %4810 = vmatprep.subr.bf16.mxu0 %v5221_v20 }
0x1ee2   :  { %4791 = vmatmul.mubr.msk.bf16.vlgmr.msra.gmra.mrb[92].mxu1 %vm593_vm3, %v3494_v29 }
0x1ee3   :  { %4803 = vmatpush3.bf16.msra.mxu1 %v5962_v62  ;;  %4806 = vmatprep.mubr.msk.bf16.mxu1 %vm5222_vm2, %v5221_v20 }
0x1ee4   :  { %4804 = vmatprep.subr.bf16.mxu1 %v5221_v20 }
0x1ee7   :  { %4805 = vmatpush3.bf16.msra.mxu1 %v5973_v0 }
0x1ee8   :  { %4818 = vmatprep.subr.bf16.mxu1 %v5221_v20 }
0x1fae   :  { %v3459_v21 = vpop.f32.mrb[92].mxu0 }
0x1faf   :  { %v3465_v43 = vadd.f32 %v3459_v21, %v3417_v42  ;;  %v4784_v44 = vpop.f32.mrb[93].mxu0 }
0x1fb0   :  { %v3462_v53 = vpop.f32.mrb[94].mxu0 }
0x1fb1   :  { %5106 = vtanh.f32 %v3465_v43  ;;  %v4785_v56 = vpop.f32.mrb[95].mxu0  ;;  %v4474_v52 = vmul.f32 -1.442695, %v3465_v43 }
0x1fb5   :  { %v3532_v2 = vpop.f32.mrb[92].mxu1 }
0x1fb6   :  { %v3538_v46 = vadd.f32 %v3532_v2, %v3490_v23  ;;  %v4792_v45 = vpop.f32.mrb[93].mxu1 }
0x1fb7   :  { %v3535_v48 = vpop.f32.mrb[94].mxu1 }
0x1fb8   :  { %5108 = vtanh.f32 %v3538_v46  ;;  %v4793_v50 = vpop.f32.mrb[95].mxu1  ;;  %v4476_v13 = vmul.f32 -1.442695, %v3538_v46 }
0x1fb9   :  { %5110 = vpow2.f32 %v4474_v52 }
0x1fba   :  { %5112 = vpow2.f32 %v4476_v13 }
0x1fbb   :  { %v5107_v51 = vpop.eup %5106 }
0x1fbc   :  { %3475 = vrot.lane.b32.xlu0 %v5107_v51, %s5223_s4 }
0x1fc2   :  { %v5109_v10 = vpop.eup %5108 }
0x1fc3   :  { %3548 = vrot.lane.b32.xlu1 %v5109_v10, %s5223_s4  ;;  %v5111_v54 = vpop.eup %5110 }
0x1fc4   :  { %v3469_v27 = vadd.f32 1.0, %v5111_v54  ;;  %v5113_v57 = vpop.eup %5112 }
0x1fc5   :  { %v3542_v32 = vadd.f32 1.0, %v5113_v57 }
0x1fc6   :  { %5114 = vrcp.f32 %v3469_v27 }
0x1fc7   :  { %5116 = vrcp.f32 %v3542_v32 }
0x1fd0   :  { %v5115_v59 = vpop.eup %5114 }
0x1fd1   :  { %v5117_v61 = vpop.eup %5116  ;;  %v3473_v15 = vmul.f32 %v5115_v59, %v6109_v33 }
0x1fd2   :  { %v3546_v3 = vmul.f32 %v5117_v61, %v6113_v55 }
0x202e   :  { %v3476_v60 = vpop.permute.xlu0 %3475 }
0x202f   :  { %v3478_v63 = vmul.f32 %v5115_v59, %v3476_v60 }
0x2031   :  { %3480 = vrot.lane.b32.xlu0 %v3478_v63, %s5223_s4 }
0x2035   :  { %v3549_v9 = vpop.permute.xlu1 %3548 }
0x2036   :  { %v3551_v11 = vmul.f32 %v5117_v61, %v3549_v9 }
0x2038   :  { %3553 = vrot.lane.b32.xlu1 %v3551_v11, %s5223_s4 }
0x20a3   :  { %v3481_v26 = vpop.permute.xlu0 %3480 }
0x20a4   :  { %v6139_v49 = vadd.f32 %v3481_v26, %v3473_v15 }
0x20a6   :  { %5118 = vtanh.f32 %v6139_v49 }
0x20aa   :  { %v3554_v12 = vpop.permute.xlu1 %3553 }
0x20ab   :  { %v6143_v28 = vadd.f32 %v3554_v12, %v3546_v3  ;;  %v3782_v12 = vld [vmem:[#allocation2 + $0xa] sm:$0x3] }
0x20ad   :  { %5120 = vtanh.f32 %v6143_v28 }
0x20b0   :  { %v5119_v7 = vpop.eup %5118 }
0x20b1   :  { %3486 = vrot.lane.b32.xlu0 %v5119_v7, %s5223_s4 }
0x20b7   :  { %v5121_v14 = vpop.eup %5120 }
0x20b8   :  { %3559 = vrot.lane.b32.xlu1 %v5121_v14, %s5223_s4 }
0x2123   :  { %v3487_v16 = vpop.permute.xlu0 %3486 }
0x2124   :  { %v3489_v8 = vmul.f32 %v5115_v59, %v3487_v16 }
0x2126   :  { %v3564_v6 = vpack.c.bf16 %v3489_v8, %v3489_v8 }
0x2128   :  { %3566 = vrot.lane.b32.xlu0 %v3564_v6, %s5224_s16 }
0x212a   :  { %v3560_v17 = vpop.permute.xlu1 %3559 }
0x212b   :  { %v3562_v19 = vmul.f32 %v5117_v61, %v3560_v17 }
0x212d   :  { %v3637_v58 = vpack.c.bf16 %v3562_v19, %v3562_v19 }
0x212f   :  { %3639 = vrot.lane.b32.xlu1 %v3637_v58, %s5224_s16 }
0x219a   :  { %v3567_v24 = vpop.permute.xlu0 %3566 }
0x219b   :  { %4799 = vmatmul.mubr.msk.bf16.vlgmr.msra.gmra.mrb[96].mxu0 %vm593_vm3, %v3567_v24 }
0x219c   :  { %4811 = vmatpush3.bf16.msra.mxu0 %v5995_v37  ;;  %4814 = vmatprep.mubr.msk.bf16.mxu0 %vm5222_vm2, %v5221_v20 }
0x219d   :  { %4812 = vmatprep.subr.bf16.mxu0 %v5221_v20 }
0x21a0   :  { %4813 = vmatpush3.bf16.msra.mxu0 %v6005_v5 }
0x21a1   :  { %v3640_v47 = vpop.permute.xlu1 %3639  ;;  %4826 = vmatprep.subr.bf16.mxu0 %v5221_v20 }
0x21a2   :  { %4807 = vmatmul.mubr.msk.bf16.vlgmr.msra.gmra.mrb[96].mxu1 %vm593_vm3, %v3640_v47 }
0x21a3   :  { %4819 = vmatpush3.bf16.msra.mxu1 %v5962_v62  ;;  %4822 = vmatprep.mubr.msk.bf16.mxu1 %vm5222_vm2, %v5221_v20 }
0x21a4   :  { %4820 = vmatprep.subr.bf16.mxu1 %v5221_v20 }
0x21a7   :  { %4821 = vmatpush3.bf16.msra.mxu1 %v5973_v0 }
0x21a8   :  { %4834 = vmatprep.subr.bf16.mxu1 %v5221_v20 }
0x226e   :  { %v3605_v40 = vpop.f32.mrb[96].mxu0 }
0x226f   :  { %v3611_v33 = vadd.f32 %v3605_v40, %v3563_v31  ;;  %v4800_v30 = vpop.f32.mrb[97].mxu0 }
0x2270   :  { %v3608_v34 = vpop.f32.mrb[98].mxu0 }
0x2271   :  { %5122 = vtanh.f32 %v3611_v33  ;;  %v4801_v55 = vpop.f32.mrb[99].mxu0  ;;  %v4478_v41 = vmul.f32 -1.442695, %v3611_v33 }
0x2275   :  { %v3678_v18 = vpop.f32.mrb[96].mxu1 }
0x2276   :  { %v3684_v38 = vadd.f32 %v3678_v18, %v3636_v35  ;;  %v4808_v1 = vpop.f32.mrb[97].mxu1 }
0x2277   :  { %v3681_v22 = vpop.f32.mrb[98].mxu1 }
0x2278   :  { %5124 = vtanh.f32 %v3684_v38  ;;  %v4809_v4 = vpop.f32.mrb[99].mxu1  ;;  %v4480_v29 = vmul.f32 -1.442695, %v3684_v38 }
0x2279   :  { %5126 = vpow2.f32 %v4478_v41 }
0x227a   :  { %5128 = vpow2.f32 %v4480_v29 }
0x227b   :  { %v5123_v36 = vpop.eup %5122 }
0x227c   :  { %3621 = vrot.lane.b32.xlu0 %v5123_v36, %s5223_s4 }
0x2282   :  { %v5125_v39 = vpop.eup %5124 }
0x2283   :  { %3694 = vrot.lane.b32.xlu1 %v5125_v39, %s5223_s4  ;;  %v5127_v42 = vpop.eup %5126 }
0x2284   :  { %v3615_v21 = vadd.f32 1.0, %v5127_v42  ;;  %v5129_v43 = vpop.eup %5128 }
0x2285   :  { %v3688_v44 = vadd.f32 1.0, %v5129_v43 }
0x2286   :  { %5130 = vrcp.f32 %v3615_v21 }
0x2287   :  { %5132 = vrcp.f32 %v3688_v44 }
0x2290   :  { %v5131_v53 = vpop.eup %5130 }
0x2291   :  { %v5133_v2 = vpop.eup %5132  ;;  %v3619_v48 = vmul.f32 %v5131_v53, %v6139_v49 }
0x2292   :  { %v3692_v10 = vmul.f32 %v5133_v2, %v6143_v28 }
0x22ee   :  { %v3622_v56 = vpop.permute.xlu0 %3621 }
0x22ef   :  { %v3624_v23 = vmul.f32 %v5131_v53, %v3622_v56  ;;  %v5192_v56 = vld [vmem:[%s6302_s6] sm:$0xff]  }
0x22f1   :  { %3626 = vrot.lane.b32.xlu0 %v3624_v23, %s5223_s4  ;;  %v5193_v23 = vld [vmem:[%s6302_s6 + $0x8] sm:$0xff]  }
0x22f5   :  { %v3695_v46 = vpop.permute.xlu1 %3694 }
0x22f6   :  { %v3697_v45 = vmul.f32 %v5133_v2, %v3695_v46  ;;  %v5194_v46 = vld [vmem:[%s6303_s7] sm:$0xff]  }
0x22f8   :  { %3699 = vrot.lane.b32.xlu1 %v3697_v45, %s5223_s4  ;;  %v5195_v45 = vld [vmem:[%s6303_s7 + $0x8] sm:$0xff]  }
0x2363   :  { %v3627_v50 = vpop.permute.xlu0 %3626 }
0x2364   :  { %v6169_v51 = vadd.f32 %v3627_v50, %v3619_v48  ;;  %v3855_v48 = vld [vmem:[#allocation2 + $0x18] sm:$0x3] }
0x2366   :  { %5134 = vtanh.f32 %v6169_v51 }
0x236a   :  { %v3700_v52 = vpop.permute.xlu1 %3699 }
0x236b   :  { %v6173_v13 = vadd.f32 %v3700_v52, %v3692_v10 }
0x236d   :  { %5136 = vtanh.f32 %v6173_v13 }
0x2370   :  { %v5135_v54 = vpop.eup %5134 }
0x2371   :  { %3632 = vrot.lane.b32.xlu0 %v5135_v54, %s5223_s4  ;;  %v3928_v54 = vld [vmem:[#allocation2 + $0x6] sm:$0x3] }
0x2377   :  { %v5137_v27 = vpop.eup %5136 }
0x2378   :  { %3705 = vrot.lane.b32.xlu1 %v5137_v27, %s5223_s4 }
0x23e3   :  { %v3633_v57 = vpop.permute.xlu0 %3632 }
0x23e4   :  { %v3635_v32 = vmul.f32 %v5131_v53, %v3633_v57 }
0x23e6   :  { %v3710_v59 = vpack.c.bf16 %v3635_v32, %v3635_v32 }
0x23e8   :  { %3712 = vrot.lane.b32.xlu0 %v3710_v59, %s5224_s16 }
0x23ea   :  { %v3706_v60 = vpop.permute.xlu1 %3705 }
0x23eb   :  { %v3708_v63 = vmul.f32 %v5133_v2, %v3706_v60 }
0x23ed   :  { %v3783_v61 = vpack.c.bf16 %v3708_v63, %v3708_v63 }
0x23ef   :  { %3785 = vrot.lane.b32.xlu1 %v3783_v61, %s5224_s16 }
0x245a   :  { %v3713_v9 = vpop.permute.xlu0 %3712 }
0x245b   :  { %4815 = vmatmul.mubr.msk.bf16.vlgmr.msra.gmra.mrb[100].mxu0 %vm593_vm3, %v3713_v9 }
0x245c   :  { %4827 = vmatpush3.bf16.msra.mxu0 %v5995_v37  ;;  %4830 = vmatprep.mubr.msk.bf16.mxu0 %vm5222_vm2, %v5221_v20  ;;  %v3709_v37 = vld [vmem:[#allocation2 + $0x14] sm:$0x3] }
0x245d   :  { %4828 = vmatprep.subr.bf16.mxu0 %v5221_v20 }
0x2460   :  { %4829 = vmatpush3.bf16.msra.mxu0 %v6005_v5 }
0x2461   :  { %v3786_v11 = vpop.permute.xlu1 %3785  ;;  %4842 = vmatprep.subr.bf16.mxu0 %v5221_v20 }
0x2462   :  { %4823 = vmatmul.mubr.msk.bf16.vlgmr.msra.gmra.mrb[100].mxu1 %vm593_vm3, %v3786_v11 }
0x2463   :  { %4835 = vmatpush3.bf16.msra.mxu1 %v5962_v62  ;;  %4838 = vmatprep.mubr.msk.bf16.mxu1 %vm5222_vm2, %v5221_v20 }
0x2464   :  { %4836 = vmatprep.subr.bf16.mxu1 %v5221_v20 }
0x2467   :  { %4837 = vmatpush3.bf16.msra.mxu1 %v5973_v0 }
0x2468   :  { %4850 = vmatprep.subr.bf16.mxu1 %v5221_v20 }
0x252e   :  { %v3751_v15 = vpop.f32.mrb[100].mxu0 }
0x252f   :  { %v3757_v26 = vadd.f32 %v3751_v15, %v3709_v37  ;;  %v4816_v5 = vpop.f32.mrb[101].mxu0 }
0x2530   :  { %v3754_v49 = vpop.f32.mrb[102].mxu0 }
0x2531   :  { %5138 = vtanh.f32 %v3757_v26  ;;  %v4817_v3 = vpop.f32.mrb[103].mxu0  ;;  %v4482_v6 = vmul.f32 -1.442695, %v3757_v26 }
0x2535   :  { %v3824_v28 = vpop.f32.mrb[100].mxu1 }
0x2536   :  { %v3830_v7 = vadd.f32 %v3824_v28, %v3782_v12  ;;  %v4824_v62 = vpop.f32.mrb[101].mxu1 }
0x2537   :  { %v3827_v14 = vpop.f32.mrb[102].mxu1 }
0x2538   :  { %5140 = vtanh.f32 %v3830_v7  ;;  %v4825_v16 = vpop.f32.mrb[103].mxu1  ;;  %v4484_v17 = vmul.f32 -1.442695, %v3830_v7 }
0x2539   :  { %5142 = vpow2.f32 %v4482_v6 }
0x253a   :  { %5144 = vpow2.f32 %v4484_v17 }
0x253b   :  { %v5139_v8 = vpop.eup %5138 }
0x253c   :  { %3767 = vrot.lane.b32.xlu0 %v5139_v8, %s5223_s4 }
0x2542   :  { %v5141_v0 = vpop.eup %5140 }
0x2543   :  { %3840 = vrot.lane.b32.xlu1 %v5141_v0, %s5223_s4  ;;  %v5143_v19 = vpop.eup %5142 }
0x2544   :  { %v3761_v58 = vadd.f32 1.0, %v5143_v19  ;;  %v5145_v24 = vpop.eup %5144 }
0x2545   :  { %v3834_v47 = vadd.f32 1.0, %v5145_v24 }
0x2546   :  { %5146 = vrcp.f32 %v3761_v58 }
0x2547   :  { %5148 = vrcp.f32 %v3834_v47 }
0x2550   :  { %v5147_v31 = vpop.eup %5146 }
0x2551   :  { %v5149_v30 = vpop.eup %5148  ;;  %v3765_v35 = vmul.f32 %v5147_v31, %v6169_v51 }
0x2552   :  { %v3838_v1 = vmul.f32 %v5149_v30, %v6173_v13 }
0x25ae   :  { %v3768_v40 = vpop.permute.xlu0 %3767 }
0x25af   :  { %v3770_v33 = vmul.f32 %v5147_v31, %v3768_v40 }
0x25b1   :  { %3772 = vrot.lane.b32.xlu0 %v3770_v33, %s5223_s4 }
0x25b5   :  { %v3841_v34 = vpop.permute.xlu1 %3840 }
0x25b6   :  { %v3843_v55 = vmul.f32 %v5149_v30, %v3841_v34 }
0x25b8   :  { %3845 = vrot.lane.b32.xlu1 %v3843_v55, %s5223_s4 }
0x2623   :  { %v3773_v18 = vpop.permute.xlu0 %3772 }
0x2624   :  { %v6199_v38 = vadd.f32 %v3773_v18, %v3765_v35  ;;  %v4001_v35 = vld [vmem:[#allocation2 + $0x1c] sm:$0x3] }
0x2626   :  { %5150 = vtanh.f32 %v6199_v38 }
0x262a   :  { %v3846_v22 = vpop.permute.xlu1 %3845 }
0x262b   :  { %v6203_v4 = vadd.f32 %v3846_v22, %v3838_v1 }
0x262d   :  { %5152 = vtanh.f32 %v6203_v4 }
0x2630   :  { %v5151_v36 = vpop.eup %5150 }
0x2631   :  { %3778 = vrot.lane.b32.xlu0 %v5151_v36, %s5223_s4  ;;  %v4074_v36 = vld [vmem:[#allocation2 + $0x2] sm:$0x3] }
0x2637   :  { %v5153_v39 = vpop.eup %5152 }
0x2638   :  { %3851 = vrot.lane.b32.xlu1 %v5153_v39, %s5223_s4 }
0x26a3   :  { %v3779_v41 = vpop.permute.xlu0 %3778 }
0x26a4   :  { %v3781_v29 = vmul.f32 %v5147_v31, %v3779_v41 }
0x26a6   :  { %v3856_v42 = vpack.c.bf16 %v3781_v29, %v3781_v29 }
0x26a8   :  { %3858 = vrot.lane.b32.xlu0 %v3856_v42, %s5224_s16 }
0x26aa   :  { %v3852_v21 = vpop.permute.xlu1 %3851 }
0x26ab   :  { %v3854_v43 = vmul.f32 %v5149_v30, %v3852_v21 }
0x26ad   :  { %v3929_v44 = vpack.c.bf16 %v3854_v43, %v3854_v43 }
0x26af   :  { %3931 = vrot.lane.b32.xlu1 %v3929_v44, %s5224_s16 }
0x271a   :  { %v3859_v53 = vpop.permute.xlu0 %3858 }
0x271b   :  { %4831 = vmatmul.mubr.msk.bf16.vlgmr.msra.gmra.mrb[104].mxu0 %vm593_vm3, %v3859_v53 }
0x271c   :  { %4843 = vmatpush3.bf16.msra.mxu0 %v5192_v56  ;;  %4846 = vmatprep.mubr.msk.bf16.mxu0 %vm5222_vm2, %v5221_v20 }
0x271d   :  { %4844 = vmatprep.subr.bf16.mxu0 %v5221_v20 }
0x2720   :  { %4845 = vmatpush3.bf16.msra.mxu0 %v5193_v23 }
0x2721   :  { %v3932_v2 = vpop.permute.xlu1 %3931 }
0x2722   :  { %4839 = vmatmul.mubr.msk.bf16.vlgmr.msra.gmra.mrb[104].mxu1 %vm593_vm3, %v3932_v2 }
0x2723   :  { %4851 = vmatpush3.bf16.msra.mxu1 %v5194_v46  ;;  %4854 = vmatprep.mubr.msk.bf16.mxu1 %vm5222_vm2, %v5221_v20 }
0x2724   :  { %4852 = vmatprep.subr.bf16.mxu1 %v5221_v20 }
0x2727   :  { %4853 = vmatpush3.bf16.msra.mxu1 %v5195_v45 }
0x27ee   :  { %v3897_v50 = vpop.f32.mrb[104].mxu0 }
0x27ef   :  { %v3903_v51 = vadd.f32 %v3897_v50, %v3855_v48  ;;  %v4832_v10 = vpop.f32.mrb[105].mxu0 }
0x27f0   :  { %v3900_v52 = vpop.f32.mrb[106].mxu0 }
0x27f1   :  { %5154 = vtanh.f32 %v3903_v51  ;;  %v4833_v13 = vpop.f32.mrb[107].mxu0  ;;  %v4486_v9 = vmul.f32 -1.442695, %v3903_v51 }
0x27f5   :  { %v3970_v27 = vpop.f32.mrb[104].mxu1 }
0x27f6   :  { %v3976_v57 = vadd.f32 %v3970_v27, %v3928_v54  ;;  %v4840_v32 = vpop.f32.mrb[105].mxu1 }
0x27f7   :  { %v3973_v59 = vpop.f32.mrb[106].mxu1 }
0x27f8   :  { %5156 = vtanh.f32 %v3976_v57  ;;  %v4841_v60 = vpop.f32.mrb[107].mxu1  ;;  %v4488_v11 = vmul.f32 -1.442695, %v3976_v57 }
0x27f9   :  { %5158 = vpow2.f32 %v4486_v9  ;;  %v4147_v60 = vld [vmem:[%s6305_s9] sm:$0xff] }
0x27fa   :  { %5160 = vpow2.f32 %v4488_v11  ;;  %v5226_v11 = vmov 0.0|0.0  }
0x27fb   :  { %v5155_v63 = vpop.eup %5154  ;;  %4886 = vmatprep.subr.bf16.mxu1 %v5226_v11  ;;  %4880 = vmatprep.subr.bf16.mxu0 %v5226_v11 }
0x27fc   :  { %3913 = vrot.lane.b32.xlu0 %v5155_v63, %s5223_s4  ;;  %v4148_v63 = vld [vmem:[%s6305_s9 + $0x8] sm:$0xff] }
0x2802   :  { %v5157_v61 = vpop.eup %5156 }
0x2803   :  { %3986 = vrot.lane.b32.xlu1 %v5157_v61, %s5223_s4  ;;  %v5159_v37 = vpop.eup %5158  ;;  %v4149_v61 = vld [vmem:[%s6305_s9 + $0x10] sm:$0xff] }
0x2804   :  { %v3907_v15 = vadd.f32 1.0, %v5159_v37  ;;  %v5161_v26 = vpop.eup %5160  ;;  %v4887_v37 = vpack.c.bf16 %v4148_v63, %v4147_v60 }
0x2805   :  { %v3980_v5 = vadd.f32 1.0, %v5161_v26  ;;  %v4151_v26 = vld [vmem:[%s6305_s9 + $0x20] sm:$0xff] }
0x2806   :  { %5162 = vrcp.f32 %v3907_v15  ;;  %v4150_v15 = vld [vmem:[%s6305_s9 + $0x18] sm:$0xff] }
0x2807   :  { %5164 = vrcp.f32 %v3980_v5  ;;  %v4152_v5 = vld [vmem:[%s6305_s9 + $0x28] sm:$0xff] }
0x2810   :  { %v5163_v49 = vpop.eup %5162 }
0x2811   :  { %v5165_v28 = vpop.eup %5164  ;;  %v3911_v14 = vmul.f32 %v5163_v49, %v6199_v38 }
0x2812   :  { %v3984_v0 = vmul.f32 %v5165_v28, %v6203_v4 }
0x286e   :  { %v3914_v3 = vpop.permute.xlu0 %3913 }
0x286f   :  { %v3916_v12 = vmul.f32 %v5163_v49, %v3914_v3  ;;  %v4890_v3 = vpack.c.bf16 %v4150_v15, %v4149_v61 }
0x2871   :  { %3918 = vrot.lane.b32.xlu0 %v3916_v12, %s5223_s4 }
0x2875   :  { %v3987_v7 = vpop.permute.xlu1 %3986 }
0x2876   :  { %v3989_v62 = vmul.f32 %v5165_v28, %v3987_v7 }
0x2878   :  { %3991 = vrot.lane.b32.xlu1 %v3989_v62, %s5223_s4  ;;  %v4153_v62 = vld [vmem:[%s6305_s9 + $0x30] sm:$0xff] }
0x28e3   :  { %v3919_v16 = vpop.permute.xlu0 %3918 }
0x28e4   :  { %v3921_v8 = vadd.f32 %v3919_v16, %v3911_v14  ;;  %v4154_v14 = vld [vmem:[%s6305_s9 + $0x38] sm:$0xff] }
0x28e5   :  { %v4884_v16 = vpack.c.bf16 %v4154_v14, %v4153_v62 }
0x28e6   :  { %5166 = vtanh.f32 %v3921_v8 }
0x28ea   :  { %v3992_v6 = vpop.permute.xlu1 %3991 }
0x28eb   :  { %v3994_v17 = vadd.f32 %v3992_v6, %v3984_v0 }
0x28ed   :  { %5168 = vtanh.f32 %v3994_v17 }
0x28f0   :  { %v5167_v19 = vpop.eup %5166 }
0x28f1   :  { %3924 = vrot.lane.b32.xlu0 %v5167_v19, %s5223_s4 }
0x28f7   :  { %v5169_v58 = vpop.eup %5168 }
0x28f8   :  { %3997 = vrot.lane.b32.xlu1 %v5169_v58, %s5223_s4 }
0x2963   :  { %v3925_v24 = vpop.permute.xlu0 %3924 }
0x2964   :  { %v3927_v47 = vmul.f32 %v5163_v49, %v3925_v24  ;;  %v4881_v49 = vpack.c.bf16 %v4152_v5, %v4151_v26 }
0x2966   :  { %v4002_v31 = vpack.c.bf16 %v3927_v47, %v3927_v47 }
0x2968   :  { %4004 = vrot.lane.b32.xlu0 %v4002_v31, %s5224_s16 }
0x296a   :  { %v3998_v40 = vpop.permute.xlu1 %3997 }
0x296b   :  { %v4000_v33 = vmul.f32 %v5165_v28, %v3998_v40  ;;  %v5227_v28 = vmov 1983009808  }
0x296c   :  { %v4157_v7 = vunpack.c.l.s4 %v5227_v28 }
0x296d   :  { %v4075_v30 = vpack.c.bf16 %v4000_v33, %v4000_v33 }
0x296f   :  { %4077 = vrot.lane.b32.xlu1 %v4075_v30, %s5224_s16 }
0x29da   :  { %v4005_v34 = vpop.permute.xlu0 %4004 }
0x29db   :  { %4847 = vmatmul.mubr.msk.bf16.vlgmr.msra.gmra.mrb[108].mxu0 %vm593_vm3, %v4005_v34 }
0x29dc   :  { %4866 = vmatprep.mubr.msk.f32.mxu0 %vm5222_vm2, %v5221_v20  ;;  %4882 = vmatpush3.bf16.msra.mxu0 %v4881_v49 }
0x29dd   :  { %4883 = vmatprep.subr.bf16.mxu0 %v5226_v11 }
0x29e0   :  { %4885 = vmatpush3.bf16.msra.mxu0 %v4884_v16 }
0x29e1   :  { %v4078_v55 = vpop.permute.xlu1 %4077 }
0x29e2   :  { %4855 = vmatmul.mubr.msk.bf16.vlgmr.msra.gmra.mrb[108].mxu1 %vm593_vm3, %v4078_v55 }
0x29e3   :  { %4877 = vmatprep.mubr.msk.f32.mxu1 %vm5222_vm2, %v5221_v20  ;;  %4888 = vmatpush3.bf16.msra.mxu1 %v4887_v37 }
0x29e4   :  { %4889 = vmatprep.subr.bf16.mxu1 %v5226_v11 }
0x29e7   :  { %4891 = vmatpush3.bf16.msra.mxu1 %v4890_v3 }
0x2aae   :  { %v4043_v18 = vpop.f32.mrb[108].mxu0 }
0x2aaf   :  { %v4049_v38 = vadd.f32 %v4043_v18, %v4001_v35  ;;  %v4848_v1 = vpop.f32.mrb[109].mxu0 }
0x2ab0   :  { %v4046_v22 = vpop.f32.mrb[110].mxu0 }
0x2ab1   :  { %5170 = vtanh.f32 %v4049_v38  ;;  %v4849_v4 = vpop.f32.mrb[111].mxu0  ;;  %v4490_v20 = vmul.f32 -1.442695, %v4049_v38 }
0x2ab5   :  { %v4116_v39 = vpop.f32.mrb[108].mxu1 }
0x2ab6   :  { %v4122_v41 = vadd.f32 %v4116_v39, %v4074_v36  ;;  %v4856_v29 = vpop.f32.mrb[109].mxu1 }
0x2ab7   :  { %v4119_v42 = vpop.f32.mrb[110].mxu1 }
0x2ab8   :  { %5172 = vtanh.f32 %v4122_v41  ;;  %v4857_v21 = vpop.f32.mrb[111].mxu1  ;;  %v4492_v53 = vmul.f32 -1.442695, %v4122_v41 }
0x2ab9   :  { %5174 = vpow2.f32 %v4490_v20 }
0x2aba   :  { %5176 = vpow2.f32 %v4492_v53 }
0x2abb   :  { %v5171_v43 = vpop.eup %5170 }
0x2abc   :  { %4059 = vrot.lane.b32.xlu0 %v5171_v43, %s5223_s4 }
0x2ac2   :  { %v5173_v44 = vpop.eup %5172 }
0x2ac3   :  { %4132 = vrot.lane.b32.xlu1 %v5173_v44, %s5223_s4  ;;  %v5175_v56 = vpop.eup %5174 }
0x2ac4   :  { %v4053_v23 = vadd.f32 1.0, %v5175_v56  ;;  %v5177_v2 = vpop.eup %5176 }
0x2ac5   :  { %v4126_v46 = vadd.f32 1.0, %v5177_v2 }
0x2ac6   :  { %5178 = vrcp.f32 %v4053_v23 }
0x2ac7   :  { %5180 = vrcp.f32 %v4126_v46 }
0x2ad0   :  { %v5179_v45 = vpop.eup %5178 }
0x2ad1   :  { %v5181_v51 = vpop.eup %5180  ;;  %v4057_v13 = vmul.f32 %v5179_v45, %v3921_v8  ;;  %v4158_v8 = vunpack.c.0.s8 %v4157_v7 }
0x2ad2   :  { %v4130_v57 = vmul.f32 %v5181_v51, %v3994_v17 }
0x2ad3   :  { %v4161_v0 = vsub.s32 %v4158_v8, %v5487_v25  ;;  %v4495_v25 = vld [vmem:[%s6306_s10] ss:$0 sm:$0xff] }
0x2b2e   :  { %v4060_v48 = vpop.permute.xlu0 %4059 }
0x2b2f   :  { %v4062_v50 = vmul.f32 %v5179_v45, %v4060_v48 }
0x2b31   :  { %4064 = vrot.lane.b32.xlu0 %v4062_v50, %s5223_s4 }
0x2b35   :  { %v4133_v10 = vpop.permute.xlu1 %4132 }
0x2b36   :  { %v4135_v52 = vmul.f32 %v5181_v51, %v4133_v10 }
0x2b38   :  { %4137 = vrot.lane.b32.xlu1 %v4135_v52, %s5223_s4 }
0x2ba3   :  { %v4065_v54 = vpop.permute.xlu0 %4064 }
0x2ba4   :  { %v4067_v27 = vadd.f32 %v4065_v54, %v4057_v13 }
0x2ba6   :  { %5182 = vtanh.f32 %v4067_v27 }
0x2baa   :  { %v4138_v32 = vpop.permute.xlu1 %4137 }
0x2bab   :  { %v4140_v59 = vadd.f32 %v4138_v32, %v4130_v57 }
0x2bad   :  { %5184 = vtanh.f32 %v4140_v59 }
0x2bb0   :  { %v5183_v9 = vpop.eup %5182 }
0x2bb1   :  { %4070 = vrot.lane.b32.xlu0 %v5183_v9, %s5223_s4 }
0x2bb7   :  { %v5185_v12 = vpop.eup %5184 }
0x2bb8   :  { %4143 = vrot.lane.b32.xlu1 %v5185_v12, %s5223_s4 }
0x2c23   :  { %v4071_v6 = vpop.permute.xlu0 %4070 }
0x2c24   :  { %v4073_v17 = vmul.f32 %v5179_v45, %v4071_v6 }
0x2c26   :  { %v4244_v19 = vrot.slane %v4073_v17, %v4161_v0 }
0x2c28   :  { %4245 = vrot.lane.b32.xlu1 %v4244_v19, %s5224_s16 }
0x2c2a   :  { %v4144_v58 = vpop.permute.xlu1 %4143 }
0x2c2b   :  { %v4146_v24 = vmul.f32 %v5181_v51, %v4144_v58 }
0x2c2d   :  { %v4162_v47 = vrot.slane %v4146_v24, %v4161_v0 }
0x2c2f   :  { %4163 = vrot.lane.b32.xlu0 %v4162_v47, %s5224_s16  ;;  %s5228_s16 = smov [#allocation5]  }
0x2c30   :  { %s4346_s24 = sshll.u32 %s5228_s16, 4  ;;  %s4347_s24 = int_to_ptr.vmem [resolvable:$true] %s4346_s24 }
0x2c31   :  { %s5196_s10 = scalar_lea.vmem %s4347_s24, 32  ;;  %p5201_p1 = scmp.lt.s32.totalorder %s4347_s24, %s4347_s24 }
0x2c32   :  { %p5197_p0 = scmp.ne.s32.totalorder %s4347_s24, %s5196_s10  ;;  %p5202_p2 = scmp.lt.s32.totalorder %s5196_s10, %s5196_s10 }
0x2c34   :  { %p5203_p3 = por %p5202_p2, %p5201_p1 }
0x2c36   :  { %p5204_p4 = pnand %p5203_p3, %p5197_p0 }
0x2c9a   :  { %v4246_v31 = vpop.permute.xlu1 %4245 }
0x2c9b   :  { %4878 = vmatmul.mubr.msk.f32.vlgmr.msra.gmra.mrb[112].mxu1 %vm593_vm3, %v4246_v31 }
0x2ca1   :  { %v4164_v40 = vpop.permute.xlu0 %4163 }
0x2ca2   :  { %4867 = vmatmul.mubr.msk.f32.vlgmr.msra.gmra.mrb[112].mxu0 %vm593_vm3, %v4164_v40 }
0x2d6e   :  { %v4315_v33 = vpop.f32.mrb[112].mxu1 }
0x2d6f   :  { %v4879_v30 = vpop.f32.mrb[113].mxu1 }
0x2d75   :  { %v4233_v34 = vpop.f32.mrb[112].mxu0 }
0x2d76   :  { %v4316_v55 = vadd.f32 %v4315_v33, %v4233_v34  ;;  %v4868_v35 = vpop.f32.mrb[113].mxu0 }
0x2d78   :  { %v4326_v18 = vadd.f32 %v4495_v25, %v4316_v55 }
0x2d7a   :  { %v4328_v38 = vsel %vm4327_vm5, %v4326_v18, -inf }
0x2d7b   :  { %4329 = vmax.xlane.f32.xlu0 %v4328_v38 }
0x2e08   :  { %v4330_v1 = vpop.xlane.xlu0 %4329 }
0x2e09   :  { %v4331_v22 = vsub.f32 %v4326_v18, %v4330_v1 }
0x2e0b   :  { %v4332_v4 = vmul.f32 1.442695, %v4331_v22 }
0x2e0d   :  { %5186 = vpow2.f32 %v4332_v4 }
0x2e17   :  { %v5187_v36 = vpop.eup %5186 }
0x2e18   :  { %v4334_v39 = vsel %vm4327_vm5, %v5187_v36, 0.0 }
0x2e19   :  { %4335 = vadd.xlane.f32.xlu1 %v4334_v39 }
0x2ea6   :  { %v4336_v41 = vpop.xlane.xlu1 %4335 }
0x2ea7   :  { %5188 = vrcp.f32 %v4336_v41 }
0x2eb1   :  { %v5189_v29 = vpop.eup %5188 }
0x2eb2   :  { %v4338_v42 = vmul.f32 %v5189_v29, %v5187_v36 }
0x2eb4   :  { %4339 = vst [vmem:[#allocation5] sm:$0x3] %v4338_v42 }
0x2eb5   :  { %5207 = shalt.err (!%p5204_p4)
}
0x2eb6   :  { %s5208_s26 = scalar_lea.hbm %s6307_s11, 32 }
0x2eb7   :  { %p5209_p5 = scmp.ne.s32.totalorder %s6307_s11, %s5208_s26  ;;  %p5212_p6 = scmp.lt.u32.totalorder %s5208_s26, %s6307_s11 }
0x2eb9   :  { %p5214_p7 = pnand %p5212_p6, %p5209_p5 }
0x2ebb   :  { %5217 = shalt.err (!%p5214_p7)
}
0x2ebc   :  { %4349 = dma.vmem_to_hbm [thread:$0]  %s4347_s24, 32, %s6307_s11, [#allocation6]  }
0x2ebd   :  { %5218 = dma.done.wait [#allocation6], 32  }
0x2ebe   :  { %5219 = vsyncadd [#allocation6], 4294967264 }
0x2ebf   :  { %4353 = vsyncpa [#allocation6], 1 }

</bundles_post_ra>
